<compile_context>
chip_gen: v7x
topology: tpu7x:2x2x1
jax: 0.10.0
libtpu: 0.0.40
codegen_flags: <defaults>
</compile_context>

<pallas_src>
import jax
import jax.numpy as jnp
import numpy as np
from jax.experimental import pallas as pl
from jax.experimental.pallas import tpu as pltpu


# ---------------------------------------------------------------------------
# Fused kernel: conv1(5x5)+ReLU+pool -> conv2(5x5)+ReLU+pool -> fc1+ReLU -> fc
# ---------------------------------------------------------------------------

def fedavg_fused_kernel(x_ref, a1w_ref, b1_ref, a2w_ref, b2_ref,
                        w1_ref, fb1_ref, w2_ref, fb2_ref,
                        feat_ref, preds_ref):
    """One batch-tile of the whole FedAvgCNN forward.

    x_ref : (H, tb, W*Cin) f32   image rows on lanes, batch on sublanes.
    a1w   : (5, 2, W*Cin, PW1*32) bf16  banded conv1 weights (per vertical tap, per
                                        output-column parity -> pool folded in).
    a2w   : (5, 2, PW1*32, PW2*64) bf16 banded conv2 weights (same trick).
    w1    : (PH2, PW2*64, 512) bf16     fc1 weights, rows pre-permuted (no runtime flatten).
    w2    : (512, 128) bf16             fc weights zero-padded to 128 classes.
    Biases are f32, pre-tiled to match the packed column layouts.
    """
    H, tb, K1 = x_ref.shape
    KH = a1w_ref.shape[0]                 # 5
    OH1 = H - KH + 1                      # 24
    PH1 = OH1 // 2                        # 12
    OH2 = PH1 - KH + 1                    # 8
    PH2 = OH2 // 2                        # 4
    N1 = a1w_ref.shape[-1]                # PW1*32
    N2 = a2w_ref.shape[-1]                # PW2*64

    x = x_ref[...].astype(jnp.bfloat16)   # (H, tb, W*Cin)

    # ---- conv1: banded width-GEMMs; even/odd output-column partials; pool = max. ----
    acc_e = acc_o = None
    for i in range(KH):
        lhs = x[i:i + OH1].reshape(OH1 * tb, K1)       # rows = (out_row, batch); free collapse
        ye = jnp.dot(lhs, a1w_ref[i, 0], preferred_element_type=jnp.float32)
        yo = jnp.dot(lhs, a1w_ref[i, 1], preferred_element_type=jnp.float32)
        acc_e = ye if acc_e is None else acc_e + ye
        acc_o = yo if acc_o is None else acc_o + yo
    he = acc_e.reshape(PH1, 2, tb, N1)                  # split out-row pairs (major dims only)
    ho = acc_o.reshape(PH1, 2, tb, N1)
    m1 = jnp.maximum(jnp.maximum(he[:, 0], he[:, 1]),
                     jnp.maximum(ho[:, 0], ho[:, 1]))   # 2x2 max-pool
    # bias-after-max and ReLU-after-max are exact (per-channel constant bias, monotone ops)
    a1 = jnp.maximum(m1 + b1_ref[...], 0.0).astype(jnp.bfloat16)   # (PH1, tb, N1)

    # ---- conv2: same structure, contraction over (width, 32 in-channels). ----
    acc_e = acc_o = None
    for i in range(KH):
        lhs = a1[i:i + OH2].reshape(OH2 * tb, N1)
        ye = jnp.dot(lhs, a2w_ref[i, 0], preferred_element_type=jnp.float32)
        yo = jnp.dot(lhs, a2w_ref[i, 1], preferred_element_type=jnp.float32)
        acc_e = ye if acc_e is None else acc_e + ye
        acc_o = yo if acc_o is None else acc_o + yo
    he = acc_e.reshape(PH2, 2, tb, N2)
    ho = acc_o.reshape(PH2, 2, tb, N2)
    m2 = jnp.maximum(jnp.maximum(he[:, 0], he[:, 1]),
                     jnp.maximum(ho[:, 0], ho[:, 1]))
    a2 = jnp.maximum(m2 + b2_ref[...], 0.0).astype(jnp.bfloat16)   # (PH2, tb, N2)

    # ---- fc1 + ReLU: accumulate one GEMM per pooled row (weights pre-permuted). ----
    h = None
    for r in range(PH2):
        y = jnp.dot(a2[r], w1_ref[r], preferred_element_type=jnp.float32)
        h = y if h is None else h + y
    h = jnp.maximum(h + fb1_ref[...], 0.0)              # (tb, 512) f32
    feat_ref[...] = h.astype(feat_ref.dtype)            # lane-dense (512) store

    # ---- fc: classes zero-padded to 128 lanes -> full-lane store. ----
    preds = jnp.dot(h.astype(jnp.bfloat16), w2_ref[...],
                    preferred_element_type=jnp.float32) + fb2_ref[...]
    preds_ref[...] = preds.astype(preds_ref.dtype)


# ---------------------------------------------------------------------------
# Wrapper
# ---------------------------------------------------------------------------

def _pick_tile_b(batch):
    """Batch rows per grid step: multiple of 8 (sublane tile); >=2 parallel steps
    for batch>=16 (keeps both v7x TensorCores busy); capped so the per-step
    working set stays well inside every generation's VMEM."""
    if batch <= 16:
        return 8
    return max(8, min(32, (batch // 2) // 8 * 8))


def fedavg_cnn_forward(prepped, x_nchw):
    """Pallas forward. x_nchw: (B, Cin, 28, 28) float32. Returns (preds, feat)."""
    B, Cin, H, W = x_nchw.shape
    n_classes = prepped["fc_b"].shape[1]
    NH = prepped["fc1_w"].shape[-1]
    tb = _pick_tile_b(B)
    Bp = -(-B // tb) * tb

    # NCHW -> (H, B, W*Cin): image rows on lanes, batch on sublanes (cheap glue, tiny tensor).
    x_hbw = jnp.transpose(x_nchw, (2, 0, 3, 1)).reshape(H, B, W * Cin)
    if Bp != B:
        x_hbw = jnp.pad(x_hbw, ((0, 0), (0, Bp - B), (0, 0)))

    feat_pad, preds_pad = pl.pallas_call(
        fedavg_fused_kernel,
        out_shape=(jax.ShapeDtypeStruct((Bp, NH), jnp.float32),
                   jax.ShapeDtypeStruct((Bp, 128), jnp.float32)),
        grid=(Bp // tb,),
        in_specs=[
            pl.BlockSpec((H, tb, W * Cin), lambda i: (0, i, 0)),
            pl.BlockSpec(prepped["conv1_A"].shape, lambda i: (0, 0, 0, 0)),
            pl.BlockSpec(prepped["conv1_b"].shape, lambda i: (0, 0)),
            pl.BlockSpec(prepped["conv2_B"].shape, lambda i: (0, 0, 0, 0)),
            pl.BlockSpec(prepped["conv2_b"].shape, lambda i: (0, 0)),
            pl.BlockSpec(prepped["fc1_w"].shape, lambda i: (0, 0, 0)),
            pl.BlockSpec(prepped["fc1_b"].shape, lambda i: (0, 0)),
            pl.BlockSpec(prepped["fc_w"].shape, lambda i: (0, 0)),
            pl.BlockSpec(prepped["fc_bp"].shape, lambda i: (0, 0)),
        ],
        out_specs=(pl.BlockSpec((tb, NH), lambda i: (i, 0)),
                   pl.BlockSpec((tb, 128), lambda i: (i, 0))),
        compiler_params=pltpu.CompilerParams(
            dimension_semantics=("parallel",),
            vmem_limit_bytes=48 * 1024 * 1024),
    )(x_hbw, prepped["conv1_A"], prepped["conv1_b"], prepped["conv2_B"],
      prepped["conv2_b"], prepped["fc1_w"], prepped["fc1_b"],
      prepped["fc_w"], prepped["fc_bp"])

    return preds_pad[:B, :n_classes], feat_pad[:B]


# ---------------------------------------------------------------------------
# Parameter handling (one-time repack, outside the forward hot path)
# ---------------------------------------------------------------------------

def init_params(key, in_features=1, n_classes=10, dim=1024):
    ks = jax.random.split(key, 8)

    def nrm(k, shape, scale):
        return scale * jax.random.normal(k, shape, dtype=jnp.float32)

    return {
        "conv1_w": nrm(ks[0], (32, in_features, 5, 5), 0.10),  # PyTorch (Cout,Cin,KH,KW)
        "conv1_b": nrm(ks[1], (32,), 0.10),
        "conv2_w": nrm(ks[2], (64, 32, 5, 5), 0.05),
        "conv2_b": nrm(ks[3], (64,), 0.05),
        "fc1_w":   nrm(ks[4], (512, dim), 0.03),               # PyTorch Linear (out,in)
        "fc1_b":   nrm(ks[5], (512,), 0.03),
        "fc_w":    nrm(ks[6], (n_classes, 512), 0.03),
        "fc_b":    nrm(ks[7], (n_classes,), 0.03),
    }


def prepare_params(params, in_hw=28):
    """One-time repack: banded conv->GEMM matrices (pool parity folded), tiled biases,
    fc1 row permutation from (C,H,W) to our packed layout, class padding, bf16 casts."""
    w1 = np.asarray(params["conv1_w"], dtype=np.float32)   # (C1, Cin, KH, KW)
    b1 = np.asarray(params["conv1_b"], dtype=np.float32)
    w2 = np.asarray(params["conv2_w"], dtype=np.float32)   # (C2, C1, KH, KW)
    b2 = np.asarray(params["conv2_b"], dtype=np.float32)
    fw1 = np.asarray(params["fc1_w"], dtype=np.float32)    # (NH, dim)
    fb1 = np.asarray(params["fc1_b"], dtype=np.float32)
    fw2 = np.asarray(params["fc_w"], dtype=np.float32)     # (NC, NH)
    fb2 = np.asarray(params["fc_b"], dtype=np.float32)

    C1, Cin, KH, KW = w1.shape
    C2 = w2.shape[0]
    NH, dim = fw1.shape
    NC = fw2.shape[0]
    assert KH == KW == 5

    OH1 = in_hw - KH + 1
    PH1 = OH1 // 2
    OH2 = PH1 - KH + 1
    PH2 = OH2 // 2
    assert OH1 % 2 == 0 and OH2 % 2 == 0, "spatial sizes must pool evenly"
    assert dim == C2 * PH2 * PH2, "fc1 input dim inconsistent with the input size"
    assert NC <= 128, "n_classes must fit one lane tile"

    # conv1 banded width-GEMM weights, split by output-column parity (folds the pool):
    # A[i, p, win*Cin + ci, pw*C1 + c] = w1[c, ci, i, win - (2*pw + p)]
    w1_t = np.transpose(w1, (2, 3, 1, 0))                  # (i, j, ci, c)
    A = np.zeros((KH, 2, in_hw * Cin, PH1 * C1), np.float32)
    for i in range(KH):
        for p in range(2):
            for pw in range(PH1):
                ow = 2 * pw + p
                for j in range(KW):
                    win = ow + j
                    A[i, p, win * Cin:(win + 1) * Cin, pw * C1:(pw + 1) * C1] = w1_t[i, j]

    # conv2: B[i, p, pw*C1 + c, rw*C2 + d] = w2[d, c, i, pw - (2*rw + p)]
    w2_t = np.transpose(w2, (2, 3, 1, 0))                  # (i, j, c, d)
    Bm = np.zeros((KH, 2, PH1 * C1, PH2 * C2), np.float32)
    for i in range(KH):
        for p in range(2):
            for rw in range(PH2):
                qw = 2 * rw + p
                for j in range(KW):
                    pw = qw + j
                    Bm[i, p, pw * C1:(pw + 1) * C1, rw * C2:(rw + 1) * C2] = w2_t[i, j]

    # fc1: rows permuted from PyTorch (C,H,W) flatten order to (row, col*C2 + chan).
    w1s = np.transpose(fw1.reshape(NH, C2, PH2, PH2), (2, 3, 1, 0)).reshape(PH2, PH2 * C2, NH)

    # fc: zero-pad classes to 128 lanes (full-lane stores); slice back outside the kernel.
    w2p = np.zeros((NH, 128), np.float32)
    w2p[:, :NC] = fw2.T
    fb2p = np.zeros((1, 128), np.float32)
    fb2p[0, :NC] = fb2

    return {
        "conv1_A": jnp.asarray(A, jnp.bfloat16),
        "conv1_b": jnp.asarray(np.tile(b1, PH1).reshape(1, -1), jnp.float32),
        "conv2_B": jnp.asarray(Bm, jnp.bfloat16),
        "conv2_b": jnp.asarray(np.tile(b2, PH2).reshape(1, -1), jnp.float32),
        "fc1_w":   jnp.asarray(w1s, jnp.bfloat16),
        "fc1_b":   jnp.asarray(fb1.reshape(1, -1), jnp.float32),
        "fc_w":    jnp.asarray(w2p, jnp.bfloat16),
        "fc_bp":   jnp.asarray(fb2p, jnp.float32),
        "fc_b":    jnp.asarray(fb2.reshape(1, -1), jnp.float32),  # raw width carries n_classes
    }


# ---------------------------------------------------------------------------
# Pure-JAX reference (correctness check)
# ---------------------------------------------------------------------------

def reference_forward(params, x_nchw):
    def conv_block(x, w, b):
        y = jax.lax.conv_general_dilated(
            x, w, window_strides=(1, 1), padding="VALID",
            dimension_numbers=("NCHW", "OIHW", "NCHW"))
        y = jnp.maximum(y + b.reshape(1, -1, 1, 1), 0.0)
        return jax.lax.reduce_window(y, -jnp.inf, jax.lax.max,
                                     (1, 1, 2, 2), (1, 1, 2, 2), "VALID")

    o = conv_block(x_nchw, params["conv1_w"], params["conv1_b"])
    o = conv_block(o, params["conv2_w"], params["conv2_b"])
    flat = o.reshape(o.shape[0], -1)
    feat = jnp.maximum(flat @ params["fc1_w"].T + params["fc1_b"], 0.0)
    preds = feat @ params["fc_w"].T + params["fc_b"]
    return preds, feat


# TODO(synk): validation_step / accuracy (cross-entropy + argmax metrics) are training
# utilities, not part of the forward hot path, and are intentionally not kernelized.

if __name__ == "__main__":
    key = jax.random.PRNGKey(0)
    pkey, xkey = jax.random.split(key)

    params = init_params(pkey, in_features=1, n_classes=10, dim=1024)
    # dim=1024 implies 28x28 single-channel input (64 * 4 * 4 after two conv/pool blocks).
    x = jax.random.normal(xkey, (2, 1, 28, 28), dtype=jnp.float32)

    prepped = prepare_params(params, in_hw=28)               # one-time weight repack

    preds, feat = jax.jit(fedavg_cnn_forward)(prepped, x)
    jax.block_until_ready((preds, feat))

    assert preds.shape == (2, 10) and feat.shape == (2, 512)

    ref_preds, ref_feat = reference_forward(params, x)
    assert jnp.allclose(preds, ref_preds, atol=2e-2, rtol=2e-2), "preds mismatch"
    assert jnp.allclose(feat, ref_feat, atol=2e-2, rtol=2e-2), "features mismatch"

    print("KERNEL_OK")
</pallas_src>

<mosaic_0001>
module attributes {stable_mosaic.version = 11 : i64} {
  func.func @fedavg_fused_kernel(%arg0: i32, %arg1: memref<28x8x28xf32, #tpu.memory_space<vmem>>, %arg2: memref<5x2x28x384xbf16, #tpu.memory_space<vmem>>, %arg3: memref<1x384xf32, #tpu.memory_space<vmem>>, %arg4: memref<5x2x384x256xbf16, #tpu.memory_space<vmem>>, %arg5: memref<1x256xf32, #tpu.memory_space<vmem>>, %arg6: memref<4x256x512xbf16, #tpu.memory_space<vmem>>, %arg7: memref<1x512xf32, #tpu.memory_space<vmem>>, %arg8: memref<512x128xbf16, #tpu.memory_space<vmem>>, %arg9: memref<1x128xf32, #tpu.memory_space<vmem>>, %arg10: memref<8x512xf32, #tpu.memory_space<vmem>>, %arg11: memref<8x128xf32, #tpu.memory_space<vmem>>) attributes {dimension_semantics = [#tpu.dimension_semantics<parallel>], iteration_bounds = array<i64: 1>, scalar_prefetch = 0 : i64, scratch_operands = 0 : i64, tpu.core_type = #tpu.core_type<tc>, window_params = [{transform_indices = @transform_0, window_bounds = array<i64: 28, 8, 28>}, {pipeline_mode = #tpu.pipeline_mode<synchronous>, transform_indices = @transform_1, window_bounds = array<i64: 5, 2, 28, 384>}, {pipeline_mode = #tpu.pipeline_mode<synchronous>, transform_indices = @transform_2, window_bounds = array<i64: 1, 384>}, {pipeline_mode = #tpu.pipeline_mode<synchronous>, transform_indices = @transform_3, window_bounds = array<i64: 5, 2, 384, 256>}, {pipeline_mode = #tpu.pipeline_mode<synchronous>, transform_indices = @transform_4, window_bounds = array<i64: 1, 256>}, {pipeline_mode = #tpu.pipeline_mode<synchronous>, transform_indices = @transform_5, window_bounds = array<i64: 4, 256, 512>}, {pipeline_mode = #tpu.pipeline_mode<synchronous>, transform_indices = @transform_6, window_bounds = array<i64: 1, 512>}, {pipeline_mode = #tpu.pipeline_mode<synchronous>, transform_indices = @transform_7, window_bounds = array<i64: 512, 128>}, {pipeline_mode = #tpu.pipeline_mode<synchronous>, transform_indices = @transform_8, window_bounds = array<i64: 1, 128>}, {transform_indices = @transform_9, window_bounds = array<i64: 8, 512>}, {transform_indices = @transform_10, window_bounds = array<i64: 8, 128>}]} {
    %c0 = arith.constant 0 : index
    %c0_0 = arith.constant 0 : index
    %c0_1 = arith.constant 0 : index
    %0 = vector.load %arg1[%c0, %c0_0, %c0_1] : memref<28x8x28xf32, #tpu.memory_space<vmem>>, vector<28x8x28xf32>
    %1 = arith.truncf %0 : vector<28x8x28xf32> to vector<28x8x28xbf16>
    %2 = vector.extract_strided_slice %1 {offsets = [0, 0, 0], sizes = [24, 8, 28], strides = [1, 1, 1]} : vector<28x8x28xbf16> to vector<24x8x28xbf16>
    %3 = vector.shape_cast %2 : vector<24x8x28xbf16> to vector<192x28xbf16>
    %c0_2 = arith.constant 0 : index
    %c0_3 = arith.constant 0 : index
    %c0_4 = arith.constant 0 : index
    %c0_5 = arith.constant 0 : index
    %4 = vector.load %arg2[%c0_2, %c0_3, %c0_4, %c0_5] : memref<5x2x28x384xbf16, #tpu.memory_space<vmem>>, vector<1x1x28x384xbf16>
    %5 = vector.shape_cast %4 : vector<1x1x28x384xbf16> to vector<28x384xbf16>
    %cst = arith.constant dense<0.000000e+00> : vector<192x384xf32>
    %6 = tpu.matmul %3, %5, %cst {dimension_numbers = #tpu.dot_dimension_numbers<[1], [0], [0], [1], [0, 0, 1, 1], [], []>} : vector<192x28xbf16>, vector<28x384xbf16>, vector<192x384xf32> -> vector<192x384xf32>
    %c0_6 = arith.constant 0 : index
    %c1 = arith.constant 1 : index
    %c0_7 = arith.constant 0 : index
    %c0_8 = arith.constant 0 : index
    %7 = vector.load %arg2[%c0_6, %c1, %c0_7, %c0_8] : memref<5x2x28x384xbf16, #tpu.memory_space<vmem>>, vector<1x1x28x384xbf16>
    %8 = vector.shape_cast %7 : vector<1x1x28x384xbf16> to vector<28x384xbf16>
    %cst_9 = arith.constant dense<0.000000e+00> : vector<192x384xf32>
    %9 = tpu.matmul %3, %8, %cst_9 {dimension_numbers = #tpu.dot_dimension_numbers<[1], [0], [0], [1], [0, 0, 1, 1], [], []>} : vector<192x28xbf16>, vector<28x384xbf16>, vector<192x384xf32> -> vector<192x384xf32>
    %10 = vector.extract_strided_slice %1 {offsets = [1, 0, 0], sizes = [24, 8, 28], strides = [1, 1, 1]} : vector<28x8x28xbf16> to vector<24x8x28xbf16>
    %11 = vector.shape_cast %10 : vector<24x8x28xbf16> to vector<192x28xbf16>
    %c1_10 = arith.constant 1 : index
    %c0_11 = arith.constant 0 : index
    %c0_12 = arith.constant 0 : index
    %c0_13 = arith.constant 0 : index
    %12 = vector.load %arg2[%c1_10, %c0_11, %c0_12, %c0_13] : memref<5x2x28x384xbf16, #tpu.memory_space<vmem>>, vector<1x1x28x384xbf16>
    %13 = vector.shape_cast %12 : vector<1x1x28x384xbf16> to vector<28x384xbf16>
    %cst_14 = arith.constant dense<0.000000e+00> : vector<192x384xf32>
    %14 = tpu.matmul %11, %13, %cst_14 {dimension_numbers = #tpu.dot_dimension_numbers<[1], [0], [0], [1], [0, 0, 1, 1], [], []>} : vector<192x28xbf16>, vector<28x384xbf16>, vector<192x384xf32> -> vector<192x384xf32>
    %c1_15 = arith.constant 1 : index
    %c1_16 = arith.constant 1 : index
    %c0_17 = arith.constant 0 : index
    %c0_18 = arith.constant 0 : index
    %15 = vector.load %arg2[%c1_15, %c1_16, %c0_17, %c0_18] : memref<5x2x28x384xbf16, #tpu.memory_space<vmem>>, vector<1x1x28x384xbf16>
    %16 = vector.shape_cast %15 : vector<1x1x28x384xbf16> to vector<28x384xbf16>
    %cst_19 = arith.constant dense<0.000000e+00> : vector<192x384xf32>
    %17 = tpu.matmul %11, %16, %cst_19 {dimension_numbers = #tpu.dot_dimension_numbers<[1], [0], [0], [1], [0, 0, 1, 1], [], []>} : vector<192x28xbf16>, vector<28x384xbf16>, vector<192x384xf32> -> vector<192x384xf32>
    %18 = arith.addf %6, %14 : vector<192x384xf32>
    %19 = arith.addf %9, %17 : vector<192x384xf32>
    %20 = vector.extract_strided_slice %1 {offsets = [2, 0, 0], sizes = [24, 8, 28], strides = [1, 1, 1]} : vector<28x8x28xbf16> to vector<24x8x28xbf16>
    %21 = vector.shape_cast %20 : vector<24x8x28xbf16> to vector<192x28xbf16>
    %c2 = arith.constant 2 : index
    %c0_20 = arith.constant 0 : index
    %c0_21 = arith.constant 0 : index
    %c0_22 = arith.constant 0 : index
    %22 = vector.load %arg2[%c2, %c0_20, %c0_21, %c0_22] : memref<5x2x28x384xbf16, #tpu.memory_space<vmem>>, vector<1x1x28x384xbf16>
    %23 = vector.shape_cast %22 : vector<1x1x28x384xbf16> to vector<28x384xbf16>
    %cst_23 = arith.constant dense<0.000000e+00> : vector<192x384xf32>
    %24 = tpu.matmul %21, %23, %cst_23 {dimension_numbers = #tpu.dot_dimension_numbers<[1], [0], [0], [1], [0, 0, 1, 1], [], []>} : vector<192x28xbf16>, vector<28x384xbf16>, vector<192x384xf32> -> vector<192x384xf32>
    %c2_24 = arith.constant 2 : index
    %c1_25 = arith.constant 1 : index
    %c0_26 = arith.constant 0 : index
    %c0_27 = arith.constant 0 : index
    %25 = vector.load %arg2[%c2_24, %c1_25, %c0_26, %c0_27] : memref<5x2x28x384xbf16, #tpu.memory_space<vmem>>, vector<1x1x28x384xbf16>
    %26 = vector.shape_cast %25 : vector<1x1x28x384xbf16> to vector<28x384xbf16>
    %cst_28 = arith.constant dense<0.000000e+00> : vector<192x384xf32>
    %27 = tpu.matmul %21, %26, %cst_28 {dimension_numbers = #tpu.dot_dimension_numbers<[1], [0], [0], [1], [0, 0, 1, 1], [], []>} : vector<192x28xbf16>, vector<28x384xbf16>, vector<192x384xf32> -> vector<192x384xf32>
    %28 = arith.addf %18, %24 : vector<192x384xf32>
    %29 = arith.addf %19, %27 : vector<192x384xf32>
    %30 = vector.extract_strided_slice %1 {offsets = [3, 0, 0], sizes = [24, 8, 28], strides = [1, 1, 1]} : vector<28x8x28xbf16> to vector<24x8x28xbf16>
    %31 = vector.shape_cast %30 : vector<24x8x28xbf16> to vector<192x28xbf16>
    %c3 = arith.constant 3 : index
    %c0_29 = arith.constant 0 : index
    %c0_30 = arith.constant 0 : index
    %c0_31 = arith.constant 0 : index
    %32 = vector.load %arg2[%c3, %c0_29, %c0_30, %c0_31] : memref<5x2x28x384xbf16, #tpu.memory_space<vmem>>, vector<1x1x28x384xbf16>
    %33 = vector.shape_cast %32 : vector<1x1x28x384xbf16> to vector<28x384xbf16>
    %cst_32 = arith.constant dense<0.000000e+00> : vector<192x384xf32>
    %34 = tpu.matmul %31, %33, %cst_32 {dimension_numbers = #tpu.dot_dimension_numbers<[1], [0], [0], [1], [0, 0, 1, 1], [], []>} : vector<192x28xbf16>, vector<28x384xbf16>, vector<192x384xf32> -> vector<192x384xf32>
    %c3_33 = arith.constant 3 : index
    %c1_34 = arith.constant 1 : index
    %c0_35 = arith.constant 0 : index
    %c0_36 = arith.constant 0 : index
    %35 = vector.load %arg2[%c3_33, %c1_34, %c0_35, %c0_36] : memref<5x2x28x384xbf16, #tpu.memory_space<vmem>>, vector<1x1x28x384xbf16>
    %36 = vector.shape_cast %35 : vector<1x1x28x384xbf16> to vector<28x384xbf16>
    %cst_37 = arith.constant dense<0.000000e+00> : vector<192x384xf32>
    %37 = tpu.matmul %31, %36, %cst_37 {dimension_numbers = #tpu.dot_dimension_numbers<[1], [0], [0], [1], [0, 0, 1, 1], [], []>} : vector<192x28xbf16>, vector<28x384xbf16>, vector<192x384xf32> -> vector<192x384xf32>
    %38 = arith.addf %28, %34 : vector<192x384xf32>
    %39 = arith.addf %29, %37 : vector<192x384xf32>
    %40 = vector.extract_strided_slice %1 {offsets = [4, 0, 0], sizes = [24, 8, 28], strides = [1, 1, 1]} : vector<28x8x28xbf16> to vector<24x8x28xbf16>
    %41 = vector.shape_cast %40 : vector<24x8x28xbf16> to vector<192x28xbf16>
    %c4 = arith.constant 4 : index
    %c0_38 = arith.constant 0 : index
    %c0_39 = arith.constant 0 : index
    %c0_40 = arith.constant 0 : index
    %42 = vector.load %arg2[%c4, %c0_38, %c0_39, %c0_40] : memref<5x2x28x384xbf16, #tpu.memory_space<vmem>>, vector<1x1x28x384xbf16>
    %43 = vector.shape_cast %42 : vector<1x1x28x384xbf16> to vector<28x384xbf16>
    %cst_41 = arith.constant dense<0.000000e+00> : vector<192x384xf32>
    %44 = tpu.matmul %41, %43, %cst_41 {dimension_numbers = #tpu.dot_dimension_numbers<[1], [0], [0], [1], [0, 0, 1, 1], [], []>} : vector<192x28xbf16>, vector<28x384xbf16>, vector<192x384xf32> -> vector<192x384xf32>
    %c4_42 = arith.constant 4 : index
    %c1_43 = arith.constant 1 : index
    %c0_44 = arith.constant 0 : index
    %c0_45 = arith.constant 0 : index
    %45 = vector.load %arg2[%c4_42, %c1_43, %c0_44, %c0_45] : memref<5x2x28x384xbf16, #tpu.memory_space<vmem>>, vector<1x1x28x384xbf16>
    %46 = vector.shape_cast %45 : vector<1x1x28x384xbf16> to vector<28x384xbf16>
    %cst_46 = arith.constant dense<0.000000e+00> : vector<192x384xf32>
    %47 = tpu.matmul %41, %46, %cst_46 {dimension_numbers = #tpu.dot_dimension_numbers<[1], [0], [0], [1], [0, 0, 1, 1], [], []>} : vector<192x28xbf16>, vector<28x384xbf16>, vector<192x384xf32> -> vector<192x384xf32>
    %48 = arith.addf %38, %44 : vector<192x384xf32>
    %49 = arith.addf %39, %47 : vector<192x384xf32>
    %50 = vector.shape_cast %48 : vector<192x384xf32> to vector<12x2x8x384xf32>
    %51 = vector.shape_cast %49 : vector<192x384xf32> to vector<12x2x8x384xf32>
    %52 = vector.extract_strided_slice %50 {offsets = [0, 0, 0, 0], sizes = [12, 1, 8, 384], strides = [1, 1, 1, 1]} : vector<12x2x8x384xf32> to vector<12x1x8x384xf32>
    %53 = vector.shape_cast %52 : vector<12x1x8x384xf32> to vector<12x8x384xf32>
    %54 = vector.extract_strided_slice %50 {offsets = [0, 1, 0, 0], sizes = [12, 1, 8, 384], strides = [1, 1, 1, 1]} : vector<12x2x8x384xf32> to vector<12x1x8x384xf32>
    %55 = vector.shape_cast %54 : vector<12x1x8x384xf32> to vector<12x8x384xf32>
    %56 = arith.maximumf %53, %55 : vector<12x8x384xf32>
    %57 = vector.extract_strided_slice %51 {offsets = [0, 0, 0, 0], sizes = [12, 1, 8, 384], strides = [1, 1, 1, 1]} : vector<12x2x8x384xf32> to vector<12x1x8x384xf32>
    %58 = vector.shape_cast %57 : vector<12x1x8x384xf32> to vector<12x8x384xf32>
    %59 = vector.extract_strided_slice %51 {offsets = [0, 1, 0, 0], sizes = [12, 1, 8, 384], strides = [1, 1, 1, 1]} : vector<12x2x8x384xf32> to vector<12x1x8x384xf32>
    %60 = vector.shape_cast %59 : vector<12x1x8x384xf32> to vector<12x8x384xf32>
    %61 = arith.maximumf %58, %60 : vector<12x8x384xf32>
    %62 = arith.maximumf %56, %61 : vector<12x8x384xf32>
    %c0_47 = arith.constant 0 : index
    %c0_48 = arith.constant 0 : index
    %63 = vector.load %arg3[%c0_47, %c0_48] : memref<1x384xf32, #tpu.memory_space<vmem>>, vector<1x384xf32>
    %64 = vector.shape_cast %63 : vector<1x384xf32> to vector<1x1x384xf32>
    %65 = vector.broadcast %64 : vector<1x1x384xf32> to vector<12x8x384xf32>
    %66 = arith.addf %62, %65 : vector<12x8x384xf32>
    %cst_49 = arith.constant 0.000000e+00 : f32
    %67 = vector.broadcast %cst_49 : f32 to vector<12x8x384xf32>
    %68 = arith.maximumf %66, %67 : vector<12x8x384xf32>
    %69 = arith.truncf %68 : vector<12x8x384xf32> to vector<12x8x384xbf16>
    %70 = vector.extract_strided_slice %69 {offsets = [0, 0, 0], sizes = [8, 8, 384], strides = [1, 1, 1]} : vector<12x8x384xbf16> to vector<8x8x384xbf16>
    %71 = vector.shape_cast %70 : vector<8x8x384xbf16> to vector<64x384xbf16>
    %c0_50 = arith.constant 0 : index
    %c0_51 = arith.constant 0 : index
    %c0_52 = arith.constant 0 : index
    %c0_53 = arith.constant 0 : index
    %72 = vector.load %arg4[%c0_50, %c0_51, %c0_52, %c0_53] : memref<5x2x384x256xbf16, #tpu.memory_space<vmem>>, vector<1x1x384x256xbf16>
    %73 = vector.shape_cast %72 : vector<1x1x384x256xbf16> to vector<384x256xbf16>
    %cst_54 = arith.constant dense<0.000000e+00> : vector<64x256xf32>
    %74 = tpu.matmul %71, %73, %cst_54 {dimension_numbers = #tpu.dot_dimension_numbers<[1], [0], [0], [1], [0, 0, 1, 1], [], []>} : vector<64x384xbf16>, vector<384x256xbf16>, vector<64x256xf32> -> vector<64x256xf32>
    %c0_55 = arith.constant 0 : index
    %c1_56 = arith.constant 1 : index
    %c0_57 = arith.constant 0 : index
    %c0_58 = arith.constant 0 : index
    %75 = vector.load %arg4[%c0_55, %c1_56, %c0_57, %c0_58] : memref<5x2x384x256xbf16, #tpu.memory_space<vmem>>, vector<1x1x384x256xbf16>
    %76 = vector.shape_cast %75 : vector<1x1x384x256xbf16> to vector<384x256xbf16>
    %cst_59 = arith.constant dense<0.000000e+00> : vector<64x256xf32>
    %77 = tpu.matmul %71, %76, %cst_59 {dimension_numbers = #tpu.dot_dimension_numbers<[1], [0], [0], [1], [0, 0, 1, 1], [], []>} : vector<64x384xbf16>, vector<384x256xbf16>, vector<64x256xf32> -> vector<64x256xf32>
    %78 = vector.extract_strided_slice %69 {offsets = [1, 0, 0], sizes = [8, 8, 384], strides = [1, 1, 1]} : vector<12x8x384xbf16> to vector<8x8x384xbf16>
    %79 = vector.shape_cast %78 : vector<8x8x384xbf16> to vector<64x384xbf16>
    %c1_60 = arith.constant 1 : index
    %c0_61 = arith.constant 0 : index
    %c0_62 = arith.constant 0 : index
    %c0_63 = arith.constant 0 : index
    %80 = vector.load %arg4[%c1_60, %c0_61, %c0_62, %c0_63] : memref<5x2x384x256xbf16, #tpu.memory_space<vmem>>, vector<1x1x384x256xbf16>
    %81 = vector.shape_cast %80 : vector<1x1x384x256xbf16> to vector<384x256xbf16>
    %cst_64 = arith.constant dense<0.000000e+00> : vector<64x256xf32>
    %82 = tpu.matmul %79, %81, %cst_64 {dimension_numbers = #tpu.dot_dimension_numbers<[1], [0], [0], [1], [0, 0, 1, 1], [], []>} : vector<64x384xbf16>, vector<384x256xbf16>, vector<64x256xf32> -> vector<64x256xf32>
    %c1_65 = arith.constant 1 : index
    %c1_66 = arith.constant 1 : index
    %c0_67 = arith.constant 0 : index
    %c0_68 = arith.constant 0 : index
    %83 = vector.load %arg4[%c1_65, %c1_66, %c0_67, %c0_68] : memref<5x2x384x256xbf16, #tpu.memory_space<vmem>>, vector<1x1x384x256xbf16>
    %84 = vector.shape_cast %83 : vector<1x1x384x256xbf16> to vector<384x256xbf16>
    %cst_69 = arith.constant dense<0.000000e+00> : vector<64x256xf32>
    %85 = tpu.matmul %79, %84, %cst_69 {dimension_numbers = #tpu.dot_dimension_numbers<[1], [0], [0], [1], [0, 0, 1, 1], [], []>} : vector<64x384xbf16>, vector<384x256xbf16>, vector<64x256xf32> -> vector<64x256xf32>
    %86 = arith.addf %74, %82 : vector<64x256xf32>
    %87 = arith.addf %77, %85 : vector<64x256xf32>
    %88 = vector.extract_strided_slice %69 {offsets = [2, 0, 0], sizes = [8, 8, 384], strides = [1, 1, 1]} : vector<12x8x384xbf16> to vector<8x8x384xbf16>
    %89 = vector.shape_cast %88 : vector<8x8x384xbf16> to vector<64x384xbf16>
    %c2_70 = arith.constant 2 : index
    %c0_71 = arith.constant 0 : index
    %c0_72 = arith.constant 0 : index
    %c0_73 = arith.constant 0 : index
    %90 = vector.load %arg4[%c2_70, %c0_71, %c0_72, %c0_73] : memref<5x2x384x256xbf16, #tpu.memory_space<vmem>>, vector<1x1x384x256xbf16>
    %91 = vector.shape_cast %90 : vector<1x1x384x256xbf16> to vector<384x256xbf16>
    %cst_74 = arith.constant dense<0.000000e+00> : vector<64x256xf32>
    %92 = tpu.matmul %89, %91, %cst_74 {dimension_numbers = #tpu.dot_dimension_numbers<[1], [0], [0], [1], [0, 0, 1, 1], [], []>} : vector<64x384xbf16>, vector<384x256xbf16>, vector<64x256xf32> -> vector<64x256xf32>
    %c2_75 = arith.constant 2 : index
    %c1_76 = arith.constant 1 : index
    %c0_77 = arith.constant 0 : index
    %c0_78 = arith.constant 0 : index
    %93 = vector.load %arg4[%c2_75, %c1_76, %c0_77, %c0_78] : memref<5x2x384x256xbf16, #tpu.memory_space<vmem>>, vector<1x1x384x256xbf16>
    %94 = vector.shape_cast %93 : vector<1x1x384x256xbf16> to vector<384x256xbf16>
    %cst_79 = arith.constant dense<0.000000e+00> : vector<64x256xf32>
    %95 = tpu.matmul %89, %94, %cst_79 {dimension_numbers = #tpu.dot_dimension_numbers<[1], [0], [0], [1], [0, 0, 1, 1], [], []>} : vector<64x384xbf16>, vector<384x256xbf16>, vector<64x256xf32> -> vector<64x256xf32>
    %96 = arith.addf %86, %92 : vector<64x256xf32>
    %97 = arith.addf %87, %95 : vector<64x256xf32>
    %98 = vector.extract_strided_slice %69 {offsets = [3, 0, 0], sizes = [8, 8, 384], strides = [1, 1, 1]} : vector<12x8x384xbf16> to vector<8x8x384xbf16>
    %99 = vector.shape_cast %98 : vector<8x8x384xbf16> to vector<64x384xbf16>
    %c3_80 = arith.constant 3 : index
    %c0_81 = arith.constant 0 : index
    %c0_82 = arith.constant 0 : index
    %c0_83 = arith.constant 0 : index
    %100 = vector.load %arg4[%c3_80, %c0_81, %c0_82, %c0_83] : memref<5x2x384x256xbf16, #tpu.memory_space<vmem>>, vector<1x1x384x256xbf16>
    %101 = vector.shape_cast %100 : vector<1x1x384x256xbf16> to vector<384x256xbf16>
    %cst_84 = arith.constant dense<0.000000e+00> : vector<64x256xf32>
    %102 = tpu.matmul %99, %101, %cst_84 {dimension_numbers = #tpu.dot_dimension_numbers<[1], [0], [0], [1], [0, 0, 1, 1], [], []>} : vector<64x384xbf16>, vector<384x256xbf16>, vector<64x256xf32> -> vector<64x256xf32>
    %c3_85 = arith.constant 3 : index
    %c1_86 = arith.constant 1 : index
    %c0_87 = arith.constant 0 : index
    %c0_88 = arith.constant 0 : index
    %103 = vector.load %arg4[%c3_85, %c1_86, %c0_87, %c0_88] : memref<5x2x384x256xbf16, #tpu.memory_space<vmem>>, vector<1x1x384x256xbf16>
    %104 = vector.shape_cast %103 : vector<1x1x384x256xbf16> to vector<384x256xbf16>
    %cst_89 = arith.constant dense<0.000000e+00> : vector<64x256xf32>
    %105 = tpu.matmul %99, %104, %cst_89 {dimension_numbers = #tpu.dot_dimension_numbers<[1], [0], [0], [1], [0, 0, 1, 1], [], []>} : vector<64x384xbf16>, vector<384x256xbf16>, vector<64x256xf32> -> vector<64x256xf32>
    %106 = arith.addf %96, %102 : vector<64x256xf32>
    %107 = arith.addf %97, %105 : vector<64x256xf32>
    %108 = vector.extract_strided_slice %69 {offsets = [4, 0, 0], sizes = [8, 8, 384], strides = [1, 1, 1]} : vector<12x8x384xbf16> to vector<8x8x384xbf16>
    %109 = vector.shape_cast %108 : vector<8x8x384xbf16> to vector<64x384xbf16>
    %c4_90 = arith.constant 4 : index
    %c0_91 = arith.constant 0 : index
    %c0_92 = arith.constant 0 : index
    %c0_93 = arith.constant 0 : index
    %110 = vector.load %arg4[%c4_90, %c0_91, %c0_92, %c0_93] : memref<5x2x384x256xbf16, #tpu.memory_space<vmem>>, vector<1x1x384x256xbf16>
    %111 = vector.shape_cast %110 : vector<1x1x384x256xbf16> to vector<384x256xbf16>
    %cst_94 = arith.constant dense<0.000000e+00> : vector<64x256xf32>
    %112 = tpu.matmul %109, %111, %cst_94 {dimension_numbers = #tpu.dot_dimension_numbers<[1], [0], [0], [1], [0, 0, 1, 1], [], []>} : vector<64x384xbf16>, vector<384x256xbf16>, vector<64x256xf32> -> vector<64x256xf32>
    %c4_95 = arith.constant 4 : index
    %c1_96 = arith.constant 1 : index
    %c0_97 = arith.constant 0 : index
    %c0_98 = arith.constant 0 : index
    %113 = vector.load %arg4[%c4_95, %c1_96, %c0_97, %c0_98] : memref<5x2x384x256xbf16, #tpu.memory_space<vmem>>, vector<1x1x384x256xbf16>
    %114 = vector.shape_cast %113 : vector<1x1x384x256xbf16> to vector<384x256xbf16>
    %cst_99 = arith.constant dense<0.000000e+00> : vector<64x256xf32>
    %115 = tpu.matmul %109, %114, %cst_99 {dimension_numbers = #tpu.dot_dimension_numbers<[1], [0], [0], [1], [0, 0, 1, 1], [], []>} : vector<64x384xbf16>, vector<384x256xbf16>, vector<64x256xf32> -> vector<64x256xf32>
    %116 = arith.addf %106, %112 : vector<64x256xf32>
    %117 = arith.addf %107, %115 : vector<64x256xf32>
    %118 = vector.shape_cast %116 : vector<64x256xf32> to vector<4x2x8x256xf32>
    %119 = vector.shape_cast %117 : vector<64x256xf32> to vector<4x2x8x256xf32>
    %120 = vector.extract_strided_slice %118 {offsets = [0, 0, 0, 0], sizes = [4, 1, 8, 256], strides = [1, 1, 1, 1]} : vector<4x2x8x256xf32> to vector<4x1x8x256xf32>
    %121 = vector.shape_cast %120 : vector<4x1x8x256xf32> to vector<4x8x256xf32>
    %122 = vector.extract_strided_slice %118 {offsets = [0, 1, 0, 0], sizes = [4, 1, 8, 256], strides = [1, 1, 1, 1]} : vector<4x2x8x256xf32> to vector<4x1x8x256xf32>
    %123 = vector.shape_cast %122 : vector<4x1x8x256xf32> to vector<4x8x256xf32>
    %124 = arith.maximumf %121, %123 : vector<4x8x256xf32>
    %125 = vector.extract_strided_slice %119 {offsets = [0, 0, 0, 0], sizes = [4, 1, 8, 256], strides = [1, 1, 1, 1]} : vector<4x2x8x256xf32> to vector<4x1x8x256xf32>
    %126 = vector.shape_cast %125 : vector<4x1x8x256xf32> to vector<4x8x256xf32>
    %127 = vector.extract_strided_slice %119 {offsets = [0, 1, 0, 0], sizes = [4, 1, 8, 256], strides = [1, 1, 1, 1]} : vector<4x2x8x256xf32> to vector<4x1x8x256xf32>
    %128 = vector.shape_cast %127 : vector<4x1x8x256xf32> to vector<4x8x256xf32>
    %129 = arith.maximumf %126, %128 : vector<4x8x256xf32>
    %130 = arith.maximumf %124, %129 : vector<4x8x256xf32>
    %c0_100 = arith.constant 0 : index
    %c0_101 = arith.constant 0 : index
    %131 = vector.load %arg5[%c0_100, %c0_101] : memref<1x256xf32, #tpu.memory_space<vmem>>, vector<1x256xf32>
    %132 = vector.shape_cast %131 : vector<1x256xf32> to vector<1x1x256xf32>
    %133 = vector.broadcast %132 : vector<1x1x256xf32> to vector<4x8x256xf32>
    %134 = arith.addf %130, %133 : vector<4x8x256xf32>
    %cst_102 = arith.constant 0.000000e+00 : f32
    %135 = vector.broadcast %cst_102 : f32 to vector<4x8x256xf32>
    %136 = arith.maximumf %134, %135 : vector<4x8x256xf32>
    %137 = arith.truncf %136 : vector<4x8x256xf32> to vector<4x8x256xbf16>
    %138 = vector.extract_strided_slice %137 {offsets = [0, 0, 0], sizes = [1, 8, 256], strides = [1, 1, 1]} : vector<4x8x256xbf16> to vector<1x8x256xbf16>
    %139 = vector.shape_cast %138 : vector<1x8x256xbf16> to vector<8x256xbf16>
    %c0_103 = arith.constant 0 : index
    %c0_104 = arith.constant 0 : index
    %c0_105 = arith.constant 0 : index
    %140 = vector.load %arg6[%c0_103, %c0_104, %c0_105] : memref<4x256x512xbf16, #tpu.memory_space<vmem>>, vector<1x256x512xbf16>
    %141 = vector.shape_cast %140 : vector<1x256x512xbf16> to vector<256x512xbf16>
    %cst_106 = arith.constant dense<0.000000e+00> : vector<8x512xf32>
    %142 = tpu.matmul %139, %141, %cst_106 {dimension_numbers = #tpu.dot_dimension_numbers<[1], [0], [0], [1], [0, 0, 1, 1], [], []>} : vector<8x256xbf16>, vector<256x512xbf16>, vector<8x512xf32> -> vector<8x512xf32>
    %143 = vector.extract_strided_slice %137 {offsets = [1, 0, 0], sizes = [1, 8, 256], strides = [1, 1, 1]} : vector<4x8x256xbf16> to vector<1x8x256xbf16>
    %144 = vector.shape_cast %143 : vector<1x8x256xbf16> to vector<8x256xbf16>
    %c1_107 = arith.constant 1 : index
    %c0_108 = arith.constant 0 : index
    %c0_109 = arith.constant 0 : index
    %145 = vector.load %arg6[%c1_107, %c0_108, %c0_109] : memref<4x256x512xbf16, #tpu.memory_space<vmem>>, vector<1x256x512xbf16>
    %146 = vector.shape_cast %145 : vector<1x256x512xbf16> to vector<256x512xbf16>
    %cst_110 = arith.constant dense<0.000000e+00> : vector<8x512xf32>
    %147 = tpu.matmul %144, %146, %cst_110 {dimension_numbers = #tpu.dot_dimension_numbers<[1], [0], [0], [1], [0, 0, 1, 1], [], []>} : vector<8x256xbf16>, vector<256x512xbf16>, vector<8x512xf32> -> vector<8x512xf32>
    %148 = arith.addf %142, %147 : vector<8x512xf32>
    %149 = vector.extract_strided_slice %137 {offsets = [2, 0, 0], sizes = [1, 8, 256], strides = [1, 1, 1]} : vector<4x8x256xbf16> to vector<1x8x256xbf16>
    %150 = vector.shape_cast %149 : vector<1x8x256xbf16> to vector<8x256xbf16>
    %c2_111 = arith.constant 2 : index
    %c0_112 = arith.constant 0 : index
    %c0_113 = arith.constant 0 : index
    %151 = vector.load %arg6[%c2_111, %c0_112, %c0_113] : memref<4x256x512xbf16, #tpu.memory_space<vmem>>, vector<1x256x512xbf16>
    %152 = vector.shape_cast %151 : vector<1x256x512xbf16> to vector<256x512xbf16>
    %cst_114 = arith.constant dense<0.000000e+00> : vector<8x512xf32>
    %153 = tpu.matmul %150, %152, %cst_114 {dimension_numbers = #tpu.dot_dimension_numbers<[1], [0], [0], [1], [0, 0, 1, 1], [], []>} : vector<8x256xbf16>, vector<256x512xbf16>, vector<8x512xf32> -> vector<8x512xf32>
    %154 = arith.addf %148, %153 : vector<8x512xf32>
    %155 = vector.extract_strided_slice %137 {offsets = [3, 0, 0], sizes = [1, 8, 256], strides = [1, 1, 1]} : vector<4x8x256xbf16> to vector<1x8x256xbf16>
    %156 = vector.shape_cast %155 : vector<1x8x256xbf16> to vector<8x256xbf16>
    %c3_115 = arith.constant 3 : index
    %c0_116 = arith.constant 0 : index
    %c0_117 = arith.constant 0 : index
    %157 = vector.load %arg6[%c3_115, %c0_116, %c0_117] : memref<4x256x512xbf16, #tpu.memory_space<vmem>>, vector<1x256x512xbf16>
    %158 = vector.shape_cast %157 : vector<1x256x512xbf16> to vector<256x512xbf16>
    %cst_118 = arith.constant dense<0.000000e+00> : vector<8x512xf32>
    %159 = tpu.matmul %156, %158, %cst_118 {dimension_numbers = #tpu.dot_dimension_numbers<[1], [0], [0], [1], [0, 0, 1, 1], [], []>} : vector<8x256xbf16>, vector<256x512xbf16>, vector<8x512xf32> -> vector<8x512xf32>
    %160 = arith.addf %154, %159 : vector<8x512xf32>
    %c0_119 = arith.constant 0 : index
    %c0_120 = arith.constant 0 : index
    %161 = vector.load %arg7[%c0_119, %c0_120] : memref<1x512xf32, #tpu.memory_space<vmem>>, vector<1x512xf32>
    %162 = vector.broadcast %161 : vector<1x512xf32> to vector<8x512xf32>
    %163 = arith.addf %160, %162 : vector<8x512xf32>
    %cst_121 = arith.constant 0.000000e+00 : f32
    %164 = vector.broadcast %cst_121 : f32 to vector<8x512xf32>
    %165 = arith.maximumf %163, %164 : vector<8x512xf32>
    %c0_122 = arith.constant 0 : index
    %c0_123 = arith.constant 0 : index
    %166 = vector.load %arg10[%c0_122, %c0_123] : memref<8x512xf32, #tpu.memory_space<vmem>>, vector<8x512xf32>
    tpu.vector_store %arg10[%c0_122, %c0_123], %165 {strides = array<i32>} : memref<8x512xf32, #tpu.memory_space<vmem>>, vector<8x512xf32>,
    %167 = arith.truncf %165 : vector<8x512xf32> to vector<8x512xbf16>
    %c0_124 = arith.constant 0 : index
    %c0_125 = arith.constant 0 : index
    %168 = vector.load %arg8[%c0_124, %c0_125] : memref<512x128xbf16, #tpu.memory_space<vmem>>, vector<512x128xbf16>
    %cst_126 = arith.constant dense<0.000000e+00> : vector<8x128xf32>
    %169 = tpu.matmul %167, %168, %cst_126 {dimension_numbers = #tpu.dot_dimension_numbers<[1], [0], [0], [1], [0, 0, 1, 1], [], []>} : vector<8x512xbf16>, vector<512x128xbf16>, vector<8x128xf32> -> vector<8x128xf32>
    %c0_127 = arith.constant 0 : index
    %c0_128 = arith.constant 0 : index
    %170 = vector.load %arg9[%c0_127, %c0_128] : memref<1x128xf32, #tpu.memory_space<vmem>>, vector<1x128xf32>
    %171 = vector.broadcast %170 : vector<1x128xf32> to vector<8x128xf32>
    %172 = arith.addf %169, %171 : vector<8x128xf32>
    %c0_129 = arith.constant 0 : index
    %c0_130 = arith.constant 0 : index
    %173 = vector.load %arg11[%c0_129, %c0_130] : memref<8x128xf32, #tpu.memory_space<vmem>>, vector<8x128xf32>
    tpu.vector_store %arg11[%c0_129, %c0_130], %172 {strides = array<i32>} : memref<8x128xf32, #tpu.memory_space<vmem>>, vector<8x128xf32>,
    return
  }
  func.func @transform_0(%arg0: i32) -> (i32, i32, i32) {
    %c0_i32 = arith.constant 0 : i32
    %c0_i32_0 = arith.constant 0 : i32
    %c0_i32_1 = arith.constant 0 : i32
    return %c0_i32, %arg0, %c0_i32_0 : i32, i32, i32
  }
  func.func @transform_1(%arg0: i32) -> (i32, i32, i32, i32) {
    %c0_i32 = arith.constant 0 : i32
    %c0_i32_0 = arith.constant 0 : i32
    %c0_i32_1 = arith.constant 0 : i32
    %c0_i32_2 = arith.constant 0 : i32
    %c0_i32_3 = arith.constant 0 : i32
    return %c0_i32, %c0_i32_0, %c0_i32_1, %c0_i32_2 : i32, i32, i32, i32
  }
  func.func @transform_2(%arg0: i32) -> (i32, i32) {
    %c0_i32 = arith.constant 0 : i32
    %c0_i32_0 = arith.constant 0 : i32
    %c0_i32_1 = arith.constant 0 : i32
    return %c0_i32, %c0_i32_0 : i32, i32
  }
  func.func @transform_3(%arg0: i32) -> (i32, i32, i32, i32) {
    %c0_i32 = arith.constant 0 : i32
    %c0_i32_0 = arith.constant 0 : i32
    %c0_i32_1 = arith.constant 0 : i32
    %c0_i32_2 = arith.constant 0 : i32
    %c0_i32_3 = arith.constant 0 : i32
    return %c0_i32, %c0_i32_0, %c0_i32_1, %c0_i32_2 : i32, i32, i32, i32
  }
  func.func @transform_4(%arg0: i32) -> (i32, i32) {
    %c0_i32 = arith.constant 0 : i32
    %c0_i32_0 = arith.constant 0 : i32
    %c0_i32_1 = arith.constant 0 : i32
    return %c0_i32, %c0_i32_0 : i32, i32
  }
  func.func @transform_5(%arg0: i32) -> (i32, i32, i32) {
    %c0_i32 = arith.constant 0 : i32
    %c0_i32_0 = arith.constant 0 : i32
    %c0_i32_1 = arith.constant 0 : i32
    %c0_i32_2 = arith.constant 0 : i32
    return %c0_i32, %c0_i32_0, %c0_i32_1 : i32, i32, i32
  }
  func.func @transform_6(%arg0: i32) -> (i32, i32) {
    %c0_i32 = arith.constant 0 : i32
    %c0_i32_0 = arith.constant 0 : i32
    %c0_i32_1 = arith.constant 0 : i32
    return %c0_i32, %c0_i32_0 : i32, i32
  }
  func.func @transform_7(%arg0: i32) -> (i32, i32) {
    %c0_i32 = arith.constant 0 : i32
    %c0_i32_0 = arith.constant 0 : i32
    %c0_i32_1 = arith.constant 0 : i32
    return %c0_i32, %c0_i32_0 : i32, i32
  }
  func.func @transform_8(%arg0: i32) -> (i32, i32) {
    %c0_i32 = arith.constant 0 : i32
    %c0_i32_0 = arith.constant 0 : i32
    %c0_i32_1 = arith.constant 0 : i32
    return %c0_i32, %c0_i32_0 : i32, i32
  }
  func.func @transform_9(%arg0: i32) -> (i32, i32) {
    %c0_i32 = arith.constant 0 : i32
    %c0_i32_0 = arith.constant 0 : i32
    return %arg0, %c0_i32 : i32, i32
  }
  func.func @transform_10(%arg0: i32) -> (i32, i32) {
    %c0_i32 = arith.constant 0 : i32
    %c0_i32_0 = arith.constant 0 : i32
    return %arg0, %c0_i32 : i32, i32
  }
}

</mosaic_0001>

<bundles_post_ra>
// kernel: fedavg_cnn_forward.1
= control target key start
LH: loop header
LB: loop body
LE: loop exit
PB: predicated region body
PF: predicated region fallthrough
CT: control target
= control target key end

     0   :  { %16 = vsyncpa [#allocation3], 0  ;;  %s17072_s0 = inlined_call_operand.vmem [shape: f32[28,8,28], index: 0, kind: input, shape index: {}]   ;;  %s17073_s1 = inlined_call_operand.vmem [shape: bf16[5,2,28,384], index: 1, kind: input, shape index: {}]   ;;  %s17074_s2 = inlined_call_operand.hbm [shape: f32[1,384], index: 2, kind: input, shape index: {}]   ;;  %s17075_s3 = inlined_call_operand.hbm [shape: bf16[5,2,384,256], index: 3, kind: input, shape index: {}]   ;;  %s17076_s4 = inlined_call_operand.hbm [shape: f32[1,256], index: 4, kind: input, shape index: {}]   ;;  %s17077_s5 = inlined_call_operand.hbm [shape: bf16[4,256,512], index: 5, kind: input, shape index: {}]   ;;  %s17078_s6 = inlined_call_operand.hbm [shape: f32[1,512], index: 6, kind: input, shape index: {}]   ;;  %s17079_s7 = inlined_call_operand.hbm [shape: bf16[512,128], index: 7, kind: input, shape index: {}]   ;;  %s17080_s8 = inlined_call_operand.hbm [shape: f32[1,128], index: 8, kind: input, shape index: {}]   ;;  %s17081_s9 = inlined_call_operand.vmem [shape: f32[8,512], index: 9, kind: output, shape index: {0}]   ;;  %s17082_s10 = inlined_call_operand.vmem [shape: f32[8,128], index: 10, kind: output, shape index: {1}]  }
   0x1   :  { %17 = vsyncpa [#allocation5], 0 }
   0x2   :  { %18 = vsyncpa [#allocation8], 0 }
   0x3   :  { %19 = vsyncpa [#allocation11], 0  ;;  %s15217_s13 = smov [#allocation4]   ;;  %s15055_s17 = scalar_lea.hbm %s17075_s3, 61440 }
   0x4   :  { %s39_s14 = sshll.u32 %s15217_s13, 4  ;;  %p15056_p0 = scmp.ne.s32.totalorder %s17075_s3, %s15055_s17  ;;  %s40_s14 = int_to_ptr.vmem [resolvable:$true] %s39_s14 }
   0x5   :  { %p15059_p1 = scmp.lt.u32.totalorder %s15055_s17, %s17075_s3 }
   0x7   :  { %p15061_p2 = pnand %p15059_p1, %p15056_p0 }
   0x9   :  { %15064 = shalt.err (!%p15061_p2)
}
   0xa   :  { %s15065_s22 = scalar_lea.vmem %s40_s14, 61440  ;;  %p15070_p4 = scmp.lt.s32.totalorder %s40_s14, %s40_s14 }
   0xb   :  { %p15066_p3 = scmp.ne.s32.totalorder %s40_s14, %s15065_s22  ;;  %p15071_p5 = scmp.lt.s32.totalorder %s15065_s22, %s15065_s22 }
   0xd   :  { %p15072_p6 = por %p15071_p5, %p15070_p4 }
   0xf   :  { %p15073_p7 = pnand %p15072_p6, %p15066_p3 }
  0x11   :  { %15076 = shalt.err (!%p15073_p7)
}
  0x12   :  { %s15218_s23 = smov 128   ;;  %s15219_s24 = smov 8  }
  0x13   :  { %45 = dma.hbm_to_vmem [thread:$0]  %s17075_s3, 61440, %s40_s14, [#allocation5], %s15218_s23, %s15218_s23, %s15219_s24  }
  0x14   :  { %s15220_s27 = smov [#allocation7]   ;;  %s15077_s11 = scalar_lea.hbm %s17077_s5, 32768 }
  0x15   :  { %s61_s28 = sshll.u32 %s15220_s27, 4  ;;  %p15078_p8 = scmp.ne.s32.totalorder %s17077_s5, %s15077_s11  ;;  %s62_s28 = int_to_ptr.vmem [resolvable:$true] %s61_s28 }
  0x16   :  { %p15081_p9 = scmp.lt.u32.totalorder %s15077_s11, %s17077_s5 }
  0x18   :  { %p15083_p10 = pnand %p15081_p9, %p15078_p8 }
  0x1a   :  { %15086 = shalt.err (!%p15083_p10)
}
  0x1b   :  { %s15087_s17 = scalar_lea.vmem %s62_s28, 32768  ;;  %p15092_p12 = scmp.lt.s32.totalorder %s62_s28, %s62_s28 }
  0x1c   :  { %p15088_p11 = scmp.ne.s32.totalorder %s62_s28, %s15087_s17  ;;  %p15093_p13 = scmp.lt.s32.totalorder %s15087_s17, %s15087_s17 }
  0x1e   :  { %p15094_p0 = por %p15093_p13, %p15092_p12 }
  0x20   :  { %p15095_p1 = pnand %p15094_p0, %p15088_p11 }
  0x22   :  { %15098 = shalt.err (!%p15095_p1)
}
  0x23   :  { %s15221_s3 = smov 256   ;;  %s15222_s14 = smov 16  }
  0x24   :  { %67 = dma.hbm_to_vmem [thread:$0]  %s17077_s5, 32768, %s62_s28, [#allocation8], %s15221_s3, %s15221_s3, %s15222_s14  }
  0x25   :  { %s15223_s20 = smov [#allocation10]   ;;  %s15099_s24 = scalar_lea.hbm %s17079_s7, 4096 }
  0x26   :  { %s83_s21 = sshll.u32 %s15223_s20, 4  ;;  %p15100_p2 = scmp.ne.s32.totalorder %s17079_s7, %s15099_s24  ;;  %s84_s21 = int_to_ptr.vmem [resolvable:$true] %s83_s21 }
  0x27   :  { %p15103_p3 = scmp.lt.u32.totalorder %s15099_s24, %s17079_s7 }
  0x29   :  { %p15105_p4 = pnand %p15103_p3, %p15100_p2 }
  0x2b   :  { %15108 = shalt.err (!%p15105_p4)
}
  0x2c   :  { %s15109_s30 = scalar_lea.vmem %s84_s21, 4096  ;;  %p15114_p6 = scmp.lt.s32.totalorder %s84_s21, %s84_s21 }
  0x2d   :  { %p15110_p5 = scmp.ne.s32.totalorder %s84_s21, %s15109_s30  ;;  %p15115_p7 = scmp.lt.s32.totalorder %s15109_s30, %s15109_s30 }
  0x2f   :  { %p15116_p8 = por %p15115_p7, %p15114_p6 }
  0x31   :  { %p15117_p9 = pnand %p15116_p8, %p15110_p5 }
  0x33   :  { %15120 = shalt.err (!%p15117_p9)
}
  0x34   :  { %s15224_s5 = smov 64   ;;  %s15225_s28 = smov 4  }
  0x35   :  { %89 = dma.hbm_to_vmem [thread:$0]  %s17079_s7, 4096, %s84_s21, [#allocation11], %s15224_s5, %s15224_s5, %s15225_s28  }
  0x36   :  { %s15226_s13 = smov [#allocation2]   ;;  %s15227_s16 = smov [#allocation6]  }
  0x37   :  { %s30_s15 = sshll.u32 %s15226_s13, 4  ;;  %s52_s17 = sshll.u32 %s15227_s16, 4  ;;  %s31_s15 = int_to_ptr.vmem [resolvable:$true] %s30_s15  ;;  %s53_s17 = int_to_ptr.vmem [resolvable:$true] %s52_s17 }
  0x38   :  { %s15121_s18 = scalar_lea.hbm %s17074_s2, 48 }
  0x39   :  { %p15122_p10 = scmp.ne.s32.totalorder %s17074_s2, %s15121_s18  ;;  %p15125_p11 = scmp.lt.u32.totalorder %s15121_s18, %s17074_s2 }
  0x3b   :  { %p15127_p12 = pnand %p15125_p11, %p15122_p10 }
  0x3d   :  { %15130 = shalt.err (!%p15127_p12)
}
  0x3e   :  { %s15131_s7 = scalar_lea.vmem %s31_s15, 48  ;;  %s15135_s21 = scalar_lea.vmem %s31_s15, 64 }
  0x3f   :  { %p15132_p13 = scmp.ne.s32.totalorder %s31_s15, %s15131_s7  ;;  %p15136_p0 = scmp.lt.s32.totalorder %s31_s15, %s31_s15 }
  0x40   :  { %p15137_p1 = scmp.lt.s32.totalorder %s15135_s21, %s15131_s7 }
  0x42   :  { %p15138_p2 = por %p15137_p1, %p15136_p0 }
  0x44   :  { %p15139_p3 = pnand %p15138_p2, %p15132_p13 }
  0x46   :  { %15142 = shalt.err (!%p15139_p3)
}
  0x47   :  { %33 = dma.hbm_to_vmem [thread:$0]  %s17074_s2, 48, %s31_s15, [#allocation3]  }
  0x48   :  { %s15143_s29 = scalar_lea.hbm %s17076_s4, 32 }
  0x49   :  { %p15144_p4 = scmp.ne.s32.totalorder %s17076_s4, %s15143_s29  ;;  %p15147_p5 = scmp.lt.u32.totalorder %s15143_s29, %s17076_s4 }
  0x4b   :  { %p15149_p6 = pnand %p15147_p5, %p15144_p4 }
  0x4d   :  { %15152 = shalt.err (!%p15149_p6)
}
  0x4e   :  { %s15153_s12 = scalar_lea.vmem %s53_s17, 32  ;;  %p15158_p8 = scmp.lt.s32.totalorder %s53_s17, %s53_s17 }
  0x4f   :  { %p15154_p7 = scmp.ne.s32.totalorder %s53_s17, %s15153_s12  ;;  %p15159_p9 = scmp.lt.s32.totalorder %s15153_s12, %s15153_s12 }
  0x51   :  { %p15160_p10 = por %p15159_p9, %p15158_p8 }
  0x53   :  { %p15161_p11 = pnand %p15160_p10, %p15154_p7 }
  0x55   :  { %15164 = shalt.err (!%p15161_p11)
}
  0x56   :  { %55 = dma.hbm_to_vmem [thread:$0]  %s17076_s4, 32, %s53_s17, [#allocation5]  }
  0x57   :  { %s15228_s15 = smov [#allocation9]   ;;  %s15229_s3 = smov [#allocation12]  }
  0x58   :  { %s74_s16 = sshll.u32 %s15228_s15, 4  ;;  %s96_s14 = sshll.u32 %s15229_s3, 4  ;;  %s75_s16 = int_to_ptr.vmem [resolvable:$true] %s74_s16  ;;  %s97_s14 = int_to_ptr.vmem [resolvable:$true] %s96_s14 }
  0x59   :  { %s15165_s20 = scalar_lea.hbm %s17078_s6, 64 }
  0x5a   :  { %p15166_p12 = scmp.ne.s32.totalorder %s17078_s6, %s15165_s20  ;;  %p15169_p13 = scmp.lt.u32.totalorder %s15165_s20, %s17078_s6 }
  0x5c   :  { %p15171_p0 = pnand %p15169_p13, %p15166_p12 }
  0x5e   :  { %15174 = shalt.err (!%p15171_p0)
}
  0x5f   :  { %s15175_s4 = scalar_lea.vmem %s75_s16, 64  ;;  %p15180_p2 = scmp.lt.s32.totalorder %s75_s16, %s75_s16 }
  0x60   :  { %p15176_p1 = scmp.ne.s32.totalorder %s75_s16, %s15175_s4  ;;  %p15181_p3 = scmp.lt.s32.totalorder %s15175_s4, %s15175_s4 }
  0x62   :  { %p15182_p4 = por %p15181_p3, %p15180_p2 }
  0x64   :  { %p15183_p5 = pnand %p15182_p4, %p15176_p1 }
  0x66   :  { %15186 = shalt.err (!%p15183_p5)
}
  0x67   :  { %77 = dma.hbm_to_vmem [thread:$0]  %s17078_s6, 64, %s75_s16, [#allocation8]  }
  0x68   :  { %s15187_s27 = scalar_lea.hbm %s17080_s8, 16 }
  0x69   :  { %p15188_p6 = scmp.ne.s32.totalorder %s17080_s8, %s15187_s27  ;;  %p15191_p7 = scmp.lt.u32.totalorder %s15187_s27, %s17080_s8 }
  0x6b   :  { %p15193_p8 = pnand %p15191_p7, %p15188_p6 }
  0x6d   :  { %15196 = shalt.err (!%p15193_p8)
}
  0x6e   :  { %s15197_s11 = scalar_lea.vmem %s97_s14, 16  ;;  %s15201_s12 = scalar_lea.vmem %s97_s14, 32 }
  0x6f   :  { %p15198_p9 = scmp.ne.s32.totalorder %s97_s14, %s15197_s11  ;;  %p15202_p10 = scmp.lt.s32.totalorder %s97_s14, %s97_s14 }
  0x70   :  { %p15203_p11 = scmp.lt.s32.totalorder %s15201_s12, %s15197_s11 }
  0x72   :  { %p15204_p12 = por %p15203_p11, %p15202_p10 }
  0x74   :  { %p15205_p13 = pnand %p15204_p12, %p15198_p9 }
  0x76   :  { %15208 = shalt.err (!%p15205_p13)
}
  0x77   :  { %99 = dma.hbm_to_vmem [thread:$0]  %s17080_s8, 16, %s97_s14, [#allocation11]  }
  0x78   :  { %15209 = dma.done.wait [#allocation3], 48  }
  0x79   :  { %15210 = vsyncadd [#allocation3], 4294967248 }
  0x7a   :  { %15211 = dma.done.wait [#allocation5], 61472  }
  0x7b   :  { %15212 = vsyncadd [#allocation5], 4294905824 }
  0x7c   :  { %15213 = dma.done.wait [#allocation8], 32832  }
  0x7d   :  { %15214 = vsyncadd [#allocation8], 4294934464 }
  0x7e   :  { %15215 = dma.done.wait [#allocation11], 4112  }
  0x7f   :  { %15216 = vsyncadd [#allocation11], 4294963184  ;;  %v17083_v0 = vmov 0   ;;  %v13837_v1 = vld [vmem:[%s17073_s1 + $0x64] ss:$12 sps:$4 sm:$0xff]   ;;  %vm330_vm0 = vcmask 1045504  }
  0x80   :  { %372 = vmatprep.mubr.bf16.mxu0 %v17083_v0  ;;  %482 = vmatprep.mubr.bf16.mxu1 %v17083_v0  ;;  %v13839_v2 = vld [vmem:[%s17073_s1 + $0x60] ss:$12 sps:$4 sm:$0xff]   ;;  %v13840_v3 = vld [vmem:[%s17073_s1 + $0x7c] ss:$12 sps:$4 sm:$0x3f]   ;;  %v124_v6 = vld [vmem:[%s17072_s0 + $0x10] sm:$0xff] }
  0x81   :  { %340 = vmatprep.subr.bf16.mxu0 %v13837_v1  ;;  %12945 = vmatprep.subr.bf16.mxu1 %v13837_v1  ;;  %v13842_v4 = vld [vmem:[%s17073_s1 + $0x78] ss:$12 sps:$4 sm:$0x3f]   ;;  %v123_v5 = vld [vmem:[%s17072_s0 + $0x8] sm:$0xff]  ;;  %v128_v11 = vld [vmem:[%s17072_s0 + $0x30] sm:$0xff]  ;;  %vm293_vm1 = vcmask 228352  }
  0x82   :  { %341 = vmatpush1.bf16.msra.mxu0 %v13839_v2  ;;  %12947 = vmatpush1.bf16.msra.mxu1 %v13839_v2  ;;  %v332_v7 = vsel %vm330_vm0, %v13842_v4, 0  ;;  %v125_v8 = vld [vmem:[%s17072_s0 + $0x18] sm:$0xff]  ;;  %v126_v9 = vld [vmem:[%s17072_s0 + $0x20] sm:$0xff]  ;;  %v127_v10 = vld [vmem:[%s17072_s0 + $0x28] sm:$0xff]  ;;  %v15434_v19 = vpack.c.bf16 %v124_v6, %v123_v5 }
  0x83   :  { %11244 = vmatprep.subr.msk.bf16.mxu0 %vm330_vm0, %v13840_v3  ;;  %12946 = vmatprep.subr.msk.bf16.mxu1 %vm330_vm0, %v13840_v3  ;;  %v15408_v12 = vld [vmem:[%s17072_s0 + $0x38] sm:$0xff]  ;;  %v15413_v13 = vld [vmem:[%s17072_s0 + $0x40] sm:$0xff]  ;;  %v15415_v14 = vpack.c.bf16 %v125_v8, %v124_v6  ;;  %v15417_v15 = vpack.c.bf16 %v127_v10, %v126_v9  ;;  %v15422_v16 = vld [vmem:[%s17072_s0 + $0x48] sm:$0xff]  ;;  %v15501_v38 = vpack.c.bf16 %v126_v9, %v125_v8 }
  0x84   :  { %v15427_v17 = vld [vmem:[%s17072_s0 + $0x50] sm:$0xff]  ;;  %v15432_v18 = vld [vmem:[%s17072_s0 + $0x58] sm:$0xff]  ;;  %v15437_v20 = vpack.c.bf16 %v15408_v12, %v128_v11  ;;  %v15442_v21 = vld [vmem:[%s17072_s0 + $0x60] sm:$0xff]  ;;  %v15451_v23 = vpack.c.bf16 %v15422_v16, %v15413_v13  ;;  %v15520_v45 = vpack.c.bf16 %v128_v11, %v127_v10  ;;  %v15562_v58 = vpack.c.bf16 %v15413_v13, %v15408_v12 }
  0x85   :  { %v15447_v22 = vld [vmem:[%s17072_s0 + $0x68] sm:$0xff]  ;;  %v15455_v24 = vpack.c.bf16 %v15432_v18, %v15427_v17  ;;  %v145_v25 = vld [vmem:[%s17072_s0 + $0xb8] sm:$0xff]  ;;  %v146_v27 = vld [vmem:[%s17072_s0 + $0xc0] sm:$0xff]  ;;  %v15566_v59 = vpack.c.bf16 %v15427_v17, %v15422_v16  ;;  %v15577_v60 = vpack.c.bf16 %v15442_v21, %v15432_v18 }
  0x86   :  { %343 = vmatpush1.bf16.msra.mxu0 %v332_v7  ;;  %12948 = vmatpush1.bf16.msra.mxu1 %v332_v7  ;;  %v15462_v26 = vpack.c.bf16 %v15447_v22, %v15442_v21  ;;  %v15467_v28 = vpack.c.bf16 %v146_v27, %v145_v25  ;;  %v13843_v29 = vld [vmem:[%s17073_s1 + $0x68] ss:$12 sps:$4 sm:$0xff]   ;;  %v13844_v30 = vld [vmem:[%s17073_s1 + $0x80] ss:$12 sps:$4 sm:$0x3f]   ;;  %v137_v33 = vld [vmem:[%s17072_s0 + $0x78] sm:$0xff] }
  0x87   :  { %12665 = vmatprep.subr.bf16.mxu1 %v13843_v29  ;;  %v13847_v31 = vld [vmem:[%s17073_s1 + $0x94] ss:$12 sps:$4 sm:$0xff]   ;;  %v338_v34 = vsel %vm330_vm0, %v13844_v30, 0  ;;  %v139_v37 = vld [vmem:[%s17072_s0 + $0x88] sm:$0xff]  ;;  %v13845_v39 = vld [vmem:[%s17073_s1 + $0x90] ss:$12 sps:$4 sm:$0xff]  }
  0x88   :  { %v136_v32 = vld [vmem:[%s17072_s0 + $0x70] sm:$0xff]  ;;  %v138_v35 = vld [vmem:[%s17072_s0 + $0x80] sm:$0xff]  ;;  %v13848_v42 = vld [vmem:[%s17073_s1 + $0xac] ss:$12 sps:$4 sm:$0x3f]  }
  0x89   :  { %11245 = vmatmul.mubr.msk.bf16.vlgmr.msra.gmra.mrb[0].mxu0 %vm293_vm1, %v15434_v19  ;;  %11256 = vmatmul.mubr.msk.bf16.vlgmr.msra.gmra.mrb[0].mxu1 %vm293_vm1, %v15467_v28  ;;  %v15496_v36 = vpack.c.bf16 %v137_v33, %v136_v32  ;;  %v140_v40 = vld [vmem:[%s17072_s0 + $0x90] sm:$0xff]  ;;  %v15509_v41 = vpack.c.bf16 %v139_v37, %v138_v35  ;;  %v13851_v43 = vld [vmem:[%s17073_s1 + $0x98] ss:$12 sps:$4 sm:$0xff]   ;;  %v143_v49 = vld [vmem:[%s17072_s0 + $0xa8] sm:$0xff]  ;;  %v15580_v61 = vpack.c.bf16 %v136_v32, %v15447_v22 }
  0x8a   :  { %12666 = vmatpush3.bf16.msra.mxu1 %v13843_v29  ;;  %382 = vmatprep.mubr.bf16.mxu0 %v17083_v0  ;;  %v141_v44 = vld [vmem:[%s17072_s0 + $0x98] sm:$0xff]  ;;  %v13850_v46 = vld [vmem:[%s17073_s1 + $0xa8] ss:$12 sps:$4 sm:$0x3f]   ;;  %v142_v47 = vld [vmem:[%s17072_s0 + $0xa0] sm:$0xff]  ;;  %v15589_v62 = vpack.c.bf16 %v138_v35, %v137_v33  ;;  %v15591_v63 = vpack.c.bf16 %v140_v40, %v139_v37 }
  0x8b   :  { %13813 = vmatprep.subr.msk.bf16.mxu1 %vm330_vm0, %v13844_v30  ;;  %12669 = vmatprep.mubr.msk.bf16.mxu1 %vm293_vm1, %v15434_v19  ;;  %v15528_v48 = vpack.c.bf16 %v141_v44, %v140_v40  ;;  %v144_v50 = vld [vmem:[%s17072_s0 + $0xb0] sm:$0xff]  ;;  %v15536_v51 = vpack.c.bf16 %v143_v49, %v142_v47  ;;  %v661_v54 = vsel %vm330_vm0, %v13850_v46, 0  ;;  %v15600_v1 = vpack.c.bf16 %v142_v47, %v141_v44  ;;  %v13854_v3 = vld [vmem:[%s17073_s1 + $0x20] ss:$12 sps:$4 sm:$0x3f]  }
  0x8c   :  { %12693 = vmatprep.subr.bf16.mxu0 %v13851_v43  ;;  %v15540_v52 = vpack.c.bf16 %v145_v25, %v144_v50  ;;  %v13853_v53 = vld [vmem:[%s17073_s1 + $0xb0] ss:$12 sps:$4 sm:$0x3f]   ;;  %v13852_v55 = vld [vmem:[%s17073_s1 + $0x8] ss:$12 sps:$4 sm:$0xff]   ;;  %v15602_v2 = vpack.c.bf16 %v144_v50, %v143_v49  ;;  %v1037_v5 = vsel %vm330_vm0, %v13854_v3, 0 }
  0x8d   :  { %12694 = vmatpush3.bf16.msra.mxu0 %v13851_v43  ;;  %v667_v56 = vsel %vm330_vm0, %v13853_v53, 0  ;;  %v13857_v57 = vld [vmem:[%s17073_s1 + $0x4] ss:$12 sps:$4 sm:$0xff]   ;;  %v13863_v4 = vld [vmem:[%s17073_s1 + $0x34] ss:$12 sps:$4 sm:$0xff]   ;;  %v15053_v12 = vld [vmem:[%s17072_s0 + $0x8] sm:$0xff] }
  0x8e   :  { %12668 = vmatpush3.bf16.msra.mxu1 %v338_v34  ;;  %13814 = vmatprep.subr.msk.bf16.mxu0 %vm330_vm0, %v13853_v53  ;;  %v13855_v6 = vld [vmem:[%s17073_s1] ss:$12 sps:$4 sm:$0xff]   ;;  %v13858_v7 = vld [vmem:[%s17073_s1 + $0x1c] ss:$12 sps:$4 sm:$0x3f]  }
  0x8f   :  { %669 = vmatprep.subr.bf16.mxu1 %v13847_v31  ;;  %v13860_v8 = vld [vmem:[%s17073_s1 + $0x18] ss:$12 sps:$4 sm:$0x3f]   ;;  %v13869_v16 = vld [vmem:[%s17073_s1 + $0x50] ss:$12 sps:$4 sm:$0x3f]  }
  0x90   :  { %v13864_v9 = vld [vmem:[%s17073_s1 + $0x38] ss:$12 sps:$4 sm:$0xff]   ;;  %v1031_v10 = vsel %vm330_vm0, %v13860_v8, 0  ;;  %v1357_v18 = vsel %vm330_vm0, %v13869_v16, 0  ;;  %v13868_v25 = vld [vmem:[%s17073_s1 + $0xc8] ss:$12 sps:$4 sm:$0xff]  }
  0x91   :  { %11246 = vmatmul.mubr.msk.bf16.gmra.mrb[4].mxu0 %vm293_vm1, %v15501_v38  ;;  %12670 = vmatmul.mubr.msk.bf16.vlgmr.msra.gmra.mrb[4].mxu1 %vm293_vm1, %v15501_v38  ;;  %v122_v11 = vld [vmem:[%s17072_s0] sm:$0xff]  ;;  %v13865_v21 = vld [vmem:[%s17073_s1 + $0x4c] ss:$12 sps:$4 sm:$0x3f]   ;;  %v13877_v53 = vld [vmem:[%s17073_s1 + $0xf0] ss:$12 sps:$4 sm:$0xff]  }
  0x92   :  { %392 = vmatprep.mubr.bf16.mxu0 %v17083_v0  ;;  %670 = vmatpush1.bf16.msra.mxu1 %v13845_v39  ;;  %v15711_v13 = vpack.c.bf16 %v15053_v12, %v122_v11  ;;  %v13873_v17 = vld [vmem:[%s17073_s1 + $0xc4] ss:$12 sps:$4 sm:$0xff]   ;;  %v13867_v22 = vld [vmem:[%s17073_s1 + $0x48] ss:$12 sps:$4 sm:$0x3f]  }
  0x93   :  { %12673 = vmatprep.mubr.msk.bf16.mxu1 %vm293_vm1, %v15520_v45  ;;  %11283 = vmatprep.subr.msk.bf16.mxu1 %vm330_vm0, %v13848_v42  ;;  %v1351_v27 = vsel %vm330_vm0, %v13867_v22, 0  ;;  %v13870_v29 = vld [vmem:[%s17073_s1 + $0xe0] ss:$12 sps:$4 sm:$0x3f]   ;;  %v13880_v42 = vld [vmem:[%s17073_s1 + $0xf8] ss:$12 sps:$4 sm:$0xff]  }
  0x94   :  { %12696 = vmatpush3.bf16.msra.mxu0 %v667_v56  ;;  %v13879_v30 = vld [vmem:[%s17073_s1 + $0xf4] ss:$12 sps:$4 sm:$0xff]   ;;  %v1692_v31 = vsel %vm330_vm0, %v13870_v29, 0  ;;  %v13874_v39 = vld [vmem:[%s17073_s1 + $0xdc] ss:$12 sps:$4 sm:$0x3f]  }
  0x95   :  { %1039 = vmatprep.subr.bf16.mxu0 %v13857_v57  ;;  %v13871_v37 = vld [vmem:[%s17073_s1 + $0xc0] ss:$12 sps:$4 sm:$0xff]   ;;  %v13876_v40 = vld [vmem:[%s17073_s1 + $0xd8] ss:$12 sps:$4 sm:$0x3f]   ;;  %v16133_v22 = vld [vmem:[%s17072_s0 + $0xd0] sm:$0xff] }
  0x96   :  { %672 = vmatpush1.bf16.msra.mxu1 %v661_v54  ;;  %v1686_v43 = vsel %vm330_vm0, %v13876_v40, 0  ;;  %v13885_v44 = vld [vmem:[%s17073_s1 + $0x110] ss:$12 sps:$4 sm:$0x3f]   ;;  %v15958_v56 = vld [vmem:[%s17072_s0 + $0xc8] sm:$0xff]  ;;  %v15054_v57 = vld [vmem:[%s17072_s0 + $0xc0] sm:$0xff] }
  0x97   :  { %12721 = vmatprep.subr.bf16.mxu1 %v13852_v55  ;;  %v13889_v46 = vld [vmem:[%s17073_s1 + $0x124] ss:$12 sps:$4 sm:$0xff]   ;;  %v2021_v47 = vsel %vm330_vm0, %v13885_v44, 0  ;;  %v13883_v49 = vld [vmem:[%s17073_s1 + $0x108] ss:$12 sps:$4 sm:$0x3f]  }
  0x98   :  { %v2015_v50 = vsel %vm330_vm0, %v13883_v49, 0  ;;  %v13881_v54 = vld [vmem:[%s17073_s1 + $0x10c] ss:$12 sps:$4 sm:$0x3f]  }
  0x99   :  { %11247 = vmatmul.mubr.msk.bf16.gmra.mrb[8].mxu0 %vm293_vm1, %v15520_v45  ;;  %12674 = vmatmul.mubr.msk.bf16.gmra.mrb[8].mxu1 %vm293_vm1, %v15562_v58  ;;  %v13890_v8 = vld [vmem:[%s17073_s1 + $0x13c] ss:$12 sps:$4 sm:$0x3f]   ;;  %v13912_v40 = vld [vmem:[%s17073_s1 + $0x1b8] ss:$12 sps:$4 sm:$0xff]  }
  0x9a   :  { %402 = vmatprep.mubr.bf16.mxu0 %v17083_v0  ;;  %12677 = vmatprep.mubr.msk.bf16.mxu1 %vm293_vm1, %v15566_v59  ;;  %v13901_v11 = vld [vmem:[%s17073_s1 + $0x170] ss:$12 sps:$4 sm:$0x3f]   ;;  %v13940_v49 = vld [vmem:[#allocation4 + $0x4b4] ss:$8 sps:$4 sm:$0xff]  }
  0x9b   :  { %v2829_v12 = vsel %vm330_vm0, %v13901_v11, 0 }
  0xa1   :  { %11248 = vmatmul.mubr.msk.bf16.gmra.mrb[12].mxu0 %vm293_vm1, %v15562_v58  ;;  %12678 = vmatmul.mubr.msk.bf16.gmra.mrb[12].mxu1 %vm293_vm1, %v15577_v60 }
  0xa2   :  { %412 = vmatprep.mubr.bf16.mxu0 %v17083_v0  ;;  %12681 = vmatprep.mubr.msk.bf16.mxu1 %vm293_vm1, %v15580_v61 }
  0xa9   :  { %11249 = vmatmul.mubr.msk.bf16.gmra.mrb[16].mxu0 %vm293_vm1, %v15566_v59  ;;  %12682 = vmatmul.mubr.msk.bf16.gmra.mrb[16].mxu1 %vm293_vm1, %v15589_v62 }
  0xaa   :  { %422 = vmatprep.mubr.bf16.mxu0 %v17083_v0  ;;  %12685 = vmatprep.mubr.msk.bf16.mxu1 %vm293_vm1, %v15591_v63 }
  0xb1   :  { %11250 = vmatmul.mubr.msk.bf16.gmra.mrb[20].mxu0 %vm293_vm1, %v15577_v60  ;;  %12686 = vmatmul.mubr.msk.bf16.gmra.mrb[20].mxu1 %vm293_vm1, %v15600_v1 }
  0xb2   :  { %432 = vmatprep.mubr.bf16.mxu0 %v17083_v0  ;;  %12689 = vmatprep.mubr.msk.bf16.mxu1 %vm293_vm1, %v15602_v2 }
  0xb9   :  { %11251 = vmatmul.mubr.msk.bf16.gmra.mrb[24].mxu0 %vm293_vm1, %v15580_v61  ;;  %12690 = vmatmul.mubr.msk.bf16.gmra.mrb[24].mxu1 %vm293_vm1, %v15467_v28 }
  0xba   :  { %442 = vmatprep.mubr.bf16.mxu0 %v17083_v0  ;;  %701 = vmatprep.mubr.bf16.mxu1 %v17083_v0 }
  0xc1   :  { %11252 = vmatmul.mubr.msk.bf16.gmra.mrb[28].mxu0 %vm293_vm1, %v15589_v62  ;;  %11284 = vmatmul.mubr.msk.bf16.vlgmr.msra.gmra.mrb[28].mxu1 %vm293_vm1, %v15434_v19 }
  0xc2   :  { %452 = vmatprep.mubr.bf16.mxu0 %v17083_v0  ;;  %12722 = vmatpush3.bf16.msra.mxu1 %v13852_v55  ;;  %v13884_v55 = vld [vmem:[%s17073_s1 + $0x128] ss:$12 sps:$4 sm:$0xff]  }
  0xc3   :  { %711 = vmatprep.mubr.bf16.mxu1 %v17083_v0  ;;  %13815 = vmatprep.subr.msk.bf16.mxu1 %vm330_vm0, %v13854_v3  ;;  %v15964_v3 = vpack.c.bf16 %v15958_v56, %v15054_v57  ;;  %v13952_v57 = vld [vmem:[#allocation4 + $0x4d4] ss:$8 sps:$4 sm:$0xff]  }
  0xc6   :  { %12724 = vmatpush3.bf16.msra.mxu1 %v1037_v5 }
  0xc7   :  { %1359 = vmatprep.subr.bf16.mxu1 %v13863_v4  ;;  %v13886_v4 = vld [vmem:[%s17073_s1 + $0x140] ss:$12 sps:$4 sm:$0x3f]  }
  0xc8   :  { %v2500_v5 = vsel %vm330_vm0, %v13886_v4, 0 }
  0xc9   :  { %11253 = vmatmul.mubr.msk.bf16.gmra.mrb[32].mxu0 %vm293_vm1, %v15591_v63  ;;  %11285 = vmatmul.mubr.msk.bf16.gmra.mrb[32].mxu1 %vm293_vm1, %v15501_v38 }
  0xca   :  { %462 = vmatprep.mubr.bf16.mxu0 %v17083_v0  ;;  %721 = vmatprep.mubr.bf16.mxu1 %v17083_v0 }
  0xd1   :  { %11254 = vmatmul.mubr.msk.bf16.gmra.mrb[36].mxu0 %vm293_vm1, %v15600_v1  ;;  %11286 = vmatmul.mubr.msk.bf16.gmra.mrb[36].mxu1 %vm293_vm1, %v15520_v45 }
  0xd2   :  { %472 = vmatprep.mubr.bf16.mxu0 %v17083_v0  ;;  %731 = vmatprep.mubr.bf16.mxu1 %v17083_v0 }
  0xd9   :  { %11255 = vmatmul.mubr.msk.bf16.gmra.mrb[40].mxu0 %vm293_vm1, %v15602_v2  ;;  %11287 = vmatmul.mubr.msk.bf16.gmra.mrb[40].mxu1 %vm293_vm1, %v15562_v58 }
  0xda   :  { %12697 = vmatprep.mubr.msk.bf16.mxu0 %vm293_vm1, %v15434_v19  ;;  %741 = vmatprep.mubr.bf16.mxu1 %v17083_v0  ;;  %v13861_v19 = vld [vmem:[%s17073_s1 + $0x30] ss:$12 sps:$4 sm:$0xff]  }
  0xe1   :  { %12698 = vmatmul.mubr.msk.bf16.vlgmr.msra.gmra.mrb[44].mxu0 %vm293_vm1, %v15501_v38  ;;  %11288 = vmatmul.mubr.msk.bf16.gmra.mrb[44].mxu1 %vm293_vm1, %v15566_v59 }
  0xe2   :  { %12701 = vmatprep.mubr.msk.bf16.mxu0 %vm293_vm1, %v15520_v45  ;;  %751 = vmatprep.mubr.bf16.mxu1 %v17083_v0 }
  0xe3   :  { %1040 = vmatpush1.bf16.msra.mxu0 %v13855_v6  ;;  %v13895_v6 = vld [vmem:[%s17073_s1 + $0x154] ss:$12 sps:$4 sm:$0xff]  }
  0xe4   :  { %11326 = vmatprep.subr.msk.bf16.mxu0 %vm330_vm0, %v13858_v7  ;;  %v13887_v7 = vld [vmem:[%s17073_s1 + $0x120] ss:$12 sps:$4 sm:$0xff]  }
  0xe7   :  { %1042 = vmatpush1.bf16.msra.mxu0 %v1031_v10  ;;  %v13896_v10 = vld [vmem:[%s17073_s1 + $0x158] ss:$12 sps:$4 sm:$0xff]  }
  0xe8   :  { %12749 = vmatprep.subr.bf16.mxu0 %v13864_v9 }
  0xe9   :  { %12702 = vmatmul.mubr.msk.bf16.gmra.mrb[48].mxu0 %vm293_vm1, %v15562_v58  ;;  %11289 = vmatmul.mubr.msk.bf16.gmra.mrb[48].mxu1 %vm293_vm1, %v15577_v60 }
  0xea   :  { %12705 = vmatprep.mubr.msk.bf16.mxu0 %vm293_vm1, %v15566_v59  ;;  %761 = vmatprep.mubr.bf16.mxu1 %v17083_v0 }
  0xf1   :  { %12706 = vmatmul.mubr.msk.bf16.gmra.mrb[52].mxu0 %vm293_vm1, %v15577_v60  ;;  %11290 = vmatmul.mubr.msk.bf16.gmra.mrb[52].mxu1 %vm293_vm1, %v15580_v61 }
  0xf2   :  { %12709 = vmatprep.mubr.msk.bf16.mxu0 %vm293_vm1, %v15580_v61  ;;  %771 = vmatprep.mubr.bf16.mxu1 %v17083_v0 }
  0xf9   :  { %12710 = vmatmul.mubr.msk.bf16.gmra.mrb[56].mxu0 %vm293_vm1, %v15589_v62  ;;  %11291 = vmatmul.mubr.msk.bf16.gmra.mrb[56].mxu1 %vm293_vm1, %v15589_v62 }
  0xfa   :  { %12713 = vmatprep.mubr.msk.bf16.mxu0 %vm293_vm1, %v15591_v63  ;;  %781 = vmatprep.mubr.bf16.mxu1 %v17083_v0 }
 0x101   :  { %12714 = vmatmul.mubr.msk.bf16.gmra.mrb[60].mxu0 %vm293_vm1, %v15600_v1  ;;  %11292 = vmatmul.mubr.msk.bf16.gmra.mrb[60].mxu1 %vm293_vm1, %v15591_v63 }
 0x102   :  { %12717 = vmatprep.mubr.msk.bf16.mxu0 %vm293_vm1, %v15602_v2  ;;  %791 = vmatprep.mubr.bf16.mxu1 %v17083_v0 }
 0x109   :  { %12718 = vmatmul.mubr.msk.bf16.gmra.mrb[64].mxu0 %vm293_vm1, %v15467_v28  ;;  %11293 = vmatmul.mubr.msk.bf16.gmra.mrb[64].mxu1 %vm293_vm1, %v15600_v1 }
 0x10a   :  { %1071 = vmatprep.mubr.bf16.mxu0 %v17083_v0  ;;  %801 = vmatprep.mubr.bf16.mxu1 %v17083_v0 }
 0x111   :  { %11327 = vmatmul.mubr.msk.bf16.vlgmr.msra.gmra.mrb[0].mxu0 %vm293_vm1, %v15711_v13  ;;  %11294 = vmatmul.mubr.msk.bf16.gmra.mrb[68].mxu1 %vm293_vm1, %v15602_v2 }
 0x112   :  { %1081 = vmatprep.mubr.bf16.mxu0 %v17083_v0  ;;  %811 = vmatprep.mubr.bf16.mxu1 %v17083_v0 }
 0x113   :  { %12750 = vmatpush3.bf16.msra.mxu0 %v13864_v9  ;;  %v13892_v9 = vld [vmem:[%s17073_s1 + $0x138] ss:$12 sps:$4 sm:$0x3f]  }
 0x114   :  { %13816 = vmatprep.subr.msk.bf16.mxu0 %vm330_vm0, %v13869_v16  ;;  %v13893_v16 = vld [vmem:[%s17073_s1 + $0x150] ss:$12 sps:$4 sm:$0xff]  }
 0x117   :  { %12752 = vmatpush3.bf16.msra.mxu0 %v1357_v18  ;;  %v13899_v18 = vld [vmem:[%s17073_s1 + $0x168] ss:$12 sps:$4 sm:$0x3f]  }
 0x118   :  { %1694 = vmatprep.subr.bf16.mxu0 %v13873_v17  ;;  %v13897_v17 = vld [vmem:[%s17073_s1 + $0x16c] ss:$12 sps:$4 sm:$0x3f]  }
 0x119   :  { %11328 = vmatmul.mubr.msk.bf16.gmra.mrb[4].mxu0 %vm293_vm1, %v15415_v14  ;;  %11295 = vmatmul.mubr.msk.bf16.gmra.mrb[72].mxu1 %vm293_vm1, %v15467_v28 }
 0x11a   :  { %1091 = vmatprep.mubr.bf16.mxu0 %v17083_v0  ;;  %12725 = vmatprep.mubr.msk.bf16.mxu1 %vm293_vm1, %v15711_v13 }
 0x121   :  { %11329 = vmatmul.mubr.msk.bf16.gmra.mrb[8].mxu0 %vm293_vm1, %v15417_v15  ;;  %12726 = vmatmul.mubr.msk.bf16.vlgmr.msra.gmra.mrb[4].mxu1 %vm293_vm1, %v15415_v14 }
 0x122   :  { %1101 = vmatprep.mubr.bf16.mxu0 %v17083_v0  ;;  %1360 = vmatpush1.bf16.msra.mxu1 %v13861_v19  ;;  %v2823_v19 = vsel %vm330_vm0, %v13899_v18, 0  ;;  %v13976_v18 = vld [vmem:[#allocation4 + $0x514] ss:$8 sps:$4 sm:$0xff]  }
 0x123   :  { %12729 = vmatprep.mubr.msk.bf16.mxu1 %vm293_vm1, %v15417_v15  ;;  %11357 = vmatprep.subr.msk.bf16.mxu1 %vm330_vm0, %v13865_v21  ;;  %v13900_v21 = vld [vmem:[%s17073_s1 + $0x188] ss:$12 sps:$4 sm:$0xff]  }
 0x126   :  { %1362 = vmatpush1.bf16.msra.mxu1 %v1351_v27  ;;  %v13902_v27 = vld [vmem:[%s17073_s1 + $0x1a0] ss:$12 sps:$4 sm:$0x3f]  }
 0x127   :  { %12777 = vmatprep.subr.bf16.mxu1 %v13868_v25 }
 0x129   :  { %11330 = vmatmul.mubr.msk.bf16.gmra.mrb[12].mxu0 %vm293_vm1, %v15437_v20  ;;  %12730 = vmatmul.mubr.msk.bf16.gmra.mrb[8].mxu1 %vm293_vm1, %v15437_v20 }
 0x12a   :  { %1111 = vmatprep.mubr.bf16.mxu0 %v17083_v0  ;;  %12733 = vmatprep.mubr.msk.bf16.mxu1 %vm293_vm1, %v15451_v23 }
 0x131   :  { %11331 = vmatmul.mubr.msk.bf16.gmra.mrb[16].mxu0 %vm293_vm1, %v15451_v23  ;;  %12734 = vmatmul.mubr.msk.bf16.gmra.mrb[12].mxu1 %vm293_vm1, %v15455_v24 }
 0x132   :  { %1121 = vmatprep.mubr.bf16.mxu0 %v17083_v0  ;;  %12737 = vmatprep.mubr.msk.bf16.mxu1 %vm293_vm1, %v15462_v26 }
 0x139   :  { %11332 = vmatmul.mubr.msk.bf16.gmra.mrb[20].mxu0 %vm293_vm1, %v15455_v24  ;;  %12738 = vmatmul.mubr.msk.bf16.gmra.mrb[16].mxu1 %vm293_vm1, %v15496_v36 }
 0x13a   :  { %1131 = vmatprep.mubr.bf16.mxu0 %v17083_v0  ;;  %12741 = vmatprep.mubr.msk.bf16.mxu1 %vm293_vm1, %v15509_v41 }
 0x141   :  { %11333 = vmatmul.mubr.msk.bf16.gmra.mrb[24].mxu0 %vm293_vm1, %v15462_v26  ;;  %12742 = vmatmul.mubr.msk.bf16.gmra.mrb[20].mxu1 %vm293_vm1, %v15528_v48 }
 0x142   :  { %1141 = vmatprep.mubr.bf16.mxu0 %v17083_v0  ;;  %12745 = vmatprep.mubr.msk.bf16.mxu1 %vm293_vm1, %v15536_v51 }
 0x149   :  { %11334 = vmatmul.mubr.msk.bf16.gmra.mrb[28].mxu0 %vm293_vm1, %v15496_v36  ;;  %12746 = vmatmul.mubr.msk.bf16.gmra.mrb[24].mxu1 %vm293_vm1, %v15540_v52 }
 0x14a   :  { %1151 = vmatprep.mubr.bf16.mxu0 %v17083_v0  ;;  %1391 = vmatprep.mubr.bf16.mxu1 %v17083_v0 }
 0x151   :  { %11335 = vmatmul.mubr.msk.bf16.gmra.mrb[32].mxu0 %vm293_vm1, %v15509_v41  ;;  %11358 = vmatmul.mubr.msk.bf16.vlgmr.msra.gmra.mrb[28].mxu1 %vm293_vm1, %v15711_v13 }
 0x152   :  { %1161 = vmatprep.mubr.bf16.mxu0 %v17083_v0  ;;  %12778 = vmatpush3.bf16.msra.mxu1 %v13868_v25  ;;  %v16137_v25 = vpack.c.bf16 %v16133_v22, %v15958_v56  ;;  %v13949_v56 = vld [vmem:[#allocation4 + $0x354] ss:$8 sps:$4 sm:$0xff]  }
 0x153   :  { %1401 = vmatprep.mubr.bf16.mxu1 %v17083_v0  ;;  %13817 = vmatprep.subr.msk.bf16.mxu1 %vm330_vm0, %v13870_v29  ;;  %v3308_v29 = vsel %vm330_vm0, %v13902_v27, 0 }
 0x156   :  { %12780 = vmatpush3.bf16.msra.mxu1 %v1692_v31  ;;  %v13903_v31 = vld [vmem:[%s17073_s1 + $0x180] ss:$12 sps:$4 sm:$0xff]  }
 0x157   :  { %2023 = vmatprep.subr.bf16.mxu1 %v13879_v30  ;;  %v13911_v30 = vld [vmem:[%s17073_s1 + $0x1b4] ss:$12 sps:$4 sm:$0xff]  }
 0x159   :  { %11336 = vmatmul.mubr.msk.bf16.gmra.mrb[36].mxu0 %vm293_vm1, %v15528_v48  ;;  %11359 = vmatmul.mubr.msk.bf16.gmra.mrb[32].mxu1 %vm293_vm1, %v15415_v14 }
 0x15a   :  { %1171 = vmatprep.mubr.bf16.mxu0 %v17083_v0  ;;  %1411 = vmatprep.mubr.bf16.mxu1 %v17083_v0 }
 0x15c   :  { %v15809_v32 = vpop.f32.mrb[0].mxu1 }
 0x15d   :  { %v15811_v33 = vpop.f32.mrb[1].mxu1 }
 0x15e   :  { %v15813_v34 = vpop.f32.mrb[2].mxu1 }
 0x15f   :  { %v15815_v35 = vpop.f32.mrb[3].mxu1 }
 0x161   :  { %11337 = vmatmul.mubr.msk.bf16.gmra.mrb[40].mxu0 %vm293_vm1, %v15536_v51  ;;  %11360 = vmatmul.mubr.msk.bf16.gmra.mrb[36].mxu1 %vm293_vm1, %v15417_v15 }
 0x162   :  { %1181 = vmatprep.mubr.bf16.mxu0 %v17083_v0  ;;  %1421 = vmatprep.mubr.bf16.mxu1 %v17083_v0 }
 0x169   :  { %11338 = vmatmul.mubr.msk.bf16.gmra.mrb[68].mxu0 %vm293_vm1, %v15540_v52  ;;  %11361 = vmatmul.mubr.msk.bf16.gmra.mrb[40].mxu1 %vm293_vm1, %v15437_v20 }
 0x16a   :  { %12753 = vmatprep.mubr.msk.bf16.mxu0 %vm293_vm1, %v15711_v13  ;;  %1431 = vmatprep.mubr.bf16.mxu1 %v17083_v0  ;;  %v13905_v13 = vld [vmem:[%s17073_s1 + $0x184] ss:$12 sps:$4 sm:$0xff]  }
 0x171   :  { %12754 = vmatmul.mubr.msk.bf16.vlgmr.msra.gmra.mrb[44].mxu0 %vm293_vm1, %v15415_v14  ;;  %11362 = vmatmul.mubr.msk.bf16.gmra.mrb[44].mxu1 %vm293_vm1, %v15451_v23 }
 0x172   :  { %12757 = vmatprep.mubr.msk.bf16.mxu0 %vm293_vm1, %v15417_v15  ;;  %1441 = vmatprep.mubr.bf16.mxu1 %v17083_v0 }
 0x173   :  { %1695 = vmatpush1.bf16.msra.mxu0 %v13871_v37  ;;  %v13906_v37 = vld [vmem:[%s17073_s1 + $0x19c] ss:$12 sps:$4 sm:$0x3f]  }
 0x174   :  { %11397 = vmatprep.subr.msk.bf16.mxu0 %vm330_vm0, %v13874_v39  ;;  %v13908_v39 = vld [vmem:[%s17073_s1 + $0x198] ss:$12 sps:$4 sm:$0x3f]  }
 0x177   :  { %1697 = vmatpush1.bf16.msra.mxu0 %v1686_v43  ;;  %v13928_v43 = vld [vmem:[#allocation4 + $0x324] ss:$8 sps:$4 sm:$0xff]  }
 0x178   :  { %12805 = vmatprep.subr.bf16.mxu0 %v13880_v42 }
 0x179   :  { %12758 = vmatmul.mubr.msk.bf16.gmra.mrb[48].mxu0 %vm293_vm1, %v15437_v20  ;;  %11363 = vmatmul.mubr.msk.bf16.gmra.mrb[48].mxu1 %vm293_vm1, %v15455_v24 }
 0x17a   :  { %12761 = vmatprep.mubr.msk.bf16.mxu0 %vm293_vm1, %v15451_v23  ;;  %1451 = vmatprep.mubr.bf16.mxu1 %v17083_v0 }
 0x181   :  { %12762 = vmatmul.mubr.msk.bf16.gmra.mrb[52].mxu0 %vm293_vm1, %v15455_v24  ;;  %11364 = vmatmul.mubr.msk.bf16.gmra.mrb[52].mxu1 %vm293_vm1, %v15462_v26 }
 0x182   :  { %12765 = vmatprep.mubr.msk.bf16.mxu0 %vm293_vm1, %v15462_v26  ;;  %1461 = vmatprep.mubr.bf16.mxu1 %v17083_v0 }
 0x189   :  { %12766 = vmatmul.mubr.msk.bf16.gmra.mrb[56].mxu0 %vm293_vm1, %v15496_v36  ;;  %11365 = vmatmul.mubr.msk.bf16.gmra.mrb[56].mxu1 %vm293_vm1, %v15496_v36 }
 0x18a   :  { %12769 = vmatprep.mubr.msk.bf16.mxu0 %vm293_vm1, %v15509_v41  ;;  %1471 = vmatprep.mubr.bf16.mxu1 %v17083_v0 }
 0x191   :  { %12770 = vmatmul.mubr.msk.bf16.gmra.mrb[60].mxu0 %vm293_vm1, %v15528_v48  ;;  %11366 = vmatmul.mubr.msk.bf16.gmra.mrb[60].mxu1 %vm293_vm1, %v15509_v41 }
 0x192   :  { %12773 = vmatprep.mubr.msk.bf16.mxu0 %vm293_vm1, %v15536_v51  ;;  %1481 = vmatprep.mubr.bf16.mxu1 %v17083_v0 }
 0x199   :  { %12774 = vmatmul.mubr.msk.bf16.gmra.mrb[64].mxu0 %vm293_vm1, %v15540_v52  ;;  %11367 = vmatmul.mubr.msk.bf16.gmra.mrb[64].mxu1 %vm293_vm1, %v15528_v48 }
 0x19a   :  { %1726 = vmatprep.mubr.bf16.mxu0 %v17083_v0  ;;  %1491 = vmatprep.mubr.bf16.mxu1 %v17083_v0 }
 0x1a1   :  { %11398 = vmatmul.mubr.msk.bf16.vlgmr.msra.gmra.mrb[0].mxu0 %vm293_vm1, %v15415_v14  ;;  %11368 = vmatmul.mubr.msk.bf16.gmra.mrb[68].mxu1 %vm293_vm1, %v15536_v51 }
 0x1a2   :  { %1736 = vmatprep.mubr.bf16.mxu0 %v17083_v0  ;;  %1501 = vmatprep.mubr.bf16.mxu1 %v17083_v0 }
 0x1a3   :  { %12806 = vmatpush3.bf16.msra.mxu0 %v13880_v42  ;;  %v13929_v42 = vld [vmem:[#allocation4 + $0x490] ss:$8 sps:$4 sm:$0xff]  }
 0x1a4   :  { %13818 = vmatprep.subr.msk.bf16.mxu0 %vm330_vm0, %v13885_v44  ;;  %v13932_v44 = vld [vmem:[#allocation4 + $0x4a0] ss:$8 sps:$4 sm:$0xff]  }
 0x1a7   :  { %12808 = vmatpush3.bf16.msra.mxu0 %v2021_v47  ;;  %v13937_v47 = vld [vmem:[#allocation4 + $0x334] ss:$8 sps:$4 sm:$0xff]  }
 0x1a8   :  { %2502 = vmatprep.subr.bf16.mxu0 %v13889_v46  ;;  %v13935_v46 = vld [vmem:[#allocation4 + $0x330] ss:$8 sps:$4 sm:$0xff]  }
 0x1a9   :  { %11399 = vmatmul.mubr.msk.bf16.gmra.mrb[4].mxu0 %vm293_vm1, %v15417_v15  ;;  %11369 = vmatmul.mubr.msk.bf16.gmra.mrb[72].mxu1 %vm293_vm1, %v15540_v52 }
 0x1aa   :  { %1746 = vmatprep.mubr.bf16.mxu0 %v17083_v0  ;;  %12781 = vmatprep.mubr.msk.bf16.mxu1 %vm293_vm1, %v15415_v14 }
 0x1b1   :  { %11400 = vmatmul.mubr.msk.bf16.gmra.mrb[8].mxu0 %vm293_vm1, %v15437_v20  ;;  %12782 = vmatmul.mubr.msk.bf16.vlgmr.msra.gmra.mrb[4].mxu1 %vm293_vm1, %v15417_v15 }
 0x1b2   :  { %1756 = vmatprep.mubr.bf16.mxu0 %v17083_v0  ;;  %2024 = vmatpush1.bf16.msra.mxu1 %v13877_v53  ;;  %v13943_v53 = vld [vmem:[#allocation4 + $0x344] ss:$8 sps:$4 sm:$0xff]  }
 0x1b3   :  { %12785 = vmatprep.mubr.msk.bf16.mxu1 %vm293_vm1, %v15437_v20  ;;  %11436 = vmatprep.subr.msk.bf16.mxu1 %vm330_vm0, %v13881_v54  ;;  %v13946_v54 = vld [vmem:[#allocation4 + $0x4c4] ss:$8 sps:$4 sm:$0xff]  }
 0x1b6   :  { %2026 = vmatpush1.bf16.msra.mxu1 %v2015_v50  ;;  %v13938_v50 = vld [vmem:[#allocation4 + $0x4b0] ss:$8 sps:$4 sm:$0xff]  }
 0x1b7   :  { %12833 = vmatprep.subr.bf16.mxu1 %v13884_v55 }
 0x1b9   :  { %11401 = vmatmul.mubr.msk.bf16.gmra.mrb[12].mxu0 %vm293_vm1, %v15451_v23  ;;  %12786 = vmatmul.mubr.msk.bf16.gmra.mrb[8].mxu1 %vm293_vm1, %v15451_v23 }
 0x1ba   :  { %1766 = vmatprep.mubr.bf16.mxu0 %v17083_v0  ;;  %12789 = vmatprep.mubr.msk.bf16.mxu1 %vm293_vm1, %v15455_v24 }
 0x1c1   :  { %11402 = vmatmul.mubr.msk.bf16.gmra.mrb[16].mxu0 %vm293_vm1, %v15455_v24  ;;  %12790 = vmatmul.mubr.msk.bf16.gmra.mrb[12].mxu1 %vm293_vm1, %v15462_v26 }
 0x1c2   :  { %1776 = vmatprep.mubr.bf16.mxu0 %v17083_v0  ;;  %12793 = vmatprep.mubr.msk.bf16.mxu1 %vm293_vm1, %v15496_v36 }
 0x1c9   :  { %11403 = vmatmul.mubr.msk.bf16.gmra.mrb[20].mxu0 %vm293_vm1, %v15462_v26  ;;  %12794 = vmatmul.mubr.msk.bf16.gmra.mrb[16].mxu1 %vm293_vm1, %v15509_v41 }
 0x1ca   :  { %1786 = vmatprep.mubr.bf16.mxu0 %v17083_v0  ;;  %12797 = vmatprep.mubr.msk.bf16.mxu1 %vm293_vm1, %v15528_v48 }
 0x1d1   :  { %11404 = vmatmul.mubr.msk.bf16.gmra.mrb[24].mxu0 %vm293_vm1, %v15496_v36  ;;  %12798 = vmatmul.mubr.msk.bf16.gmra.mrb[20].mxu1 %vm293_vm1, %v15536_v51 }
 0x1d2   :  { %1796 = vmatprep.mubr.bf16.mxu0 %v17083_v0  ;;  %12801 = vmatprep.mubr.msk.bf16.mxu1 %vm293_vm1, %v15540_v52 }
 0x1d9   :  { %11405 = vmatmul.mubr.msk.bf16.gmra.mrb[28].mxu0 %vm293_vm1, %v15509_v41  ;;  %12802 = vmatmul.mubr.msk.bf16.gmra.mrb[24].mxu1 %vm293_vm1, %v15964_v3 }
 0x1da   :  { %1806 = vmatprep.mubr.bf16.mxu0 %v17083_v0  ;;  %2055 = vmatprep.mubr.bf16.mxu1 %v17083_v0 }
 0x1e1   :  { %11406 = vmatmul.mubr.msk.bf16.gmra.mrb[32].mxu0 %vm293_vm1, %v15528_v48  ;;  %11437 = vmatmul.mubr.msk.bf16.vlgmr.msra.gmra.mrb[28].mxu1 %vm293_vm1, %v15415_v14 }
 0x1e2   :  { %1816 = vmatprep.mubr.bf16.mxu0 %v17083_v0  ;;  %12834 = vmatpush3.bf16.msra.mxu1 %v13884_v55  ;;  %v13944_v55 = vld [vmem:[#allocation4 + $0x4c0] ss:$8 sps:$4 sm:$0xff]  }
 0x1e3   :  { %2065 = vmatprep.mubr.bf16.mxu1 %v17083_v0  ;;  %13819 = vmatprep.subr.msk.bf16.mxu1 %vm330_vm0, %v13886_v4  ;;  %v13947_v4 = vld [vmem:[#allocation4 + $0x350] ss:$8 sps:$4 sm:$0xff]  }
 0x1e6   :  { %12836 = vmatpush3.bf16.msra.mxu1 %v2500_v5  ;;  %v13950_v5 = vld [vmem:[#allocation4 + $0x4d0] ss:$8 sps:$4 sm:$0xff]  }
 0x1e7   :  { %2831 = vmatprep.subr.bf16.mxu1 %v13895_v6  ;;  %v13958_v6 = vld [vmem:[#allocation4 + $0x4e4] ss:$8 sps:$4 sm:$0xff]  }
 0x1e9   :  { %11407 = vmatmul.mubr.msk.bf16.gmra.mrb[36].mxu0 %vm293_vm1, %v15536_v51  ;;  %11438 = vmatmul.mubr.msk.bf16.gmra.mrb[32].mxu1 %vm293_vm1, %v15417_v15 }
 0x1ea   :  { %1826 = vmatprep.mubr.bf16.mxu0 %v17083_v0  ;;  %2075 = vmatprep.mubr.bf16.mxu1 %v17083_v0 }
 0x1f1   :  { %11408 = vmatmul.mubr.msk.bf16.gmra.mrb[40].mxu0 %vm293_vm1, %v15540_v52  ;;  %11439 = vmatmul.mubr.msk.bf16.gmra.mrb[36].mxu1 %vm293_vm1, %v15437_v20 }
 0x1f2   :  { %1836 = vmatprep.mubr.bf16.mxu0 %v17083_v0  ;;  %2085 = vmatprep.mubr.bf16.mxu1 %v17083_v0 }
 0x1f9   :  { %11409 = vmatmul.mubr.msk.bf16.gmra.mrb[68].mxu0 %vm293_vm1, %v15964_v3  ;;  %11440 = vmatmul.mubr.msk.bf16.gmra.mrb[40].mxu1 %vm293_vm1, %v15451_v23 }
 0x1fa   :  { %12809 = vmatprep.mubr.msk.bf16.mxu0 %vm293_vm1, %v15415_v14  ;;  %2095 = vmatprep.mubr.bf16.mxu1 %v17083_v0  ;;  %v2494_v14 = vsel %vm330_vm0, %v13892_v9, 0  ;;  %v13961_v9 = vld [vmem:[#allocation4 + $0x374] ss:$8 sps:$4 sm:$0xff]  }
 0x201   :  { %12810 = vmatmul.mubr.msk.bf16.vlgmr.msra.gmra.mrb[44].mxu0 %vm293_vm1, %v15417_v15  ;;  %11441 = vmatmul.mubr.msk.bf16.gmra.mrb[44].mxu1 %vm293_vm1, %v15455_v24 }
 0x202   :  { %12813 = vmatprep.mubr.msk.bf16.mxu0 %vm293_vm1, %v15437_v20  ;;  %2105 = vmatprep.mubr.bf16.mxu1 %v17083_v0 }
 0x203   :  { %2503 = vmatpush1.bf16.msra.mxu0 %v13887_v7  ;;  %v13953_v7 = vld [vmem:[#allocation4 + $0x360] ss:$8 sps:$4 sm:$0xff]  }
 0x204   :  { %11476 = vmatprep.subr.msk.bf16.mxu0 %vm330_vm0, %v13890_v8  ;;  %v13956_v8 = vld [vmem:[#allocation4 + $0x4e0] ss:$8 sps:$4 sm:$0xff]  }
 0x207   :  { %2505 = vmatpush1.bf16.msra.mxu0 %v2494_v14  ;;  %v13964_v14 = vld [vmem:[#allocation4 + $0x4f4] ss:$8 sps:$4 sm:$0xff]  }
 0x208   :  { %12861 = vmatprep.subr.bf16.mxu0 %v13896_v10 }
 0x209   :  { %12814 = vmatmul.mubr.msk.bf16.gmra.mrb[48].mxu0 %vm293_vm1, %v15451_v23  ;;  %11442 = vmatmul.mubr.msk.bf16.gmra.mrb[48].mxu1 %vm293_vm1, %v15462_v26 }
 0x20a   :  { %12817 = vmatprep.mubr.msk.bf16.mxu0 %vm293_vm1, %v15455_v24  ;;  %2115 = vmatprep.mubr.bf16.mxu1 %v17083_v0 }
 0x211   :  { %12818 = vmatmul.mubr.msk.bf16.gmra.mrb[52].mxu0 %vm293_vm1, %v15462_v26  ;;  %11443 = vmatmul.mubr.msk.bf16.gmra.mrb[52].mxu1 %vm293_vm1, %v15496_v36 }
 0x212   :  { %12821 = vmatprep.mubr.msk.bf16.mxu0 %vm293_vm1, %v15496_v36  ;;  %2125 = vmatprep.mubr.bf16.mxu1 %v17083_v0 }
 0x219   :  { %12822 = vmatmul.mubr.msk.bf16.gmra.mrb[56].mxu0 %vm293_vm1, %v15509_v41  ;;  %11444 = vmatmul.mubr.msk.bf16.gmra.mrb[56].mxu1 %vm293_vm1, %v15509_v41 }
 0x21a   :  { %12825 = vmatprep.mubr.msk.bf16.mxu0 %vm293_vm1, %v15528_v48  ;;  %2135 = vmatprep.mubr.bf16.mxu1 %v17083_v0 }
 0x221   :  { %12826 = vmatmul.mubr.msk.bf16.gmra.mrb[60].mxu0 %vm293_vm1, %v15536_v51  ;;  %11445 = vmatmul.mubr.msk.bf16.gmra.mrb[60].mxu1 %vm293_vm1, %v15528_v48 }
 0x222   :  { %12829 = vmatprep.mubr.msk.bf16.mxu0 %vm293_vm1, %v15540_v52  ;;  %2145 = vmatprep.mubr.bf16.mxu1 %v17083_v0 }
 0x229   :  { %12830 = vmatmul.mubr.msk.bf16.gmra.mrb[64].mxu0 %vm293_vm1, %v15964_v3  ;;  %11446 = vmatmul.mubr.msk.bf16.gmra.mrb[64].mxu1 %vm293_vm1, %v15536_v51 }
 0x22a   :  { %2534 = vmatprep.mubr.bf16.mxu0 %v17083_v0  ;;  %2155 = vmatprep.mubr.bf16.mxu1 %v17083_v0 }
 0x231   :  { %11477 = vmatmul.mubr.msk.bf16.vlgmr.msra.gmra.mrb[0].mxu0 %vm293_vm1, %v15501_v38  ;;  %11447 = vmatmul.mubr.msk.bf16.gmra.mrb[68].mxu1 %vm293_vm1, %v15540_v52 }
 0x232   :  { %2544 = vmatprep.mubr.bf16.mxu0 %v17083_v0  ;;  %2165 = vmatprep.mubr.bf16.mxu1 %v17083_v0 }
 0x233   :  { %12862 = vmatpush3.bf16.msra.mxu0 %v13896_v10  ;;  %v13959_v10 = vld [vmem:[#allocation4 + $0x370] ss:$8 sps:$4 sm:$0xff]  }
 0x234   :  { %13820 = vmatprep.subr.msk.bf16.mxu0 %vm330_vm0, %v13901_v11  ;;  %v13962_v11 = vld [vmem:[#allocation4 + $0x4f0] ss:$8 sps:$4 sm:$0xff]  }
 0x237   :  { %12864 = vmatpush3.bf16.msra.mxu0 %v2829_v12  ;;  %v13967_v12 = vld [vmem:[#allocation4 + $0x384] ss:$8 sps:$4 sm:$0xff]  }
 0x238   :  { %3310 = vmatprep.subr.bf16.mxu0 %v13905_v13  ;;  %v13965_v13 = vld [vmem:[#allocation4 + $0x380] ss:$8 sps:$4 sm:$0xff]  }
 0x239   :  { %11478 = vmatmul.mubr.msk.bf16.gmra.mrb[4].mxu0 %vm293_vm1, %v15520_v45  ;;  %11448 = vmatmul.mubr.msk.bf16.gmra.mrb[72].mxu1 %vm293_vm1, %v15964_v3 }
 0x23a   :  { %2554 = vmatprep.mubr.bf16.mxu0 %v17083_v0  ;;  %12837 = vmatprep.mubr.msk.bf16.mxu1 %vm293_vm1, %v15501_v38 }
 0x241   :  { %11479 = vmatmul.mubr.msk.bf16.gmra.mrb[8].mxu0 %vm293_vm1, %v15562_v58  ;;  %12838 = vmatmul.mubr.msk.bf16.vlgmr.msra.gmra.mrb[4].mxu1 %vm293_vm1, %v15520_v45 }
 0x242   :  { %2564 = vmatprep.mubr.bf16.mxu0 %v17083_v0  ;;  %2832 = vmatpush1.bf16.msra.mxu1 %v13893_v16  ;;  %v13968_v16 = vld [vmem:[#allocation4 + $0x500] ss:$8 sps:$4 sm:$0xff]  }
 0x243   :  { %12841 = vmatprep.mubr.msk.bf16.mxu1 %vm293_vm1, %v15562_v58  ;;  %11515 = vmatprep.subr.msk.bf16.mxu1 %vm330_vm0, %v13897_v17  ;;  %v13973_v17 = vld [vmem:[#allocation4 + $0x394] ss:$8 sps:$4 sm:$0xff]  }
 0x246   :  { %2834 = vmatpush1.bf16.msra.mxu1 %v2823_v19  ;;  %v13971_v19 = vld [vmem:[#allocation4 + $0x390] ss:$8 sps:$4 sm:$0xff]  }
 0x247   :  { %12889 = vmatprep.subr.bf16.mxu1 %v13900_v21 }
 0x249   :  { %11480 = vmatmul.mubr.msk.bf16.gmra.mrb[12].mxu0 %vm293_vm1, %v15566_v59  ;;  %12842 = vmatmul.mubr.msk.bf16.gmra.mrb[8].mxu1 %vm293_vm1, %v15566_v59 }
 0x24a   :  { %2574 = vmatprep.mubr.bf16.mxu0 %v17083_v0  ;;  %12845 = vmatprep.mubr.msk.bf16.mxu1 %vm293_vm1, %v15577_v60 }
 0x251   :  { %11481 = vmatmul.mubr.msk.bf16.gmra.mrb[16].mxu0 %vm293_vm1, %v15577_v60  ;;  %12846 = vmatmul.mubr.msk.bf16.gmra.mrb[12].mxu1 %vm293_vm1, %v15580_v61 }
 0x252   :  { %2584 = vmatprep.mubr.bf16.mxu0 %v17083_v0  ;;  %12849 = vmatprep.mubr.msk.bf16.mxu1 %vm293_vm1, %v15589_v62 }
 0x259   :  { %11482 = vmatmul.mubr.msk.bf16.gmra.mrb[20].mxu0 %vm293_vm1, %v15580_v61  ;;  %12850 = vmatmul.mubr.msk.bf16.gmra.mrb[16].mxu1 %vm293_vm1, %v15591_v63 }
 0x25a   :  { %2594 = vmatprep.mubr.bf16.mxu0 %v17083_v0  ;;  %12853 = vmatprep.mubr.msk.bf16.mxu1 %vm293_vm1, %v15600_v1 }
 0x261   :  { %11483 = vmatmul.mubr.msk.bf16.gmra.mrb[24].mxu0 %vm293_vm1, %v15589_v62  ;;  %12854 = vmatmul.mubr.msk.bf16.gmra.mrb[20].mxu1 %vm293_vm1, %v15602_v2 }
 0x262   :  { %2604 = vmatprep.mubr.bf16.mxu0 %v17083_v0  ;;  %12857 = vmatprep.mubr.msk.bf16.mxu1 %vm293_vm1, %v15467_v28 }
 0x269   :  { %11484 = vmatmul.mubr.msk.bf16.gmra.mrb[28].mxu0 %vm293_vm1, %v15591_v63  ;;  %12858 = vmatmul.mubr.msk.bf16.gmra.mrb[24].mxu1 %vm293_vm1, %v16137_v25 }
 0x26a   :  { %2614 = vmatprep.mubr.bf16.mxu0 %v17083_v0  ;;  %2863 = vmatprep.mubr.bf16.mxu1 %v17083_v0 }
 0x271   :  { %11485 = vmatmul.mubr.msk.bf16.gmra.mrb[32].mxu0 %vm293_vm1, %v15600_v1  ;;  %11516 = vmatmul.mubr.msk.bf16.vlgmr.msra.gmra.mrb[28].mxu1 %vm293_vm1, %v15501_v38 }
 0x272   :  { %2624 = vmatprep.mubr.bf16.mxu0 %v17083_v0  ;;  %12890 = vmatpush3.bf16.msra.mxu1 %v13900_v21  ;;  %v13974_v21 = vld [vmem:[#allocation4 + $0x510] ss:$8 sps:$4 sm:$0xff]  }
 0x273   :  { %2873 = vmatprep.mubr.bf16.mxu1 %v17083_v0  ;;  %13821 = vmatprep.subr.msk.bf16.mxu1 %vm330_vm0, %v13902_v27  ;;  %v13980_v27 = vld [vmem:[#allocation4 + $0x520] ss:$8 sps:$4 sm:$0xff]  }
 0x276   :  { %12892 = vmatpush3.bf16.msra.mxu1 %v3308_v29  ;;  %v13985_v29 = vld [vmem:[#allocation4 + $0x3b4] ss:$8 sps:$4 sm:$0xff]  }
 0x277   :  { %3639 = vmatprep.subr.bf16.mxu1 %v13911_v30  ;;  %v13988_v30 = vld [vmem:[#allocation4 + $0x534] ss:$8 sps:$4 sm:$0xff]  }
 0x279   :  { %11486 = vmatmul.mubr.msk.bf16.gmra.mrb[36].mxu0 %vm293_vm1, %v15602_v2  ;;  %11517 = vmatmul.mubr.msk.bf16.gmra.mrb[32].mxu1 %vm293_vm1, %v15520_v45 }
 0x27a   :  { %2634 = vmatprep.mubr.bf16.mxu0 %v17083_v0  ;;  %2883 = vmatprep.mubr.bf16.mxu1 %v17083_v0 }
 0x281   :  { %11487 = vmatmul.mubr.msk.bf16.gmra.mrb[40].mxu0 %vm293_vm1, %v15467_v28  ;;  %11518 = vmatmul.mubr.msk.bf16.gmra.mrb[36].mxu1 %vm293_vm1, %v15562_v58 }
 0x282   :  { %2644 = vmatprep.mubr.bf16.mxu0 %v17083_v0  ;;  %2893 = vmatprep.mubr.bf16.mxu1 %v17083_v0 }
 0x289   :  { %11488 = vmatmul.mubr.msk.bf16.gmra.mrb[68].mxu0 %vm293_vm1, %v16137_v25  ;;  %11519 = vmatmul.mubr.msk.bf16.gmra.mrb[40].mxu1 %vm293_vm1, %v15566_v59 }
 0x28a   :  { %12865 = vmatprep.mubr.msk.bf16.mxu0 %vm293_vm1, %v15501_v38  ;;  %2903 = vmatprep.mubr.bf16.mxu1 %v17083_v0  ;;  %v3302_v38 = vsel %vm330_vm0, %v13908_v39, 0  ;;  %v13991_v39 = vld [vmem:[#allocation4 + $0x3c4] ss:$8 sps:$4 sm:$0xff]  }
 0x291   :  { %12866 = vmatmul.mubr.msk.bf16.vlgmr.msra.gmra.mrb[44].mxu0 %vm293_vm1, %v15520_v45  ;;  %11520 = vmatmul.mubr.msk.bf16.gmra.mrb[44].mxu1 %vm293_vm1, %v15577_v60  ;;  %v13916_v45 = vld [vmem:[%s17073_s1 + $0x1d0] ss:$12 sps:$4 sm:$0x3f]  }
 0x292   :  { %12869 = vmatprep.mubr.msk.bf16.mxu0 %vm293_vm1, %v15562_v58  ;;  %2913 = vmatprep.mubr.bf16.mxu1 %v17083_v0  ;;  %v3637_v58 = vsel %vm330_vm0, %v13916_v45, 0 }
 0x293   :  { %3311 = vmatpush1.bf16.msra.mxu0 %v13903_v31  ;;  %v13983_v31 = vld [vmem:[#allocation4 + $0x3b0] ss:$8 sps:$4 sm:$0xff]  }
 0x294   :  { %11555 = vmatprep.subr.msk.bf16.mxu0 %vm330_vm0, %v13906_v37  ;;  %v13986_v37 = vld [vmem:[#allocation4 + $0x530] ss:$8 sps:$4 sm:$0xff]  }
 0x297   :  { %3313 = vmatpush1.bf16.msra.mxu0 %v3302_v38  ;;  %v13994_v38 = vld [vmem:[#allocation4 + $0x544] ss:$8 sps:$4 sm:$0xff]  }
 0x298   :  { %12917 = vmatprep.subr.bf16.mxu0 %v13912_v40 }
 0x299   :  { %12870 = vmatmul.mubr.msk.bf16.gmra.mrb[48].mxu0 %vm293_vm1, %v15566_v59  ;;  %11521 = vmatmul.mubr.msk.bf16.gmra.mrb[48].mxu1 %vm293_vm1, %v15580_v61  ;;  %v13913_v59 = vld [vmem:[%s17073_s1 + $0x1cc] ss:$12 sps:$4 sm:$0x3f]  }
 0x29a   :  { %12873 = vmatprep.mubr.msk.bf16.mxu0 %vm293_vm1, %v15577_v60  ;;  %2923 = vmatprep.mubr.bf16.mxu1 %v17083_v0  ;;  %v13915_v60 = vld [vmem:[%s17073_s1 + $0x1c8] ss:$12 sps:$4 sm:$0x3f]  }
 0x2a1   :  { %12874 = vmatmul.mubr.msk.bf16.gmra.mrb[52].mxu0 %vm293_vm1, %v15580_v61  ;;  %11522 = vmatmul.mubr.msk.bf16.gmra.mrb[52].mxu1 %vm293_vm1, %v15589_v62  ;;  %v3631_v61 = vsel %vm330_vm0, %v13915_v60, 0  ;;  %v13998_v60 = vld [vmem:[#allocation4 + $0x550] ss:$8 sps:$4 sm:$0xff]  }
 0x2a2   :  { %12877 = vmatprep.mubr.msk.bf16.mxu0 %vm293_vm1, %v15589_v62  ;;  %2933 = vmatprep.mubr.bf16.mxu1 %v17083_v0  ;;  %v149_v62 = vld [vmem:[%s17072_s0 + $0xd8] sm:$0xff] }
 0x2a9   :  { %12878 = vmatmul.mubr.msk.bf16.gmra.mrb[56].mxu0 %vm293_vm1, %v15591_v63  ;;  %11523 = vmatmul.mubr.msk.bf16.gmra.mrb[56].mxu1 %vm293_vm1, %v15591_v63  ;;  %v16301_v63 = vpack.c.bf16 %v149_v62, %v16133_v22  ;;  %v13982_v22 = vld [vmem:[#allocation4 + $0x524] ss:$8 sps:$4 sm:$0xff]  }
 0x2aa   :  { %12881 = vmatprep.mubr.msk.bf16.mxu0 %vm293_vm1, %v15600_v1  ;;  %2943 = vmatprep.mubr.bf16.mxu1 %v17083_v0  ;;  %v14006_v62 = vld [vmem:[#allocation4 + $0x564] ss:$8 sps:$4 sm:$0xff]  }
 0x2b1   :  { %12882 = vmatmul.mubr.msk.bf16.gmra.mrb[60].mxu0 %vm293_vm1, %v15602_v2  ;;  %11524 = vmatmul.mubr.msk.bf16.gmra.mrb[60].mxu1 %vm293_vm1, %v15600_v1  ;;  %v13917_v1 = vld [vmem:[#allocation4 + $0x300] ss:$8 sps:$4 sm:$0xff]  }
 0x2b2   :  { %12885 = vmatprep.mubr.msk.bf16.mxu0 %vm293_vm1, %v15467_v28  ;;  %2953 = vmatprep.mubr.bf16.mxu1 %v17083_v0 }
 0x2b9   :  { %12886 = vmatmul.mubr.msk.bf16.gmra.mrb[64].mxu0 %vm293_vm1, %v16137_v25  ;;  %11525 = vmatmul.mubr.msk.bf16.gmra.mrb[64].mxu1 %vm293_vm1, %v15602_v2  ;;  %v13919_v2 = vld [vmem:[#allocation4 + $0x304] ss:$8 sps:$4 sm:$0xff]  }
 0x2ba   :  { %3342 = vmatprep.mubr.bf16.mxu0 %v17083_v0  ;;  %2963 = vmatprep.mubr.bf16.mxu1 %v17083_v0 }
 0x2c1   :  { %11556 = vmatmul.mubr.msk.bf16.vlgmr.msra.gmra.mrb[0].mxu0 %vm293_vm1, %v15417_v15  ;;  %11526 = vmatmul.mubr.msk.bf16.gmra.mrb[68].mxu1 %vm293_vm1, %v15467_v28  ;;  %v13909_v28 = vld [vmem:[%s17073_s1 + $0x1b0] ss:$12 sps:$4 sm:$0xff]  }
 0x2c2   :  { %3352 = vmatprep.mubr.bf16.mxu0 %v17083_v0  ;;  %2973 = vmatprep.mubr.bf16.mxu1 %v17083_v0 }
 0x2c3   :  { %12918 = vmatpush3.bf16.msra.mxu0 %v13912_v40  ;;  %v13989_v40 = vld [vmem:[#allocation4 + $0x3c0] ss:$8 sps:$4 sm:$0xff]  }
 0x2c4   :  { %13822 = vmatprep.subr.msk.bf16.mxu0 %vm330_vm0, %v13916_v45  ;;  %v13992_v45 = vld [vmem:[#allocation4 + $0x540] ss:$8 sps:$4 sm:$0xff]  }
 0x2c7   :  { %12920 = vmatpush3.bf16.msra.mxu0 %v3637_v58  ;;  %v13997_v58 = vld [vmem:[#allocation4 + $0x3d4] ss:$8 sps:$4 sm:$0xff]  }
 0x2c9   :  { %11557 = vmatmul.mubr.msk.bf16.gmra.mrb[4].mxu0 %vm293_vm1, %v15437_v20  ;;  %11527 = vmatmul.mubr.msk.bf16.gmra.mrb[72].mxu1 %vm293_vm1, %v16137_v25  ;;  %v13977_v25 = vld [vmem:[#allocation4 + $0x3a0] ss:$8 sps:$4 sm:$0xff]  }
 0x2ca   :  { %3362 = vmatprep.mubr.bf16.mxu0 %v17083_v0  ;;  %12893 = vmatprep.mubr.msk.bf16.mxu1 %vm293_vm1, %v15417_v15 }
 0x2d1   :  { %11558 = vmatmul.mubr.msk.bf16.gmra.mrb[8].mxu0 %vm293_vm1, %v15451_v23  ;;  %12894 = vmatmul.mubr.msk.bf16.vlgmr.msra.gmra.mrb[4].mxu1 %vm293_vm1, %v15437_v20 }
 0x2d2   :  { %3372 = vmatprep.mubr.bf16.mxu0 %v17083_v0  ;;  %3640 = vmatpush1.bf16.msra.mxu1 %v13909_v28  ;;  %v14000_v28 = vld [vmem:[#allocation4 + $0x554] ss:$8 sps:$4 sm:$0xff]  }
 0x2d3   :  { %12897 = vmatprep.mubr.msk.bf16.mxu1 %vm293_vm1, %v15451_v23  ;;  %11594 = vmatprep.subr.msk.bf16.mxu1 %vm330_vm0, %v13913_v59  ;;  %v13995_v59 = vld [vmem:[#allocation4 + $0x3d0] ss:$8 sps:$4 sm:$0xff]  }
 0x2d6   :  { %3642 = vmatpush1.bf16.msra.mxu1 %v3631_v61  ;;  %v14003_v61 = vld [vmem:[#allocation4 + $0x3e4] ss:$8 sps:$4 sm:$0xff]  }
 0x2d7   :  { %4762 = vmatprep.subr.bf16.mxu1 %v13919_v2  ;;  %v14009_v2 = vld [vmem:[#allocation4 + $0x3f4] ss:$8 sps:$4 sm:$0xff]  }
 0x2d9   :  { %11559 = vmatmul.mubr.msk.bf16.gmra.mrb[12].mxu0 %vm293_vm1, %v15455_v24  ;;  %12898 = vmatmul.mubr.msk.bf16.gmra.mrb[8].mxu1 %vm293_vm1, %v15455_v24 }
 0x2da   :  { %3382 = vmatprep.mubr.bf16.mxu0 %v17083_v0  ;;  %12901 = vmatprep.mubr.msk.bf16.mxu1 %vm293_vm1, %v15462_v26 }
 0x2e1   :  { %11560 = vmatmul.mubr.msk.bf16.gmra.mrb[16].mxu0 %vm293_vm1, %v15462_v26  ;;  %12902 = vmatmul.mubr.msk.bf16.gmra.mrb[12].mxu1 %vm293_vm1, %v15496_v36 }
 0x2e2   :  { %3392 = vmatprep.mubr.bf16.mxu0 %v17083_v0  ;;  %12905 = vmatprep.mubr.msk.bf16.mxu1 %vm293_vm1, %v15509_v41 }
 0x2e9   :  { %11561 = vmatmul.mubr.msk.bf16.gmra.mrb[20].mxu0 %vm293_vm1, %v15496_v36  ;;  %12906 = vmatmul.mubr.msk.bf16.gmra.mrb[16].mxu1 %vm293_vm1, %v15528_v48 }
 0x2ea   :  { %3402 = vmatprep.mubr.bf16.mxu0 %v17083_v0  ;;  %12909 = vmatprep.mubr.msk.bf16.mxu1 %vm293_vm1, %v15536_v51 }
 0x2f1   :  { %11562 = vmatmul.mubr.msk.bf16.gmra.mrb[24].mxu0 %vm293_vm1, %v15509_v41  ;;  %12910 = vmatmul.mubr.msk.bf16.gmra.mrb[20].mxu1 %vm293_vm1, %v15540_v52 }
 0x2f2   :  { %3412 = vmatprep.mubr.bf16.mxu0 %v17083_v0  ;;  %12913 = vmatprep.mubr.msk.bf16.mxu1 %vm293_vm1, %v15964_v3 }
 0x2f9   :  { %11563 = vmatmul.mubr.msk.bf16.gmra.mrb[28].mxu0 %vm293_vm1, %v15528_v48  ;;  %12914 = vmatmul.mubr.msk.bf16.gmra.mrb[24].mxu1 %vm293_vm1, %v16301_v63 }
 0x2fa   :  { %3422 = vmatprep.mubr.bf16.mxu0 %v17083_v0  ;;  %3671 = vmatprep.mubr.bf16.mxu1 %v17083_v0 }
 0x301   :  { %11564 = vmatmul.mubr.msk.bf16.gmra.mrb[32].mxu0 %vm293_vm1, %v15536_v51  ;;  %11595 = vmatmul.mubr.msk.bf16.vlgmr.msra.gmra.mrb[28].mxu1 %vm293_vm1, %v15417_v15 }
 0x302   :  { %3432 = vmatprep.mubr.bf16.mxu0 %v17083_v0  ;;  %3681 = vmatprep.mubr.bf16.mxu1 %v17083_v0 }
 0x303   :  { %4763 = vmatpush1.bf16.msra.mxu1 %v13917_v1  ;;  %v14004_v1 = vld [vmem:[#allocation4 + $0x560] ss:$8 sps:$4 sm:$0xff]  }
 0x309   :  { %11565 = vmatmul.mubr.msk.bf16.gmra.mrb[36].mxu0 %vm293_vm1, %v15540_v52  ;;  %11596 = vmatmul.mubr.msk.bf16.gmra.mrb[32].mxu1 %vm293_vm1, %v15437_v20 }
 0x30a   :  { %3442 = vmatprep.mubr.bf16.mxu0 %v17083_v0  ;;  %3691 = vmatprep.mubr.bf16.mxu1 %v17083_v0 }
 0x311   :  { %11566 = vmatmul.mubr.msk.bf16.gmra.mrb[40].mxu0 %vm293_vm1, %v15964_v3  ;;  %11597 = vmatmul.mubr.msk.bf16.gmra.mrb[36].mxu1 %vm293_vm1, %v15451_v23 }
 0x312   :  { %3452 = vmatprep.mubr.bf16.mxu0 %v17083_v0  ;;  %3701 = vmatprep.mubr.bf16.mxu1 %v17083_v0 }
 0x319   :  { %11567 = vmatmul.mubr.msk.bf16.gmra.mrb[68].mxu0 %vm293_vm1, %v16301_v63  ;;  %11598 = vmatmul.mubr.msk.bf16.gmra.mrb[40].mxu1 %vm293_vm1, %v15455_v24 }
 0x31a   :  { %12921 = vmatprep.mubr.msk.bf16.mxu0 %vm293_vm1, %v15417_v15  ;;  %3711 = vmatprep.mubr.bf16.mxu1 %v17083_v0  ;;  %v13920_v15 = vld [vmem:[#allocation4 + $0x310] ss:$8 sps:$4 sm:$0xff]  }
 0x321   :  { %12922 = vmatmul.mubr.msk.bf16.vlgmr.msra.gmra.mrb[44].mxu0 %vm293_vm1, %v15437_v20  ;;  %11599 = vmatmul.mubr.msk.bf16.gmra.mrb[44].mxu1 %vm293_vm1, %v15462_v26  ;;  %v13922_v20 = vld [vmem:[#allocation4 + $0x314] ss:$8 sps:$4 sm:$0xff]  }
 0x322   :  { %12925 = vmatprep.mubr.msk.bf16.mxu0 %vm293_vm1, %v15451_v23  ;;  %3721 = vmatprep.mubr.bf16.mxu1 %v17083_v0  ;;  %v13923_v23 = vld [vmem:[#allocation4 + $0x480] ss:$8 sps:$4 sm:$0xff]  }
 0x323   :  { %4764 = vmatprep.subr.bf16.mxu1 %v13922_v20  ;;  %v14007_v20 = vld [vmem:[#allocation4 + $0x3f0] ss:$8 sps:$4 sm:$0xff]  }
 0x324   :  { %4765 = vmatpush1.bf16.msra.mxu1 %v13920_v15  ;;  %v14012_v15 = vld [vmem:[#allocation4 + $0x574] ss:$8 sps:$4 sm:$0xff]  }
 0x325   :  { %4766 = vmatprep.subr.bf16.mxu1 %v13928_v43 }
 0x329   :  { %12926 = vmatmul.mubr.msk.bf16.gmra.mrb[48].mxu0 %vm293_vm1, %v15455_v24  ;;  %11600 = vmatmul.mubr.msk.bf16.gmra.mrb[48].mxu1 %vm293_vm1, %v15496_v36  ;;  %v13925_v24 = vld [vmem:[#allocation4 + $0x484] ss:$8 sps:$4 sm:$0xff]  }
 0x32a   :  { %12929 = vmatprep.mubr.msk.bf16.mxu0 %vm293_vm1, %v15462_v26  ;;  %3731 = vmatprep.mubr.bf16.mxu1 %v17083_v0  ;;  %v13931_v26 = vld [vmem:[#allocation4 + $0x494] ss:$8 sps:$4 sm:$0xff]  }
 0x32b   :  { %5197 = vmatprep.subr.bf16.mxu0 %v13925_v24  ;;  %v14015_v24 = vld [vmem:[#allocation4 + $0x404] ss:$8 sps:$4 sm:$0xff]  }
 0x32c   :  { %5198 = vmatpush1.bf16.msra.mxu0 %v13923_v23  ;;  %v14010_v23 = vld [vmem:[#allocation4 + $0x570] ss:$8 sps:$4 sm:$0xff]  }
 0x32d   :  { %5199 = vmatprep.subr.bf16.mxu0 %v13931_v26  ;;  %v14018_v26 = vld [vmem:[#allocation4 + $0x584] ss:$8 sps:$4 sm:$0xff]  }
 0x330   :  { %5200 = vmatpush1.bf16.msra.mxu0 %v13929_v42 }
 0x331   :  { %12930 = vmatmul.mubr.msk.bf16.gmra.mrb[52].mxu0 %vm293_vm1, %v15496_v36  ;;  %11601 = vmatmul.mubr.msk.bf16.gmra.mrb[52].mxu1 %vm293_vm1, %v15509_v41  ;;  %v13926_v36 = vld [vmem:[#allocation4 + $0x320] ss:$8 sps:$4 sm:$0xff]  }
 0x332   :  { %12933 = vmatprep.mubr.msk.bf16.mxu0 %vm293_vm1, %v15509_v41  ;;  %3741 = vmatprep.mubr.bf16.mxu1 %v17083_v0  ;;  %v13934_v41 = vld [vmem:[#allocation4 + $0x4a4] ss:$8 sps:$4 sm:$0xff]  }
 0x333   :  { %4767 = vmatpush1.bf16.msra.mxu1 %v13926_v36  ;;  %5201 = vmatprep.subr.bf16.mxu0 %v13934_v41 }
 0x334   :  { %5202 = vmatpush1.bf16.msra.mxu0 %v13932_v44  ;;  %4768 = vmatprep.subr.bf16.mxu1 %v13937_v47 }
 0x335   :  { %5203 = vmatprep.subr.bf16.mxu0 %v13940_v49 }
 0x337   :  { %4769 = vmatpush1.bf16.msra.mxu1 %v13935_v46 }
 0x338   :  { %5204 = vmatpush1.bf16.msra.mxu0 %v13938_v50  ;;  %4770 = vmatprep.subr.bf16.mxu1 %v13943_v53 }
 0x339   :  { %12934 = vmatmul.mubr.msk.bf16.gmra.mrb[56].mxu0 %vm293_vm1, %v15528_v48  ;;  %11602 = vmatmul.mubr.msk.bf16.gmra.mrb[56].mxu1 %vm293_vm1, %v15528_v48  ;;  %v13941_v48 = vld [vmem:[#allocation4 + $0x340] ss:$8 sps:$4 sm:$0xff]  }
 0x33a   :  { %12937 = vmatprep.mubr.msk.bf16.mxu0 %vm293_vm1, %v15536_v51  ;;  %3751 = vmatprep.mubr.bf16.mxu1 %v17083_v0 }
 0x33b   :  { %5205 = vmatprep.subr.bf16.mxu0 %v13946_v54  ;;  %4771 = vmatpush1.bf16.msra.mxu1 %v13941_v48 }
 0x33c   :  { %5206 = vmatpush1.bf16.msra.mxu0 %v13944_v55  ;;  %4772 = vmatprep.subr.bf16.mxu1 %v13949_v56 }
 0x33d   :  { %5207 = vmatprep.subr.bf16.mxu0 %v13952_v57 }
 0x33f   :  { %4773 = vmatpush1.bf16.msra.mxu1 %v13947_v4 }
 0x340   :  { %5208 = vmatpush1.bf16.msra.mxu0 %v13950_v5 }
 0x341   :  { %12938 = vmatmul.mubr.msk.bf16.gmra.mrb[60].mxu0 %vm293_vm1, %v15540_v52  ;;  %11603 = vmatmul.mubr.msk.bf16.gmra.mrb[60].mxu1 %vm293_vm1, %v15536_v51  ;;  %v13955_v51 = vld [vmem:[#allocation4 + $0x364] ss:$8 sps:$4 sm:$0xff]  }
 0x342   :  { %12941 = vmatprep.mubr.msk.bf16.mxu0 %vm293_vm1, %v15964_v3  ;;  %3761 = vmatprep.mubr.bf16.mxu1 %v17083_v0 }
 0x343   :  { %4774 = vmatprep.subr.bf16.mxu1 %v13955_v51  ;;  %5209 = vmatprep.subr.bf16.mxu0 %v13958_v6 }
 0x344   :  { %4775 = vmatpush1.bf16.msra.mxu1 %v13953_v7  ;;  %5210 = vmatpush1.bf16.msra.mxu0 %v13956_v8 }
 0x345   :  { %4776 = vmatprep.subr.bf16.mxu1 %v13961_v9  ;;  %5211 = vmatprep.subr.bf16.mxu0 %v13964_v14 }
 0x348   :  { %4777 = vmatpush1.bf16.msra.mxu1 %v13959_v10  ;;  %5212 = vmatpush1.bf16.msra.mxu0 %v13962_v11 }
 0x349   :  { %12942 = vmatmul.mubr.msk.bf16.gmra.mrb[64].mxu0 %vm293_vm1, %v16301_v63  ;;  %11604 = vmatmul.mubr.msk.bf16.gmra.mrb[64].mxu1 %vm293_vm1, %v15540_v52  ;;  %v13970_v52 = vld [vmem:[#allocation4 + $0x504] ss:$8 sps:$4 sm:$0xff]  }
 0x34a   :  { %3771 = vmatprep.mubr.bf16.mxu1 %v17083_v0  ;;  %4778 = vmatprep.subr.bf16.mxu1 %v13967_v12 }
 0x34b   :  { %5213 = vmatprep.subr.bf16.mxu0 %v13970_v52 }
 0x34c   :  { %4779 = vmatpush1.bf16.msra.mxu1 %v13965_v13  ;;  %5214 = vmatpush1.bf16.msra.mxu0 %v13968_v16 }
 0x34d   :  { %4780 = vmatprep.subr.bf16.mxu1 %v13973_v17  ;;  %5215 = vmatprep.subr.bf16.mxu0 %v13976_v18 }
 0x350   :  { %4781 = vmatpush1.bf16.msra.mxu1 %v13971_v19  ;;  %5216 = vmatpush1.bf16.msra.mxu0 %v13974_v21 }
 0x351   :  { %11605 = vmatmul.mubr.msk.bf16.gmra.mrb[68].mxu1 %vm293_vm1, %v15964_v3  ;;  %v13979_v3 = vld [vmem:[#allocation4 + $0x3a4] ss:$8 sps:$4 sm:$0xff]   ;;  %5217 = vmatprep.subr.bf16.mxu0 %v13982_v22 }
 0x352   :  { %3781 = vmatprep.mubr.bf16.mxu1 %v17083_v0  ;;  %4782 = vmatprep.subr.bf16.mxu1 %v13979_v3 }
 0x354   :  { %4783 = vmatpush1.bf16.msra.mxu1 %v13977_v25  ;;  %5218 = vmatpush1.bf16.msra.mxu0 %v13980_v27 }
 0x355   :  { %4784 = vmatprep.subr.bf16.mxu1 %v13985_v29  ;;  %5219 = vmatprep.subr.bf16.mxu0 %v13988_v30 }
 0x358   :  { %4785 = vmatpush1.bf16.msra.mxu1 %v13983_v31  ;;  %5220 = vmatpush1.bf16.msra.mxu0 %v13986_v37 }
 0x359   :  { %11606 = vmatmul.mubr.msk.bf16.gmra.mrb[72].mxu1 %vm293_vm1, %v16301_v63  ;;  %4786 = vmatprep.subr.bf16.mxu1 %v13991_v39  ;;  %v14001_v63 = vld [vmem:[#allocation4 + $0x3e0] ss:$8 sps:$4 sm:$0xff]  }
 0x35a   :  { %5221 = vmatprep.subr.bf16.mxu0 %v13994_v38 }
 0x35c   :  { %4787 = vmatpush1.bf16.msra.mxu1 %v13989_v40  ;;  %5222 = vmatpush1.bf16.msra.mxu0 %v13992_v45 }
 0x35d   :  { %4788 = vmatprep.subr.bf16.mxu1 %v13997_v58  ;;  %5223 = vmatprep.subr.bf16.mxu0 %v14000_v28 }
 0x360   :  { %4789 = vmatpush1.bf16.msra.mxu1 %v13995_v59  ;;  %5224 = vmatpush1.bf16.msra.mxu0 %v13998_v60 }
 0x361   :  { %4790 = vmatprep.subr.bf16.mxu1 %v14003_v61  ;;  %5225 = vmatprep.subr.bf16.mxu0 %v14006_v62 }
 0x364   :  { %4791 = vmatpush1.bf16.msra.mxu1 %v14001_v63  ;;  %5226 = vmatpush1.bf16.msra.mxu0 %v14004_v1 }
 0x365   :  { %4792 = vmatprep.subr.bf16.mxu1 %v14009_v2  ;;  %5227 = vmatprep.subr.bf16.mxu0 %v14012_v15 }
 0x368   :  { %4793 = vmatpush1.bf16.msra.mxu1 %v14007_v20  ;;  %5228 = vmatpush1.bf16.msra.mxu0 %v14010_v23 }
 0x369   :  { %4835 = vmatprep.subr.bf16.mxu1 %v14015_v24  ;;  %5270 = vmatprep.subr.bf16.mxu0 %v14018_v26 }
 0x394   :  { %v16379_v42 = vpop.f32.mrb[0].mxu0 }
 0x395   :  { %v16381_v36 = vpop.f32.mrb[1].mxu0 }
 0x396   :  { %v16383_v43 = vpop.f32.mrb[2].mxu0 }
 0x397   :  { %v16387_v44 = vpop.f32.mrb[3].mxu0 }
 0x398   :  { %v17134_v8 = vmax.f32 %v16381_v36, %v16387_v44 }
 0x39c   :  { %v16391_v47 = vpop.f32.mrb[4].mxu0 }
 0x39d   :  { %v16393_v49 = vpop.f32.mrb[5].mxu0 }
 0x39e   :  { %v16395_v50 = vpop.f32.mrb[6].mxu0 }
 0x39f   :  { %v16399_v53 = vpop.f32.mrb[7].mxu0 }
 0x3a0   :  { %v17140_v36 = vmax.f32 %v16393_v49, %v16399_v53 }
 0x3a4   :  { %v16403_v55 = vpop.f32.mrb[8].mxu0  ;;  %v16405_v56 = vpop.f32.mrb[4].mxu1 }
 0x3a5   :  { %v16407_v57 = vpop.f32.mrb[9].mxu0  ;;  %v16409_v4 = vpop.f32.mrb[5].mxu1 }
 0x3a6   :  { %v16411_v5 = vpop.f32.mrb[10].mxu0  ;;  %v16415_v6 = vpop.f32.mrb[6].mxu1 }
 0x3a7   :  { %v16417_v7 = vpop.f32.mrb[11].mxu0  ;;  %v16423_v14 = vpop.f32.mrb[7].mxu1 }
 0x3ac   :  { %v16427_v11 = vpop.f32.mrb[12].mxu0  ;;  %v16429_v12 = vpop.f32.mrb[8].mxu1 }
 0x3ad   :  { %v16431_v52 = vpop.f32.mrb[13].mxu0  ;;  %v16433_v13 = vpop.f32.mrb[9].mxu1 }
 0x3ae   :  { %v16435_v16 = vpop.f32.mrb[14].mxu0  ;;  %v16439_v18 = vpop.f32.mrb[10].mxu1 }
 0x3af   :  { %v16441_v19 = vpop.f32.mrb[15].mxu0  ;;  %v16447_v22 = vpop.f32.mrb[11].mxu1 }
 0x3b4   :  { %v16451_v27 = vpop.f32.mrb[16].mxu0  ;;  %v16453_v29 = vpop.f32.mrb[12].mxu1 }
 0x3b5   :  { %v16455_v30 = vpop.f32.mrb[17].mxu0  ;;  %v16457_v31 = vpop.f32.mrb[13].mxu1 }
 0x3b6   :  { %v16459_v37 = vpop.f32.mrb[18].mxu0  ;;  %v16463_v38 = vpop.f32.mrb[14].mxu1 }
 0x3b7   :  { %v16465_v40 = vpop.f32.mrb[19].mxu0  ;;  %v16471_v28 = vpop.f32.mrb[15].mxu1 }
 0x3bc   :  { %v16475_v60 = vpop.f32.mrb[20].mxu0  ;;  %v16477_v61 = vpop.f32.mrb[16].mxu1 }
 0x3bd   :  { %v16479_v62 = vpop.f32.mrb[21].mxu0  ;;  %v16481_v63 = vpop.f32.mrb[17].mxu1 }
 0x3be   :  { %17114 = vst [vmem:[#allocation17_spill] sm:$0xff] %v16481_v63  ;;  %v16483_v1 = vpop.f32.mrb[22].mxu0  ;;  %v16487_v15 = vpop.f32.mrb[18].mxu1 }
 0x3bf   :  { %v16489_v20 = vpop.f32.mrb[23].mxu0  ;;  %v16495_v26 = vpop.f32.mrb[19].mxu1 }
 0x3c0   :  { %17115 = vst [vmem:[#allocation18_spill] sm:$0xff] %v16495_v26 }
 0x3c4   :  { %v16499_v59 = vpop.f32.mrb[24].mxu0  ;;  %v16501_v45 = vpop.f32.mrb[20].mxu1 }
 0x3c5   :  { %17116 = vst [vmem:[#allocation19_spill] sm:$0xff] %v16501_v45  ;;  %v16503_v25 = vpop.f32.mrb[25].mxu0  ;;  %v16505_v2 = vpop.f32.mrb[21].mxu1 }
 0x3c6   :  { %17117 = vst [vmem:[#allocation20_spill] sm:$0xff] %v16505_v2  ;;  %v16507_v21 = vpop.f32.mrb[26].mxu0  ;;  %v16511_v58 = vpop.f32.mrb[22].mxu1 }
 0x3c7   :  { %17118 = vst [vmem:[#allocation21_spill] sm:$0xff] %v16511_v58  ;;  %v16513_v24 = vpop.f32.mrb[27].mxu0  ;;  %v16519_v39 = vpop.f32.mrb[23].mxu1 }
 0x3c8   :  { %17119 = vst [vmem:[#allocation22_spill] sm:$0xff] %v16519_v39  ;;  %v4175_v39 = vlaneseq }
 0x3ca   :  { %v16553_v63 = vshrl.u32 %v4175_v39, 7  ;;  %v16567_v39 = vld [vmem:[#allocation2] sm:$0x7] }
 0x3cc   :  { %v16523_v3 = vpop.f32.mrb[28].mxu0  ;;  %v16525_v17 = vpop.f32.mrb[24].mxu1 }
 0x3cd   :  { %17120 = vst [vmem:[#allocation23_spill] sm:$0xff] %v16523_v3  ;;  %17121 = vst [vmem:[#allocation24_spill] sm:$0xff] %v16525_v17  ;;  %v16527_v23 = vpop.f32.mrb[29].mxu0  ;;  %v16529_v9 = vpop.f32.mrb[25].mxu1 }
 0x3ce   :  { %17122 = vst [vmem:[#allocation25_spill] sm:$0xff] %v16527_v23  ;;  %17123 = vst [vmem:[#allocation26_spill] sm:$0xff] %v16529_v9  ;;  %v16531_v51 = vpop.f32.mrb[30].mxu0  ;;  %v16535_v54 = vpop.f32.mrb[26].mxu1 }
 0x3cf   :  { %17124 = vst [vmem:[#allocation27_spill] sm:$0xff] %v16531_v51  ;;  %17125 = vst [vmem:[#allocation28_spill] sm:$0xff] %v16535_v54  ;;  %v16537_v10 = vpop.f32.mrb[31].mxu0  ;;  %v16543_v46 = vpop.f32.mrb[27].mxu1  ;;  %v16565_v51 = vsub.s32 0, %v16553_v63 }
 0x3d0   :  { %17126 = vst [vmem:[#allocation29_spill] sm:$0xff] %v16537_v10  ;;  %17127 = vst [vmem:[#allocation30_spill] sm:$0xff] %v16543_v46  ;;  %v17132_v10 = vmax.f32 %v16379_v42, %v16383_v43 }
 0x3d1   :  { %17133 = vst [vmem:[#allocation35_spill] sm:$0xff] %v16565_v51  ;;  %v16581_v42 = vrot.slane %v16567_v39, %v16565_v51 }
 0x3d4   :  { %v16547_v2 = vpop.f32.mrb[32].mxu0  ;;  %v3673_v58 = vpop.f32.mrb[28].mxu1 }
 0x3d5   :  { %17128 = vst [vmem:[#allocation31_spill] sm:$0xff] %v16547_v2  ;;  %v16549_v0 = vpop.f32.mrb[33].mxu0  ;;  %v3675_v45 = vpop.f32.mrb[29].mxu1  ;;  %v17139_v2 = vmax.f32 %v16391_v47, %v16395_v50 }
 0x3d6   :  { %17129 = vst [vmem:[#allocation32_spill] sm:$0xff] %v16549_v0  ;;  %v16551_v26 = vpop.f32.mrb[34].mxu0  ;;  %v3677_v48 = vpop.f32.mrb[30].mxu1 }
 0x3d7   :  { %17130 = vst [vmem:[#allocation33_spill] sm:$0xff] %v16551_v26  ;;  %v16557_v54 = vpop.f32.mrb[35].mxu0  ;;  %v4101_v17 = vmax.f32 %v3673_v58, %v3677_v48  ;;  %v3679_v46 = vpop.f32.mrb[31].mxu1  ;;  %v16573_v48 = vsub.s32 1, %v16553_v63 }
 0x3d8   :  { %17131 = vst [vmem:[#allocation34_spill] sm:$0xff] %v16557_v54  ;;  %v4102_v9 = vmax.f32 %v3675_v45, %v3679_v46 }
 0x3d9   :  { %v4137_v23 = vmax.f32 %v17132_v10, %v4101_v17  ;;  %17135 = vst [vmem:[#allocation36_spill] sm:$0xff] %v16573_v48  ;;  %v16587_v17 = vrot.slane %v16567_v39, %v16573_v48 }
 0x3da   :  { %v4138_v26 = vmax.f32 %v17134_v8, %v4102_v9 }
 0x3db   :  { %v4190_v0 = vadd.f32 %v16581_v42, %v4137_v23 }
 0x3dc   :  { %v16575_v58 = vpop.f32.mrb[36].mxu0  ;;  %v3683_v41 = vpop.f32.mrb[32].mxu1  ;;  %v4191_v48 = vadd.f32 %v16587_v17, %v4138_v26 }
 0x3dd   :  { %17136 = vst [vmem:[#allocation37_spill] sm:$0xff] %v16575_v58  ;;  %v16577_v46 = vpop.f32.mrb[37].mxu0  ;;  %v3685_v43 = vpop.f32.mrb[33].mxu1  ;;  %v4226_v23 = vmax.f32 %v4190_v0, 0.0 }
 0x3de   :  { %v16583_v10 = vpop.f32.mrb[38].mxu0  ;;  %v3687_v44 = vpop.f32.mrb[34].mxu1  ;;  %v4227_v50 = vmax.f32 %v4191_v48, 0.0  ;;  %v17144_v48 = vmax.f32 %v16403_v55, %v16411_v5 }
 0x3df   :  { %17137 = vst [vmem:[#allocation38_spill] sm:$0xff] %v16583_v10  ;;  %v16591_v8 = vpop.f32.mrb[39].mxu0  ;;  %v4104_v9 = vmax.f32 %v3683_v41, %v3687_v44  ;;  %v3689_v54 = vpop.f32.mrb[35].mxu1 }
 0x3e0   :  { %17138 = vst [vmem:[#allocation39_spill] sm:$0xff] %v16591_v8  ;;  %v4105_v51 = vmax.f32 %v3685_v43, %v3689_v54 }
 0x3e1   :  { %v4140_v3 = vmax.f32 %v17139_v2, %v4104_v9 }
 0x3e2   :  { %v4141_v10 = vmax.f32 %v17140_v36, %v4105_v51 }
 0x3e3   :  { %v4193_v58 = vadd.f32 %v16581_v42, %v4140_v3 }
 0x3e4   :  { %v16604_v41 = vpop.f32.mrb[40].mxu0  ;;  %v4194_v44 = vadd.f32 %v16587_v17, %v4141_v10  ;;  %v3693_v45 = vpop.f32.mrb[36].mxu1 }
 0x3e5   :  { %v16607_v54 = vpop.f32.mrb[41].mxu0  ;;  %v4229_v43 = vmax.f32 %v4193_v58, 0.0  ;;  %v3695_v8 = vpop.f32.mrb[37].mxu1 }
 0x3e6   :  { %v16609_v47 = vpop.f32.mrb[42].mxu0  ;;  %v4230_v2 = vmax.f32 %v4194_v44, 0.0  ;;  %v3697_v53 = vpop.f32.mrb[38].mxu1  ;;  %v17145_v44 = vmax.f32 %v16407_v57, %v16417_v7 }
 0x3e7   :  { %17141 = vst [vmem:[#allocation40_spill] sm:$0xff] %v16609_v47  ;;  %v16613_v51 = vpop.f32.mrb[43].mxu0  ;;  %v16615_v3 = vpack.c.bf16 %v4229_v43, %v4226_v23  ;;  %v4107_v26 = vmax.f32 %v3693_v45, %v3697_v53  ;;  %v3699_v36 = vpop.f32.mrb[39].mxu1 }
 0x3e8   :  { %v4108_v0 = vmax.f32 %v3695_v8, %v3699_v36  ;;  %v16619_v58 = vpack.c.bf16 %v4230_v2, %v4227_v50 }
 0x3e9   :  { %17142 = vst [vmem:[#allocation41_spill] sm:$0xff] %v16615_v3  ;;  %v4143_v9 = vmax.f32 %v17144_v48, %v4107_v26 }
 0x3ea   :  { %17143 = vst [vmem:[#allocation42_spill] sm:$0xff] %v16619_v58  ;;  %v4144_v49 = vmax.f32 %v17145_v44, %v4108_v0 }
 0x3eb   :  { %v4196_v47 = vadd.f32 %v16581_v42, %v4143_v9 }
 0x3ec   :  { %v3454_v23 = vpop.f32.mrb[68].mxu0  ;;  %v4197_v45 = vadd.f32 %v16587_v17, %v4144_v49  ;;  %v3703_v10 = vpop.f32.mrb[40].mxu1 }
 0x3ed   :  { %v16630_v53 = vadd.f32 %v3454_v23, %v15809_v32  ;;  %v3456_v8 = vpop.f32.mrb[69].mxu0  ;;  %v4232_v50 = vmax.f32 %v4196_v47, 0.0  ;;  %v3705_v55 = vpop.f32.mrb[41].mxu1  ;;  %v14013_v23 = vld [vmem:[#allocation4 + $0x400] ss:$8 sps:$4 sm:$0xff]  }
 0x3ee   :  { %v16633_v36 = vadd.f32 %v3456_v8, %v15811_v33  ;;  %v3458_v5 = vpop.f32.mrb[70].mxu0  ;;  %v4233_v26 = vmax.f32 %v4197_v45, 0.0  ;;  %v3707_v7 = vpop.f32.mrb[42].mxu1  ;;  %v14016_v8 = vld [vmem:[#allocation4 + $0x580] ss:$8 sps:$4 sm:$0xff]   ;;  %v17146_v45 = vmax.f32 %v16427_v11, %v16435_v16 }
 0x3ef   :  { %v16636_v57 = vadd.f32 %v3458_v5, %v15813_v34  ;;  %v3460_v0 = vpop.f32.mrb[71].mxu0  ;;  %v12448_v48 = vpack.c.bf16 %v4232_v50, %v4229_v43  ;;  %v4110_v9 = vmax.f32 %v3703_v10, %v3707_v7  ;;  %v3709_v32 = vpop.f32.mrb[43].mxu1  ;;  %v14021_v43 = vld [vmem:[#allocation4 + $0x414] ss:$8 sps:$4 sm:$0xff]   ;;  %v14019_v16 = vld [vmem:[#allocation4 + $0x410] ss:$8 sps:$4 sm:$0xff]  }
 0x3f0   :  { %v16639_v49 = vadd.f32 %v3460_v0, %v15815_v35  ;;  %v4111_v44 = vmax.f32 %v3705_v55, %v3709_v32  ;;  %v12449_v33 = vpack.c.bf16 %v4233_v26, %v4230_v2  ;;  %v14024_v10 = vld [vmem:[#allocation4 + $0x594] ss:$8 sps:$4 sm:$0xff]   ;;  %v17147_v35 = vmax.f32 %v16431_v52, %v16441_v19  ;;  %v14022_v52 = vld [vmem:[#allocation4 + $0x590] ss:$8 sps:$4 sm:$0xff]   ;;  %v14027_v19 = vld [vmem:[#allocation4 + $0x424] ss:$8 sps:$4 sm:$0xff]  }
 0x3f1   :  { %v4146_v34 = vmax.f32 %v17146_v45, %v4110_v9  ;;  %v17113_v55 = vsub.s32 2, %v16553_v63 }
 0x3f2   :  { %v4147_v7 = vmax.f32 %v17147_v35, %v4111_v44  ;;  %4794 = vmatprep.mubr.bf16.mxu1 %v12449_v33  ;;  %5229 = vmatprep.mubr.bf16.mxu0 %v12449_v33 }
 0x3f3   :  { %v16653_v2 = vadd.f32 %v16581_v42, %v4146_v34  ;;  %4795 = vmatmul.mubr.bf16.vlgmr.msra.gmra.mrb[76].mxu1 %v12448_v48  ;;  %5230 = vmatmul.mubr.bf16.vlgmr.msra.gmra.mrb[72].mxu0 %v12448_v48  ;;  %v14030_v34 = vld [vmem:[#allocation4 + $0x5a4] ss:$8 sps:$4 sm:$0xff]  }
 0x3f4   :  { %v12923_v11 = vpop.f32.mrb[44].mxu0  ;;  %v16656_v0 = vadd.f32 %v16587_v17, %v4147_v7  ;;  %v3713_v9 = vpop.f32.mrb[44].mxu1  ;;  %4836 = vmatpush1.bf16.msra.mxu1 %v14013_v23  ;;  %5271 = vmatpush1.bf16.msra.mxu0 %v14016_v8  ;;  %v16663_v7 = vrot.slane %v16567_v39, %v17113_v55  ;;  %v17149_v39 = vmax.f32 %v16451_v27, %v16459_v37 }
 0x3f5   :  { %v3826_v32 = vpop.f32.mrb[45].mxu0  ;;  %v4235_v44 = vmax.f32 %v16653_v2, 0.0  ;;  %v3715_v33 = vpop.f32.mrb[45].mxu1  ;;  %4837 = vmatprep.subr.bf16.mxu1 %v14021_v43  ;;  %5272 = vmatprep.subr.bf16.mxu0 %v14024_v10  ;;  %v17148_v43 = vmax.f32 %v16405_v56, %v16415_v6  ;;  %v17151_v6 = vmax.f32 %v16455_v30, %v16465_v40 }
 0x3f6   :  { %v12924_v45 = vpop.f32.mrb[46].mxu0  ;;  %v4236_v48 = vmax.f32 %v16656_v0, 0.0  ;;  %v3717_v35 = vpop.f32.mrb[46].mxu1 }
 0x3f7   :  { %v4106_v5 = vmax.f32 %v12923_v11, %v12924_v45  ;;  %v3829_v23 = vpop.f32.mrb[47].mxu0  ;;  %v16665_v8 = vpack.c.bf16 %v4235_v44, %v4232_v50  ;;  %v4113_v47 = vmax.f32 %v3713_v9, %v3717_v35  ;;  %v3719_v3 = vpop.f32.mrb[47].mxu1  ;;  %v14025_v11 = vld [vmem:[#allocation4 + $0x420] ss:$8 sps:$4 sm:$0xff]   ;;  %v17150_v50 = vmax.f32 %v16409_v4, %v16423_v14  ;;  %v14034_v4 = vld [vmem:[#allocation4 + $0x5b0] ss:$8 sps:$4 sm:$0xff]  }
 0x3f8   :  { %v4103_v2 = vmax.f32 %v3826_v32, %v3829_v23  ;;  %v16667_v58 = vpack.c.bf16 %v4236_v48, %v4233_v26  ;;  %v4114_v0 = vmax.f32 %v3715_v33, %v3719_v3  ;;  %4838 = vmatpush1.bf16.msra.mxu1 %v14019_v16  ;;  %5273 = vmatpush1.bf16.msra.mxu0 %v14022_v52  ;;  %v14028_v45 = vld [vmem:[#allocation4 + $0x5a0] ss:$8 sps:$4 sm:$0xff]   ;;  %v14033_v26 = vld [vmem:[#allocation4 + $0x434] ss:$8 sps:$4 sm:$0xff]   ;;  %v14039_v33 = vld [vmem:[#allocation4 + $0x444] ss:$8 sps:$4 sm:$0xff]  }
 0x3f9   :  { %v4142_v10 = vmax.f32 %v17148_v43, %v4106_v5  ;;  %v4149_v55 = vmax.f32 %v17149_v39, %v4113_v47  ;;  %4839 = vmatprep.subr.bf16.mxu1 %v14027_v19  ;;  %5274 = vmatprep.subr.bf16.mxu0 %v14030_v34  ;;  %v14036_v32 = vld [vmem:[#allocation4 + $0x5b4] ss:$8 sps:$4 sm:$0xff]   ;;  %v14031_v47 = vld [vmem:[#allocation4 + $0x430] ss:$8 sps:$4 sm:$0xff]   ;;  %v14042_v35 = vld [vmem:[#allocation4 + $0x5c4] ss:$8 sps:$4 sm:$0xff]  }
 0x3fa   :  { %v4139_v9 = vmax.f32 %v17150_v50, %v4103_v2  ;;  %v4150_v3 = vmax.f32 %v17151_v6, %v4114_v0 }
 0x3fb   :  { %v16679_v56 = vadd.f32 %v16663_v7, %v4142_v10  ;;  %v16685_v5 = vadd.f32 %v16581_v42, %v4149_v55 }
 0x3fc   :  { %v4192_v27 = vadd.f32 %v16663_v7, %v4139_v9  ;;  %v12927_v37 = vpop.f32.mrb[48].mxu0  ;;  %v16690_v16 = vadd.f32 %v16587_v17, %v4150_v3  ;;  %v3723_v52 = vpop.f32.mrb[48].mxu1  ;;  %4840 = vmatpush1.bf16.msra.mxu1 %v14025_v11  ;;  %5275 = vmatpush1.bf16.msra.mxu0 %v14028_v45  ;;  %v14037_v3 = vld [vmem:[#allocation4 + $0x440] ss:$8 sps:$4 sm:$0xff]  }
 0x3fd   :  { %v4231_v14 = vmax.f32 %v16679_v56, 0.0  ;;  %v3842_v19 = vpop.f32.mrb[49].mxu0  ;;  %v4238_v30 = vmax.f32 %v16685_v5, 0.0  ;;  %v3725_v55 = vpop.f32.mrb[49].mxu1  ;;  %4841 = vmatprep.subr.bf16.mxu1 %v14033_v26  ;;  %5276 = vmatprep.subr.bf16.mxu0 %v14036_v32  ;;  %v17152_v26 = vmax.f32 %v16429_v12, %v16439_v18  ;;  %v14040_v5 = vld [vmem:[#allocation4 + $0x5c0] ss:$8 sps:$4 sm:$0xff]   ;;  %v17155_v18 = vmax.f32 %v16479_v62, %v16489_v20 }
 0x3fe   :  { %v4228_v40 = vmax.f32 %v4192_v27, 0.0  ;;  %v12928_v34 = vpop.f32.mrb[50].mxu0  ;;  %v4239_v23 = vmax.f32 %v16690_v16, 0.0  ;;  %v3727_v2 = vpop.f32.mrb[50].mxu1  ;;  %v17157_v56 = vmax.f32 %v16499_v59, %v16507_v21 }
 0x3ff   :  { %v4112_v43 = vmax.f32 %v12927_v37, %v12928_v34  ;;  %v3845_v10 = vpop.f32.mrb[51].mxu0  ;;  %v16694_v0 = vpack.c.bf16 %v4238_v30, %v4235_v44  ;;  %v4116_v45 = vmax.f32 %v3723_v52, %v3727_v2  ;;  %v3729_v39 = vpop.f32.mrb[51].mxu1  ;;  %v17153_v44 = vmax.f32 %v16475_v60, %v16483_v1  ;;  %v14048_v52 = vld [vmem:[#allocation4 + $0x5d4] ss:$8 sps:$4 sm:$0xff]   ;;  %v14043_v1 = vld [vmem:[#allocation4 + $0x450] ss:$8 sps:$4 sm:$0xff]  }
 0x400   :  { %v16698_v11 = vpack.c.bf16 %v4231_v14, %v4228_v40  ;;  %v4109_v50 = vmax.f32 %v3842_v19, %v3845_v10  ;;  %v16700_v9 = vpack.c.bf16 %v4239_v23, %v4236_v48  ;;  %v4117_v6 = vmax.f32 %v3725_v55, %v3729_v39  ;;  %4842 = vmatpush1.bf16.msra.mxu1 %v14031_v47  ;;  %v14045_v48 = vld [vmem:[#allocation4 + $0x454] ss:$8 sps:$4 sm:$0xff]   ;;  %v14051_v2 = vld [vmem:[#allocation4 + $0x464] ss:$8 sps:$4 sm:$0xff]  }
 0x401   :  { %v4148_v32 = vmax.f32 %v17152_v26, %v4112_v43  ;;  %5277 = vmatpush1.bf16.msra.mxu0 %v14034_v4  ;;  %v4152_v27 = vmax.f32 %v17153_v44, %v4116_v45  ;;  %v17154_v37 = vmax.f32 %v16433_v13, %v16447_v22  ;;  %4843 = vmatprep.subr.bf16.mxu1 %v14039_v33  ;;  %v14046_v33 = vld [vmem:[#allocation4 + $0x5d0] ss:$8 sps:$4 sm:$0xff]  }
 0x402   :  { %5278 = vmatprep.subr.bf16.mxu0 %v14042_v35  ;;  %v4153_v47 = vmax.f32 %v17155_v18, %v4117_v6  ;;  %4804 = vmatprep.mubr.bf16.mxu1 %v16700_v9  ;;  %v14057_v18 = vld [vmem:[#allocation4 + $0x474] ss:$8 sps:$4 sm:$0xff]  }
 0x403   :  { %v4145_v16 = vmax.f32 %v17154_v37, %v4109_v50  ;;  %v16712_v12 = vadd.f32 %v16663_v7, %v4148_v32  ;;  %5239 = vmatprep.mubr.bf16.mxu0 %v16700_v9  ;;  %v16720_v60 = vadd.f32 %v16581_v42, %v4152_v27  ;;  %4805 = vmatmul.mubr.bf16.gmra.mrb[80].mxu1 %v16694_v0  ;;  %v14054_v50 = vld [vmem:[#allocation4 + $0x5e4] ss:$8 sps:$4 sm:$0xff]  }
 0x404   :  { %5240 = vmatmul.mubr.bf16.gmra.mrb[76].mxu0 %v16694_v0  ;;  %v12931_v22 = vpop.f32.mrb[52].mxu0  ;;  %v16727_v62 = vadd.f32 %v16587_v17, %v4153_v47  ;;  %v3733_v20 = vpop.f32.mrb[52].mxu1  ;;  %4844 = vmatpush1.bf16.msra.mxu1 %v14037_v3  ;;  %v17156_v27 = vmax.f32 %v16453_v29, %v16463_v38  ;;  %v17159_v38 = vmax.f32 %v16457_v31, %v16471_v28 }
 0x405   :  { %v4198_v13 = vadd.f32 %v16663_v7, %v4145_v16  ;;  %v4237_v4 = vmax.f32 %v16712_v12, 0.0  ;;  %v3858_v19 = vpop.f32.mrb[53].mxu0  ;;  %5279 = vmatpush1.bf16.msra.mxu0 %v14040_v5  ;;  %v4241_v40 = vmax.f32 %v16720_v60, 0.0  ;;  %v3735_v34 = vpop.f32.mrb[53].mxu1  ;;  %4845 = vmatprep.subr.bf16.mxu1 %v14045_v48 }
 0x406   :  { %v12932_v35 = vpop.f32.mrb[54].mxu0  ;;  %5280 = vmatprep.subr.bf16.mxu0 %v14048_v52  ;;  %v4242_v43 = vmax.f32 %v16727_v62, 0.0  ;;  %v3737_v10 = vpop.f32.mrb[54].mxu1  ;;  %v14052_v52 = vld [vmem:[#allocation4 + $0x5e0] ss:$8 sps:$4 sm:$0xff]  }
 0x407   :  { %v4234_v55 = vmax.f32 %v4198_v13, 0.0  ;;  %v4118_v45 = vmax.f32 %v12931_v22, %v12932_v35  ;;  %v3861_v39 = vpop.f32.mrb[55].mxu0  ;;  %v16731_v26 = vpack.c.bf16 %v4241_v40, %v4238_v30  ;;  %v4119_v3 = vmax.f32 %v3733_v20, %v3737_v10  ;;  %v3739_v5 = vpop.f32.mrb[55].mxu1  ;;  %v14049_v30 = vld [vmem:[#allocation4 + $0x460] ss:$8 sps:$4 sm:$0xff]  }
 0x408   :  { %v16741_v44 = vpack.c.bf16 %v4242_v43, %v4239_v23  ;;  %v4120_v16 = vmax.f32 %v3735_v34, %v3739_v5  ;;  %v4115_v48 = vmax.f32 %v3858_v19, %v3861_v39  ;;  %4846 = vmatpush1.bf16.msra.mxu1 %v14043_v1  ;;  %v17158_v23 = vmax.f32 %v16503_v25, %v16513_v24  ;;  %v14060_v13 = vld [vmem:[#allocation4 + $0x5f4] ss:$8 sps:$4 sm:$0xff]   ;;  %v14055_v22 = vld [vmem:[#allocation4 + $0x470] ss:$8 sps:$4 sm:$0xff]  }
 0x409   :  { %v16735_v32 = vpack.c.bf16 %v4234_v55, %v4231_v14  ;;  %v16739_v6 = vpack.c.bf16 %v4237_v4, %v4234_v55  ;;  %v4154_v37 = vmax.f32 %v17156_v27, %v4118_v45  ;;  %v4155_v14 = vmax.f32 %v17157_v56, %v4119_v3  ;;  %5281 = vmatpush1.bf16.msra.mxu0 %v14046_v33  ;;  %v14058_v24 = vld [vmem:[#allocation4 + $0x5f0] ss:$8 sps:$4 sm:$0xff]   ;;  %v14063_v55 = vld [vmem:[#allocation4 + $0x4] ss:$8 sps:$4 sm:$0xff]  }
 0x40a   :  { %4847 = vmatprep.subr.bf16.mxu1 %v14051_v2  ;;  %v4156_v29 = vmax.f32 %v17158_v23, %v4120_v16  ;;  %v4151_v60 = vmax.f32 %v17159_v38, %v4115_v48  ;;  %5282 = vmatprep.subr.bf16.mxu0 %v14054_v50  ;;  %v17160_v48 = vmax.f32 %v16477_v61, %v16487_v15  ;;  %v14066_v56 = vld [vmem:[#allocation4 + $0x184] ss:$8 sps:$4 sm:$0xff]  }
 0x40b   :  { %v16750_v47 = vadd.f32 %v16663_v7, %v4154_v37  ;;  %v4208_v21 = vadd.f32 %v16581_v42, %v4155_v14  ;;  %v17161_v14 = vld [vmem:[#allocation23_spill] sm:$0xff]  ;;  %v17164_v23 = vld [vmem:[#allocation17_spill] sm:$0xff] }
 0x40c   :  { %v12935_v59 = vpop.f32.mrb[56].mxu0  ;;  %v16761_v62 = vadd.f32 %v16587_v17, %v4156_v29  ;;  %v4204_v20 = vadd.f32 %v16663_v7, %v4151_v60  ;;  %v3743_v19 = vpop.f32.mrb[56].mxu1  ;;  %4848 = vmatpush1.bf16.msra.mxu1 %v14049_v30  ;;  %v17167_v15 = vld [vmem:[#allocation25_spill] sm:$0xff] }
 0x40d   :  { %v4243_v1 = vmax.f32 %v16750_v47, 0.0  ;;  %v3874_v25 = vpop.f32.mrb[57].mxu0  ;;  %v4244_v33 = vmax.f32 %v4208_v21, 0.0  ;;  %v3745_v31 = vpop.f32.mrb[57].mxu1  ;;  %5283 = vmatpush1.bf16.msra.mxu0 %v14052_v52  ;;  %4849 = vmatprep.subr.bf16.mxu1 %v14057_v18 }
 0x40e   :  { %v12936_v28 = vpop.f32.mrb[58].mxu0  ;;  %v4245_v34 = vmax.f32 %v16761_v62, 0.0  ;;  %v4240_v35 = vmax.f32 %v4204_v20, 0.0  ;;  %v3747_v2 = vpop.f32.mrb[58].mxu1  ;;  %5284 = vmatprep.subr.bf16.mxu0 %v14060_v13 }
 0x40f   :  { %v4124_v10 = vmax.f32 %v12935_v59, %v12936_v28  ;;  %v3877_v45 = vpop.f32.mrb[59].mxu0  ;;  %v16765_v39 = vpack.c.bf16 %v4244_v33, %v4241_v40  ;;  %v4122_v50 = vmax.f32 %v3743_v19, %v3747_v2  ;;  %v3749_v3 = vpop.f32.mrb[59].mxu1  ;;  %v17162_v40 = vld [vmem:[#allocation27_spill] sm:$0xff] }
 0x410   :  { %v4121_v5 = vmax.f32 %v3874_v25, %v3877_v45  ;;  %v16767_v27 = vpack.c.bf16 %v4245_v34, %v4242_v43  ;;  %v16771_v37 = vpack.c.bf16 %v4240_v35, %v4237_v4  ;;  %v16773_v16 = vpack.c.bf16 %v4243_v1, %v4240_v35  ;;  %4850 = vmatpush1.bf16.msra.mxu1 %v14055_v22  ;;  %v17165_v43 = vld [vmem:[#allocation18_spill] sm:$0xff]  ;;  %v17168_v4 = vld [vmem:[#allocation29_spill] sm:$0xff] }
 0x411   :  { %v4160_v30 = vmax.f32 %v17160_v48, %v4124_v10  ;;  %v17163_v52 = vmax.f32 %v17161_v14, %v17162_v40  ;;  %v4123_v47 = vmax.f32 %v3745_v31, %v3749_v3  ;;  %v17166_v29 = vmax.f32 %v17164_v23, %v17165_v43  ;;  %5285 = vmatpush1.bf16.msra.mxu0 %v14058_v24  ;;  %v17173_v23 = vld [vmem:[#allocation31_spill] sm:$0xff]  ;;  %v17174_v43 = vld [vmem:[#allocation33_spill] sm:$0xff] }
 0x412   :  { %5607 = vmatprep.subr.bf16.mxu1 %v14063_v55  ;;  %4814 = vmatprep.mubr.bf16.mxu1 %v16767_v27  ;;  %v17169_v60 = vmax.f32 %v17167_v15, %v17168_v4  ;;  %v17179_v4 = vld [vmem:[#allocation20_spill] sm:$0xff] }
 0x413   :  { %v4158_v18 = vmax.f32 %v17163_v52, %v4122_v50  ;;  %v4157_v38 = vmax.f32 %v17166_v29, %v4121_v5  ;;  %v4213_v12 = vadd.f32 %v16663_v7, %v4160_v30  ;;  %5249 = vmatprep.mubr.bf16.mxu0 %v16767_v27  ;;  %4815 = vmatmul.mubr.bf16.gmra.mrb[84].mxu1 %v16765_v39  ;;  %v17170_v30 = vld [vmem:[#allocation19_spill] sm:$0xff] }
 0x414   :  { %v4159_v13 = vmax.f32 %v17169_v60, %v4123_v47  ;;  %5250 = vmatmul.mubr.bf16.gmra.mrb[80].mxu0 %v16765_v39  ;;  %v12939_v59 = vpop.f32.mrb[60].mxu0  ;;  %v3753_v62 = vpop.f32.mrb[60].mxu1  ;;  %5993 = vmatprep.subr.bf16.mxu0 %v14066_v56  ;;  %v17171_v56 = vld [vmem:[#allocation21_spill] sm:$0xff]  ;;  %v17175_v29 = vmax.f32 %v17173_v23, %v17174_v43  ;;  %v17180_v60 = vld [vmem:[#allocation22_spill] sm:$0xff] }
 0x415   :  { %v4211_v61 = vadd.f32 %v16581_v42, %v4158_v18  ;;  %v4210_v21 = vadd.f32 %v16663_v7, %v4157_v38  ;;  %v4249_v22 = vmax.f32 %v4213_v12, 0.0  ;;  %v3890_v20 = vpop.f32.mrb[61].mxu0  ;;  %v3755_v31 = vpop.f32.mrb[61].mxu1  ;;  %v17172_v14 = vmax.f32 %v17170_v30, %v17171_v56  ;;  %v17177_v12 = vld [vmem:[#allocation34_spill] sm:$0xff] }
 0x416   :  { %v4212_v25 = vadd.f32 %v16587_v17, %v4159_v13  ;;  %v12940_v28 = vpop.f32.mrb[62].mxu0  ;;  %v3757_v55 = vpop.f32.mrb[62].mxu1  ;;  %v17181_v13 = vmax.f32 %v17179_v4, %v17180_v60 }
 0x417   :  { %v4247_v19 = vmax.f32 %v4211_v61, 0.0  ;;  %v4246_v24 = vmax.f32 %v4210_v21, 0.0  ;;  %v4130_v35 = vmax.f32 %v12939_v59, %v12940_v28  ;;  %v3893_v2 = vpop.f32.mrb[63].mxu0  ;;  %v3759_v5 = vpop.f32.mrb[63].mxu1  ;;  %v4125_v48 = vmax.f32 %v3753_v62, %v3757_v55 }
 0x418   :  { %v4248_v45 = vmax.f32 %v4212_v25, 0.0  ;;  %v4126_v52 = vmax.f32 %v3755_v31, %v3759_v5  ;;  %v4127_v18 = vmax.f32 %v3890_v20, %v3893_v2 }
 0x419   :  { %v16795_v10 = vpack.c.bf16 %v4247_v19, %v4244_v33  ;;  %v16797_v50 = vpack.c.bf16 %v4246_v24, %v4243_v1  ;;  %v16799_v3 = vpack.c.bf16 %v4249_v22, %v4246_v24  ;;  %v4166_v40 = vmax.f32 %v17172_v14, %v4130_v35  ;;  %v17176_v1 = vld [vmem:[#allocation32_spill] sm:$0xff] }
 0x41a   :  { %v16804_v47 = vpack.c.bf16 %v4248_v45, %v4245_v34  ;;  %v4161_v33 = vmax.f32 %v17175_v29, %v4125_v48  ;;  %v17178_v61 = vmax.f32 %v17176_v1, %v17177_v12  ;;  %v4163_v21 = vmax.f32 %v17181_v13, %v4127_v18 }
 0x41b   :  { %v4219_v38 = vadd.f32 %v16663_v7, %v4166_v40 }
 0x41c   :  { %v4162_v15 = vmax.f32 %v17178_v61, %v4126_v52  ;;  %v12943_v59 = vpop.f32.mrb[64].mxu0  ;;  %v4214_v62 = vadd.f32 %v16581_v42, %v4161_v33  ;;  %v4216_v25 = vadd.f32 %v16663_v7, %v4163_v21  ;;  %v3763_v24 = vpop.f32.mrb[64].mxu1  ;;  %v17182_v33 = vld [vmem:[#allocation37_spill] sm:$0xff]  ;;  %v17185_v61 = vld [vmem:[#allocation24_spill] sm:$0xff]  ;;  %v17188_v21 = vld [vmem:[#allocation26_spill] sm:$0xff] }
 0x41d   :  { %v4255_v20 = vmax.f32 %v4219_v38, 0.0  ;;  %v3906_v31 = vpop.f32.mrb[65].mxu0  ;;  %v3765_v28 = vpop.f32.mrb[65].mxu1  ;;  %v17183_v38 = vld [vmem:[#allocation38_spill] sm:$0xff] }
 0x41e   :  { %v4215_v34 = vadd.f32 %v16587_v17, %v4162_v15  ;;  %v12944_v55 = vpop.f32.mrb[66].mxu0  ;;  %v4250_v35 = vmax.f32 %v4214_v62, 0.0  ;;  %v4252_v5 = vmax.f32 %v4216_v25, 0.0  ;;  %v3767_v48 = vpop.f32.mrb[66].mxu1  ;;  %v17184_v1 = vmax.f32 %v17182_v33, %v17183_v38  ;;  %v17186_v15 = vld [vmem:[#allocation28_spill] sm:$0xff] }
 0x41f   :  { %v4136_v30 = vmax.f32 %v12943_v59, %v12944_v55  ;;  %v3909_v56 = vpop.f32.mrb[67].mxu0  ;;  %v4128_v14 = vmax.f32 %v3763_v24, %v3767_v48  ;;  %v3769_v40 = vpop.f32.mrb[67].mxu1  ;;  %v17187_v4 = vmax.f32 %v17185_v61, %v17186_v15  ;;  %v17189_v59 = vld [vmem:[#allocation30_spill] sm:$0xff]  ;;  %v17193_v55 = vmov 0  }
 0x420   :  { %v4251_v2 = vmax.f32 %v4215_v34, 0.0  ;;  %v4133_v52 = vmax.f32 %v3906_v31, %v3909_v56  ;;  %v16819_v18 = vpack.c.bf16 %v4250_v35, %v4247_v19  ;;  %v16823_v43 = vpack.c.bf16 %v4252_v5, %v4249_v22  ;;  %v17191_v34 = vld [vmem:[#allocation39_spill] sm:$0xff] }
 0x421   :  { %v16825_v29 = vpack.c.bf16 %v4255_v20, %v4252_v5  ;;  %v4164_v12 = vmax.f32 %v17184_v1, %v4128_v14  ;;  %v4172_v60 = vmax.f32 %v17187_v4, %v4136_v30  ;;  %v4129_v13 = vmax.f32 %v3765_v28, %v3769_v40  ;;  %v17194_v4 = vld [vmem:[#allocation40_spill] sm:$0xff] }
 0x422   :  { %v16821_v23 = vpack.c.bf16 %v4251_v2, %v4248_v45  ;;  %v17190_v62 = vmax.f32 %v17188_v21, %v17189_v59  ;;  %v17192_v25 = vmax.f32 %v16577_v46, %v17191_v34  ;;  %v14064_v21 = vld [vmem:[#allocation4 + $0x180] ss:$8 sps:$4 sm:$0xff]   ;;  %v14069_v59 = vld [vmem:[#allocation4 + $0x14] ss:$8 sps:$4 sm:$0xff]  }
 0x423   :  { %v4217_v22 = vadd.f32 %v16581_v42, %v4164_v12  ;;  %v4225_v45 = vadd.f32 %v16663_v7, %v4172_v60  ;;  %v14061_v12 = vld [vmem:[#allocation4] ss:$8 sps:$4 sm:$0xff]   ;;  %v17195_v60 = vmax.f32 %v16604_v41, %v17194_v4 }
 0x424   :  { %v4169_v19 = vmax.f32 %v17190_v62, %v4133_v52  ;;  %4824 = vmatprep.mubr.bf16.mxu1 %v16821_v23  ;;  %5259 = vmatprep.mubr.bf16.mxu0 %v16821_v23  ;;  %v4165_v24 = vmax.f32 %v17192_v25, %v4129_v13  ;;  %v3773_v28 = vpop.f32.mrb[68].mxu1  ;;  %v14070_v25 = vld [vmem:[#allocation4 + $0x190] ss:$8 sps:$4 sm:$0xff]  }
 0x425   :  { %4825 = vmatmul.mubr.bf16.gmra.mrb[88].mxu1 %v16819_v18  ;;  %5260 = vmatmul.mubr.bf16.gmra.mrb[84].mxu0 %v16819_v18  ;;  %v4253_v5 = vmax.f32 %v4217_v22, 0.0  ;;  %v4261_v48 = vmax.f32 %v4225_v45, 0.0  ;;  %v3775_v14 = vpop.f32.mrb[69].mxu1  ;;  %v14067_v45 = vld [vmem:[#allocation4 + $0x10] ss:$8 sps:$4 sm:$0xff]  }
 0x426   :  { %v4222_v31 = vadd.f32 %v16663_v7, %v4169_v19  ;;  %4867 = vmatprep.mubr.bf16.mxu1 %v17193_v55  ;;  %v4218_v30 = vadd.f32 %v16587_v17, %v4165_v24  ;;  %5302 = vmatprep.mubr.bf16.mxu0 %v17193_v55  ;;  %v3777_v40 = vpop.f32.mrb[70].mxu1  ;;  %v14072_v19 = vld [vmem:[#allocation4 + $0x194] ss:$8 sps:$4 sm:$0xff]   ;;  %v14075_v24 = vld [vmem:[#allocation4 + $0x24] ss:$8 sps:$4 sm:$0xff]  }
 0x427   :  { %v16849_v46 = vpack.c.bf16 %v4253_v5, %v4250_v35  ;;  %v4131_v7 = vmax.f32 %v3773_v28, %v3777_v40  ;;  %v3779_v33 = vpop.f32.mrb[71].mxu1  ;;  %v17196_v35 = vmax.f32 %v16607_v54, %v16613_v51  ;;  %v17197_v40 = vmax.f32 %v16630_v53, %v16636_v57  ;;  %v14079_v53 = vld [vmem:[#allocation4 + $0x30] ss:$8 sps:$4 sm:$0xff]  }
 0x428   :  { %v4258_v56 = vmax.f32 %v4222_v31, 0.0  ;;  %v4254_v52 = vmax.f32 %v4218_v30, 0.0  ;;  %v4132_v1 = vmax.f32 %v3775_v14, %v3779_v33  ;;  %v14078_v31 = vld [vmem:[#allocation4 + $0x1a4] ss:$8 sps:$4 sm:$0xff]   ;;  %v14076_v33 = vld [vmem:[#allocation4 + $0x1a0] ss:$8 sps:$4 sm:$0xff]  }
 0x429   :  { %v4167_v13 = vmax.f32 %v17195_v60, %v4131_v7 }
 0x42a   :  { %v16851_v38 = vpack.c.bf16 %v4258_v56, %v4255_v20  ;;  %v16853_v61 = vpack.c.bf16 %v4261_v48, %v4258_v56  ;;  %v16855_v15 = vpack.c.bf16 %v4254_v52, %v4251_v2  ;;  %v4168_v62 = vmax.f32 %v17196_v35, %v4132_v1  ;;  %v14073_v56 = vld [vmem:[#allocation4 + $0x20] ss:$8 sps:$4 sm:$0xff]   ;;  %v14081_v1 = vld [vmem:[#allocation4 + $0x34] ss:$8 sps:$4 sm:$0xff]  }
 0x42b   :  { %v4220_v20 = vadd.f32 %v16581_v42, %v4167_v13  ;;  %v14082_v13 = vld [vmem:[#allocation4 + $0x1b0] ss:$8 sps:$4 sm:$0xff]   ;;  %v14088_v35 = vld [vmem:[#allocation4 + $0x1c0] ss:$8 sps:$4 sm:$0xff]  }
 0x42c   :  { %v4221_v22 = vadd.f32 %v16587_v17, %v4168_v62  ;;  %v3783_v2 = vpop.f32.mrb[72].mxu1  ;;  %v14093_v62 = vld [vmem:[#allocation4 + $0x54] ss:$8 sps:$4 sm:$0xff]  }
 0x42d   :  { %4868 = vmatmul.mubr.bf16.vlgmr.msra.gmra.mrb[76].mxu1 %v16735_v32  ;;  %5303 = vmatmul.mubr.bf16.vlgmr.msra.gmra.mrb[72].mxu0 %v16735_v32  ;;  %v4256_v41 = vmax.f32 %v4220_v20, 0.0  ;;  %v3785_v34 = vpop.f32.mrb[73].mxu1  ;;  %v14091_v20 = vld [vmem:[#allocation4 + $0x50] ss:$8 sps:$4 sm:$0xff]  }
 0x42e   :  { %5608 = vmatpush1.bf16.msra.mxu1 %v14061_v12  ;;  %5994 = vmatpush1.bf16.msra.mxu0 %v14064_v21  ;;  %v4257_v54 = vmax.f32 %v4221_v22, 0.0  ;;  %v3787_v51 = vpop.f32.mrb[74].mxu1  ;;  %v17198_v12 = vmax.f32 %v16633_v36, %v16639_v49  ;;  %v14087_v21 = vld [vmem:[#allocation4 + $0x44] ss:$8 sps:$4 sm:$0xff]   ;;  %v14094_v22 = vld [vmem:[#allocation4 + $0x1d0] ss:$8 sps:$4 sm:$0xff]  }
 0x42f   :  { %5609 = vmatprep.subr.bf16.mxu1 %v14069_v59  ;;  %5995 = vmatprep.subr.bf16.mxu0 %v14072_v19  ;;  %v4134_v28 = vmax.f32 %v3783_v2, %v3787_v51  ;;  %v3789_v48 = vpop.f32.mrb[75].mxu1  ;;  %v16869_v32 = vpack.c.bf16 %v4256_v41, %v4253_v5  ;;  %v14084_v5 = vld [vmem:[#allocation4 + $0x1b4] ss:$8 sps:$4 sm:$0xff]   ;;  %v14090_v36 = vld [vmem:[#allocation4 + $0x1c4] ss:$8 sps:$4 sm:$0xff]  }
 0x430   :  { %4877 = vmatprep.mubr.bf16.mxu1 %v17193_v55  ;;  %5312 = vmatprep.mubr.bf16.mxu0 %v17193_v55  ;;  %v4135_v30 = vmax.f32 %v3785_v34, %v3789_v48  ;;  %v16871_v14 = vpack.c.bf16 %v4257_v54, %v4254_v52  ;;  %v14096_v19 = vld [vmem:[#allocation4 + $0x1d4] ss:$8 sps:$4 sm:$0xff]   ;;  %v14099_v2 = vld [vmem:[#allocation4 + $0x64] ss:$8 sps:$4 sm:$0xff]   ;;  %v14100_v34 = vld [vmem:[#allocation4 + $0x1e0] ss:$8 sps:$4 sm:$0xff]  }
 0x431   :  { %v4170_v7 = vmax.f32 %v17197_v40, %v4134_v28  ;;  %v17199_v51 = vld [vmem:[#allocation42_spill] sm:$0xff]  ;;  %v14111_v28 = vld [vmem:[#allocation4 + $0x84] ss:$8 sps:$4 sm:$0xff]  }
 0x432   :  { %5610 = vmatpush1.bf16.msra.mxu1 %v14067_v45  ;;  %5996 = vmatpush1.bf16.msra.mxu0 %v14070_v25  ;;  %v4171_v4 = vmax.f32 %v17198_v12, %v4135_v30  ;;  %v14102_v45 = vld [vmem:[#allocation4 + $0x1e4] ss:$8 sps:$4 sm:$0xff]   ;;  %v14105_v25 = vld [vmem:[#allocation4 + $0x74] ss:$8 sps:$4 sm:$0xff]   ;;  %v14109_v30 = vld [vmem:[#allocation4 + $0x80] ss:$8 sps:$4 sm:$0xff]  }
 0x433   :  { %5611 = vmatprep.subr.bf16.mxu1 %v14075_v24  ;;  %5997 = vmatprep.subr.bf16.mxu0 %v14078_v31  ;;  %v4223_v60 = vadd.f32 %v16581_v42, %v4170_v7  ;;  %v14108_v24 = vld [vmem:[#allocation4 + $0x1f4] ss:$8 sps:$4 sm:$0xff]   ;;  %v14106_v31 = vld [vmem:[#allocation4 + $0x1f0] ss:$8 sps:$4 sm:$0xff]   ;;  %v14114_v48 = vld [vmem:[#allocation4 + $0x204] ss:$8 sps:$4 sm:$0xff]  }
 0x434   :  { %v4224_v52 = vadd.f32 %v16587_v17, %v4171_v4  ;;  %v14085_v17 = vld [vmem:[#allocation4 + $0x40] ss:$8 sps:$4 sm:$0xff]   ;;  %v14117_v40 = vld [vmem:[#allocation4 + $0x94] ss:$8 sps:$4 sm:$0xff]   ;;  %v14123_v12 = vld [vmem:[#allocation4 + $0xa4] ss:$8 sps:$4 sm:$0xff]  }
 0x435   :  { %4878 = vmatmul.mubr.bf16.gmra.mrb[80].mxu1 %v16771_v37  ;;  %5313 = vmatmul.mubr.bf16.gmra.mrb[76].mxu0 %v16771_v37  ;;  %v4259_v57 = vmax.f32 %v4223_v60, 0.0  ;;  %v14120_v7 = vld [vmem:[#allocation4 + $0x214] ss:$8 sps:$4 sm:$0xff]   ;;  %v14126_v4 = vld [vmem:[#allocation4 + $0x224] ss:$8 sps:$4 sm:$0xff]  }
 0x436   :  { %5612 = vmatpush1.bf16.msra.mxu1 %v14073_v56  ;;  %5998 = vmatpush1.bf16.msra.mxu0 %v14076_v33  ;;  %v4260_v59 = vmax.f32 %v4224_v52, 0.0  ;;  %v14112_v56 = vld [vmem:[#allocation4 + $0x200] ss:$8 sps:$4 sm:$0xff]   ;;  %v14115_v33 = vld [vmem:[#allocation4 + $0x90] ss:$8 sps:$4 sm:$0xff]  }
 0x437   :  { %5613 = vmatprep.subr.bf16.mxu1 %v14081_v1  ;;  %5999 = vmatprep.subr.bf16.mxu0 %v14084_v5  ;;  %v16885_v42 = vpack.c.bf16 %v4259_v57, %v4256_v41  ;;  %v14097_v41 = vld [vmem:[#allocation4 + $0x60] ss:$8 sps:$4 sm:$0xff]   ;;  %v14118_v1 = vld [vmem:[#allocation4 + $0x210] ss:$8 sps:$4 sm:$0xff]   ;;  %v14129_v52 = vld [vmem:[#allocation4 + $0xb4] ss:$8 sps:$4 sm:$0xff]  }
 0x438   :  { %4887 = vmatprep.mubr.bf16.mxu1 %v17193_v55  ;;  %5322 = vmatprep.mubr.bf16.mxu0 %v17193_v55  ;;  %v16887_v49 = vpack.c.bf16 %v4260_v59, %v4257_v54  ;;  %v14103_v54 = vld [vmem:[#allocation4 + $0x70] ss:$8 sps:$4 sm:$0xff]   ;;  %v14121_v5 = vld [vmem:[#allocation4 + $0xa0] ss:$8 sps:$4 sm:$0xff]   ;;  %v14138_v59 = vld [vmem:[#allocation4 + $0x244] ss:$8 sps:$4 sm:$0xff]  }
 0x439   :  { %v14124_v60 = vld [vmem:[#allocation4 + $0x220] ss:$8 sps:$4 sm:$0xff]   ;;  %v14127_v57 = vld [vmem:[#allocation4 + $0xb0] ss:$8 sps:$4 sm:$0xff]  }
 0x43a   :  { %5614 = vmatpush1.bf16.msra.mxu1 %v14079_v53  ;;  %6000 = vmatpush1.bf16.msra.mxu0 %v14082_v13  ;;  %v14132_v53 = vld [vmem:[#allocation4 + $0x234] ss:$8 sps:$4 sm:$0xff]   ;;  %v14130_v13 = vld [vmem:[#allocation4 + $0x230] ss:$8 sps:$4 sm:$0xff]  }
 0x43b   :  { %5615 = vmatprep.subr.bf16.mxu1 %v14087_v21  ;;  %6001 = vmatprep.subr.bf16.mxu0 %v14090_v36  ;;  %v14135_v21 = vld [vmem:[#allocation4 + $0xc4] ss:$8 sps:$4 sm:$0xff]   ;;  %v14133_v36 = vld [vmem:[#allocation4 + $0xc0] ss:$8 sps:$4 sm:$0xff]  }
 0x43d   :  { %4888 = vmatmul.mubr.bf16.gmra.mrb[84].mxu1 %v16797_v50  ;;  %5323 = vmatmul.mubr.bf16.gmra.mrb[80].mxu0 %v16797_v50 }
 0x43e   :  { %5616 = vmatpush1.bf16.msra.mxu1 %v14085_v17  ;;  %6002 = vmatpush1.bf16.msra.mxu0 %v14088_v35  ;;  %v14136_v17 = vld [vmem:[#allocation4 + $0x240] ss:$8 sps:$4 sm:$0xff]   ;;  %v14141_v35 = vld [vmem:[#allocation4 + $0xd4] ss:$8 sps:$4 sm:$0xff]  }
 0x43f   :  { %5617 = vmatprep.subr.bf16.mxu1 %v14093_v62  ;;  %6003 = vmatprep.subr.bf16.mxu0 %v14096_v19  ;;  %v14144_v62 = vld [vmem:[#allocation4 + $0x254] ss:$8 sps:$4 sm:$0xff]   ;;  %v14139_v19 = vld [vmem:[#allocation4 + $0xd0] ss:$8 sps:$4 sm:$0xff]  }
 0x440   :  { %4897 = vmatprep.mubr.bf16.mxu1 %v17193_v55  ;;  %5332 = vmatprep.mubr.bf16.mxu0 %v17193_v55 }
 0x442   :  { %5618 = vmatpush1.bf16.msra.mxu1 %v14091_v20  ;;  %6004 = vmatpush1.bf16.msra.mxu0 %v14094_v22  ;;  %v14142_v20 = vld [vmem:[#allocation4 + $0x250] ss:$8 sps:$4 sm:$0xff]   ;;  %v14147_v22 = vld [vmem:[#allocation4 + $0xe4] ss:$8 sps:$4 sm:$0xff]  }
 0x443   :  { %5619 = vmatprep.subr.bf16.mxu1 %v14099_v2  ;;  %6005 = vmatprep.subr.bf16.mxu0 %v14102_v45  ;;  %v14150_v2 = vld [vmem:[#allocation4 + $0x264] ss:$8 sps:$4 sm:$0xff]   ;;  %v14145_v45 = vld [vmem:[#allocation4 + $0xe0] ss:$8 sps:$4 sm:$0xff]  }
 0x445   :  { %4898 = vmatmul.mubr.bf16.gmra.mrb[88].mxu1 %v16823_v43  ;;  %5333 = vmatmul.mubr.bf16.gmra.mrb[84].mxu0 %v16823_v43 }
 0x446   :  { %5620 = vmatpush1.bf16.msra.mxu1 %v14097_v41  ;;  %6006 = vmatpush1.bf16.msra.mxu0 %v14100_v34  ;;  %v14148_v41 = vld [vmem:[#allocation4 + $0x260] ss:$8 sps:$4 sm:$0xff]   ;;  %v14153_v34 = vld [vmem:[#allocation4 + $0xf4] ss:$8 sps:$4 sm:$0xff]  }
 0x447   :  { %5639 = vmatprep.mubr.bf16.mxu1 %v17199_v51  ;;  %6025 = vmatprep.mubr.bf16.mxu0 %v17199_v51  ;;  %v14159_v51 = vld [vmem:[#allocation4 + $0x104] ss:$8 sps:$4 sm:$0xff]  }
 0x448   :  { %5621 = vmatprep.subr.bf16.mxu1 %v14105_v25  ;;  %6007 = vmatprep.subr.bf16.mxu0 %v14108_v24  ;;  %v14156_v25 = vld [vmem:[#allocation4 + $0x274] ss:$8 sps:$4 sm:$0xff]   ;;  %v14151_v24 = vld [vmem:[#allocation4 + $0xf0] ss:$8 sps:$4 sm:$0xff]  }
 0x44a   :  { %5622 = vmatpush1.bf16.msra.mxu1 %v14103_v54  ;;  %6008 = vmatpush1.bf16.msra.mxu0 %v14106_v31  ;;  %v14154_v54 = vld [vmem:[#allocation4 + $0x270] ss:$8 sps:$4 sm:$0xff]   ;;  %v14162_v31 = vld [vmem:[#allocation4 + $0x284] ss:$8 sps:$4 sm:$0xff]  }
 0x44b   :  { %5623 = vmatprep.subr.bf16.mxu1 %v14111_v28  ;;  %6009 = vmatprep.subr.bf16.mxu0 %v14114_v48  ;;  %v14157_v28 = vld [vmem:[#allocation4 + $0x100] ss:$8 sps:$4 sm:$0xff]  }
 0x44c   :  { %v14160_v48 = vld [vmem:[#allocation4 + $0x280] ss:$8 sps:$4 sm:$0xff]  }
 0x44e   :  { %5624 = vmatpush1.bf16.msra.mxu1 %v14109_v30  ;;  %6010 = vmatpush1.bf16.msra.mxu0 %v14112_v56  ;;  %v14165_v30 = vld [vmem:[#allocation4 + $0x114] ss:$8 sps:$4 sm:$0xff]   ;;  %v17200_v56 = vld [vmem:[#allocation41_spill] sm:$0xff] }
 0x44f   :  { %5625 = vmatprep.subr.bf16.mxu1 %v14117_v40  ;;  %6011 = vmatprep.subr.bf16.mxu0 %v14120_v7  ;;  %v14168_v40 = vld [vmem:[#allocation4 + $0x294] ss:$8 sps:$4 sm:$0xff]   ;;  %v14163_v7 = vld [vmem:[#allocation4 + $0x110] ss:$8 sps:$4 sm:$0xff]  }
 0x452   :  { %5626 = vmatpush1.bf16.msra.mxu1 %v14115_v33  ;;  %6012 = vmatpush1.bf16.msra.mxu0 %v14118_v1  ;;  %v14166_v33 = vld [vmem:[#allocation4 + $0x290] ss:$8 sps:$4 sm:$0xff]   ;;  %v14171_v1 = vld [vmem:[#allocation4 + $0x124] ss:$8 sps:$4 sm:$0xff]  }
 0x453   :  { %5627 = vmatprep.subr.bf16.mxu1 %v14123_v12  ;;  %6013 = vmatprep.subr.bf16.mxu0 %v14126_v4  ;;  %v14174_v12 = vld [vmem:[#allocation4 + $0x2a4] ss:$8 sps:$4 sm:$0xff]   ;;  %v14169_v4 = vld [vmem:[#allocation4 + $0x120] ss:$8 sps:$4 sm:$0xff]  }
 0x456   :  { %5628 = vmatpush1.bf16.msra.mxu1 %v14121_v5  ;;  %6014 = vmatpush1.bf16.msra.mxu0 %v14124_v60  ;;  %v14172_v5 = vld [vmem:[#allocation4 + $0x2a0] ss:$8 sps:$4 sm:$0xff]   ;;  %v14177_v60 = vld [vmem:[#allocation4 + $0x134] ss:$8 sps:$4 sm:$0xff]  }
 0x457   :  { %5629 = vmatprep.subr.bf16.mxu1 %v14129_v52  ;;  %6015 = vmatprep.subr.bf16.mxu0 %v14132_v53  ;;  %v14180_v52 = vld [vmem:[#allocation4 + $0x2b4] ss:$8 sps:$4 sm:$0xff]   ;;  %v14175_v53 = vld [vmem:[#allocation4 + $0x130] ss:$8 sps:$4 sm:$0xff]  }
 0x45a   :  { %5630 = vmatpush1.bf16.msra.mxu1 %v14127_v57  ;;  %6016 = vmatpush1.bf16.msra.mxu0 %v14130_v13  ;;  %v14178_v57 = vld [vmem:[#allocation4 + $0x2b0] ss:$8 sps:$4 sm:$0xff]   ;;  %v14183_v13 = vld [vmem:[#allocation4 + $0x144] ss:$8 sps:$4 sm:$0xff]  }
 0x45b   :  { %5631 = vmatprep.subr.bf16.mxu1 %v14135_v21  ;;  %6017 = vmatprep.subr.bf16.mxu0 %v14138_v59  ;;  %v14186_v21 = vld [vmem:[#allocation4 + $0x2c4] ss:$8 sps:$4 sm:$0xff]   ;;  %v14181_v59 = vld [vmem:[#allocation4 + $0x140] ss:$8 sps:$4 sm:$0xff]  }
 0x45e   :  { %5632 = vmatpush1.bf16.msra.mxu1 %v14133_v36  ;;  %6018 = vmatpush1.bf16.msra.mxu0 %v14136_v17  ;;  %v14184_v36 = vld [vmem:[#allocation4 + $0x2c0] ss:$8 sps:$4 sm:$0xff]   ;;  %v14189_v17 = vld [vmem:[#allocation4 + $0x154] ss:$8 sps:$4 sm:$0xff]  }
 0x45f   :  { %5633 = vmatprep.subr.bf16.mxu1 %v14141_v35  ;;  %6019 = vmatprep.subr.bf16.mxu0 %v14144_v62  ;;  %v14192_v35 = vld [vmem:[#allocation4 + $0x2d4] ss:$8 sps:$4 sm:$0xff]   ;;  %v14187_v62 = vld [vmem:[#allocation4 + $0x150] ss:$8 sps:$4 sm:$0xff]  }
 0x462   :  { %5634 = vmatpush1.bf16.msra.mxu1 %v14139_v19  ;;  %6020 = vmatpush1.bf16.msra.mxu0 %v14142_v20  ;;  %v14190_v19 = vld [vmem:[#allocation4 + $0x2d0] ss:$8 sps:$4 sm:$0xff]   ;;  %v14195_v20 = vld [vmem:[#allocation4 + $0x164] ss:$8 sps:$4 sm:$0xff]  }
 0x463   :  { %5635 = vmatprep.subr.bf16.mxu1 %v14147_v22  ;;  %6021 = vmatprep.subr.bf16.mxu0 %v14150_v2  ;;  %v14198_v22 = vld [vmem:[#allocation4 + $0x2e4] ss:$8 sps:$4 sm:$0xff]   ;;  %v14193_v2 = vld [vmem:[#allocation4 + $0x160] ss:$8 sps:$4 sm:$0xff]  }
 0x466   :  { %5636 = vmatpush1.bf16.msra.mxu1 %v14145_v45  ;;  %6022 = vmatpush1.bf16.msra.mxu0 %v14148_v41  ;;  %v14196_v45 = vld [vmem:[#allocation4 + $0x2e0] ss:$8 sps:$4 sm:$0xff]   ;;  %v14201_v41 = vld [vmem:[#allocation4 + $0x174] ss:$8 sps:$4 sm:$0xff]  }
 0x467   :  { %5637 = vmatprep.subr.bf16.mxu1 %v14153_v34  ;;  %6023 = vmatprep.subr.bf16.mxu0 %v14156_v25  ;;  %v14204_v34 = vld [vmem:[#allocation4 + $0x2f4] ss:$8 sps:$4 sm:$0xff]   ;;  %v14199_v25 = vld [vmem:[#allocation4 + $0x170] ss:$8 sps:$4 sm:$0xff]  }
 0x46a   :  { %5638 = vmatpush1.bf16.msra.mxu1 %v14151_v24  ;;  %6024 = vmatpush1.bf16.msra.mxu0 %v14154_v54  ;;  %v14202_v24 = vld [vmem:[#allocation4 + $0x2f0] ss:$8 sps:$4 sm:$0xff]   ;;  %v14207_v54 = vld [vmem:[#allocation4 + $0x604] ss:$8 sps:$4 sm:$0xff]  }
 0x46b   :  { %5680 = vmatprep.subr.bf16.mxu1 %v14159_v51  ;;  %6066 = vmatprep.subr.bf16.mxu0 %v14162_v31  ;;  %v14210_v51 = vld [vmem:[#allocation4 + $0x784] ss:$8 sps:$4 sm:$0xff]   ;;  %v14205_v31 = vld [vmem:[#allocation4 + $0x600] ss:$8 sps:$4 sm:$0xff]  }
 0x46d   :  { %5640 = vmatmul.mubr.bf16.vlgmr.msra.gmra.mrb[76].mxu1 %v17200_v56  ;;  %6026 = vmatmul.mubr.bf16.vlgmr.msra.gmra.mrb[72].mxu0 %v17200_v56  ;;  %v14211_v56 = vld [vmem:[#allocation4 + $0x610] ss:$8 sps:$4 sm:$0xff]  }
 0x46e   :  { %5649 = vmatprep.mubr.bf16.mxu1 %v16667_v58  ;;  %5681 = vmatpush1.bf16.msra.mxu1 %v14157_v28  ;;  %v14208_v28 = vld [vmem:[#allocation4 + $0x780] ss:$8 sps:$4 sm:$0xff]  }
 0x46f   :  { %6035 = vmatprep.mubr.bf16.mxu0 %v16667_v58  ;;  %6067 = vmatpush1.bf16.msra.mxu0 %v14160_v48  ;;  %v14213_v48 = vld [vmem:[#allocation4 + $0x614] ss:$8 sps:$4 sm:$0xff]  }
 0x470   :  { %5682 = vmatprep.subr.bf16.mxu1 %v14165_v30  ;;  %6068 = vmatprep.subr.bf16.mxu0 %v14168_v40  ;;  %v14216_v30 = vld [vmem:[#allocation4 + $0x794] ss:$8 sps:$4 sm:$0xff]   ;;  %v14214_v40 = vld [vmem:[#allocation4 + $0x790] ss:$8 sps:$4 sm:$0xff]  }
 0x472   :  { %5683 = vmatpush1.bf16.msra.mxu1 %v14163_v7  ;;  %v14219_v7 = vld [vmem:[#allocation4 + $0x624] ss:$8 sps:$4 sm:$0xff]  }
 0x473   :  { %6069 = vmatpush1.bf16.msra.mxu0 %v14166_v33  ;;  %5684 = vmatprep.subr.bf16.mxu1 %v14171_v1  ;;  %v14222_v33 = vld [vmem:[#allocation4 + $0x7a4] ss:$8 sps:$4 sm:$0xff]   ;;  %v14217_v1 = vld [vmem:[#allocation4 + $0x620] ss:$8 sps:$4 sm:$0xff]  }
 0x474   :  { %6070 = vmatprep.subr.bf16.mxu0 %v14174_v12  ;;  %v14220_v12 = vld [vmem:[#allocation4 + $0x7a0] ss:$8 sps:$4 sm:$0xff]  }
 0x475   :  { %5650 = vmatmul.mubr.bf16.gmra.mrb[80].mxu1 %v16665_v8  ;;  %6036 = vmatmul.mubr.bf16.gmra.mrb[76].mxu0 %v16665_v8 }
 0x476   :  { %5659 = vmatprep.mubr.bf16.mxu1 %v16741_v44  ;;  %5685 = vmatpush1.bf16.msra.mxu1 %v14169_v4  ;;  %v14225_v4 = vld [vmem:[#allocation4 + $0x634] ss:$8 sps:$4 sm:$0xff]  }
 0x477   :  { %6045 = vmatprep.mubr.bf16.mxu0 %v16741_v44  ;;  %6071 = vmatpush1.bf16.msra.mxu0 %v14172_v5  ;;  %v14223_v5 = vld [vmem:[#allocation4 + $0x630] ss:$8 sps:$4 sm:$0xff]  }
 0x478   :  { %5686 = vmatprep.subr.bf16.mxu1 %v14177_v60  ;;  %6072 = vmatprep.subr.bf16.mxu0 %v14180_v52  ;;  %v14226_v60 = vld [vmem:[#allocation4 + $0x7b0] ss:$8 sps:$4 sm:$0xff]   ;;  %v14231_v52 = vld [vmem:[#allocation4 + $0x644] ss:$8 sps:$4 sm:$0xff]  }
 0x47a   :  { %5687 = vmatpush1.bf16.msra.mxu1 %v14175_v53  ;;  %v14234_v53 = vld [vmem:[#allocation4 + $0x7c4] ss:$8 sps:$4 sm:$0xff]  }
 0x47b   :  { %6073 = vmatpush1.bf16.msra.mxu0 %v14178_v57  ;;  %5688 = vmatprep.subr.bf16.mxu1 %v14183_v13  ;;  %v14229_v57 = vld [vmem:[#allocation4 + $0x640] ss:$8 sps:$4 sm:$0xff]  }
 0x47c   :  { %6074 = vmatprep.subr.bf16.mxu0 %v14186_v21  ;;  %v14232_v13 = vld [vmem:[#allocation4 + $0x7c0] ss:$8 sps:$4 sm:$0xff]   ;;  %v14237_v21 = vld [vmem:[#allocation4 + $0x654] ss:$8 sps:$4 sm:$0xff]  }
 0x47d   :  { %5660 = vmatmul.mubr.bf16.gmra.mrb[84].mxu1 %v16731_v26  ;;  %6046 = vmatmul.mubr.bf16.gmra.mrb[80].mxu0 %v16731_v26 }
 0x47e   :  { %5669 = vmatprep.mubr.bf16.mxu1 %v16804_v47  ;;  %5689 = vmatpush1.bf16.msra.mxu1 %v14181_v59  ;;  %v14240_v59 = vld [vmem:[#allocation4 + $0x7d4] ss:$8 sps:$4 sm:$0xff]  }
 0x47f   :  { %6055 = vmatprep.mubr.bf16.mxu0 %v16804_v47  ;;  %6075 = vmatpush1.bf16.msra.mxu0 %v14184_v36  ;;  %v14235_v36 = vld [vmem:[#allocation4 + $0x650] ss:$8 sps:$4 sm:$0xff]  }
 0x480   :  { %5690 = vmatprep.subr.bf16.mxu1 %v14189_v17  ;;  %6076 = vmatprep.subr.bf16.mxu0 %v14192_v35  ;;  %v14238_v17 = vld [vmem:[#allocation4 + $0x7d0] ss:$8 sps:$4 sm:$0xff]   ;;  %v14243_v35 = vld [vmem:[#allocation4 + $0x664] ss:$8 sps:$4 sm:$0xff]  }
 0x482   :  { %5691 = vmatpush1.bf16.msra.mxu1 %v14187_v62  ;;  %v14246_v62 = vld [vmem:[#allocation4 + $0x7e4] ss:$8 sps:$4 sm:$0xff]  }
 0x483   :  { %6077 = vmatpush1.bf16.msra.mxu0 %v14190_v19  ;;  %5692 = vmatprep.subr.bf16.mxu1 %v14195_v20  ;;  %v14241_v19 = vld [vmem:[#allocation4 + $0x660] ss:$8 sps:$4 sm:$0xff]  }
 0x484   :  { %6078 = vmatprep.subr.bf16.mxu0 %v14198_v22  ;;  %v14244_v20 = vld [vmem:[#allocation4 + $0x7e0] ss:$8 sps:$4 sm:$0xff]   ;;  %v14249_v22 = vld [vmem:[#allocation4 + $0x674] ss:$8 sps:$4 sm:$0xff]  }
 0x485   :  { %5670 = vmatmul.mubr.bf16.gmra.mrb[88].mxu1 %v16795_v10  ;;  %6056 = vmatmul.mubr.bf16.gmra.mrb[84].mxu0 %v16795_v10 }
 0x486   :  { %5712 = vmatprep.mubr.bf16.mxu1 %v17193_v55  ;;  %5693 = vmatpush1.bf16.msra.mxu1 %v14193_v2  ;;  %v14252_v2 = vld [vmem:[#allocation4 + $0x7f4] ss:$8 sps:$4 sm:$0xff]  }
 0x487   :  { %6098 = vmatprep.mubr.bf16.mxu0 %v17193_v55  ;;  %6079 = vmatpush1.bf16.msra.mxu0 %v14196_v45  ;;  %v14247_v45 = vld [vmem:[#allocation4 + $0x670] ss:$8 sps:$4 sm:$0xff]  }
 0x488   :  { %5694 = vmatprep.subr.bf16.mxu1 %v14201_v41  ;;  %6080 = vmatprep.subr.bf16.mxu0 %v14204_v34  ;;  %v14250_v41 = vld [vmem:[#allocation4 + $0x7f0] ss:$8 sps:$4 sm:$0xff]   ;;  %v14255_v34 = vld [vmem:[#allocation4 + $0x684] ss:$8 sps:$4 sm:$0xff]  }
 0x48a   :  { %5695 = vmatpush1.bf16.msra.mxu1 %v14199_v25  ;;  %v14258_v25 = vld [vmem:[#allocation4 + $0x804] ss:$8 sps:$4 sm:$0xff]  }
 0x48b   :  { %6081 = vmatpush1.bf16.msra.mxu0 %v14202_v24  ;;  %6440 = vmatprep.subr.bf16.mxu1 %v14207_v54  ;;  %v14253_v24 = vld [vmem:[#allocation4 + $0x680] ss:$8 sps:$4 sm:$0xff]  }
 0x48c   :  { %6875 = vmatprep.subr.bf16.mxu0 %v14210_v51  ;;  %v14256_v54 = vld [vmem:[#allocation4 + $0x800] ss:$8 sps:$4 sm:$0xff]   ;;  %v14261_v51 = vld [vmem:[#allocation4 + $0x694] ss:$8 sps:$4 sm:$0xff]  }
 0x48d   :  { %5713 = vmatmul.mubr.bf16.vlgmr.msra.gmra.mrb[76].mxu1 %v16698_v11 }
 0x48e   :  { %6099 = vmatmul.mubr.bf16.vlgmr.msra.gmra.mrb[72].mxu0 %v16698_v11  ;;  %6441 = vmatpush1.bf16.msra.mxu1 %v14205_v31  ;;  %v14228_v11 = vld [vmem:[#allocation4 + $0x7b4] ss:$8 sps:$4 sm:$0xff]  }
 0x48f   :  { %6876 = vmatpush1.bf16.msra.mxu0 %v14208_v28  ;;  %6442 = vmatprep.subr.bf16.mxu1 %v14213_v48  ;;  %v14264_v31 = vld [vmem:[#allocation4 + $0x814] ss:$8 sps:$4 sm:$0xff]   ;;  %v14259_v28 = vld [vmem:[#allocation4 + $0x690] ss:$8 sps:$4 sm:$0xff]  }
 0x490   :  { %6877 = vmatprep.subr.bf16.mxu0 %v14216_v30  ;;  %5722 = vmatprep.mubr.bf16.mxu1 %v17193_v55  ;;  %v14262_v48 = vld [vmem:[#allocation4 + $0x810] ss:$8 sps:$4 sm:$0xff]   ;;  %v14267_v30 = vld [vmem:[#allocation4 + $0x6a4] ss:$8 sps:$4 sm:$0xff]  }
 0x491   :  { %6108 = vmatprep.mubr.bf16.mxu0 %v17193_v55 }
 0x492   :  { %6443 = vmatpush1.bf16.msra.mxu1 %v14211_v56  ;;  %v14270_v56 = vld [vmem:[#allocation4 + $0x824] ss:$8 sps:$4 sm:$0xff]  }
 0x493   :  { %6878 = vmatpush1.bf16.msra.mxu0 %v14214_v40  ;;  %6444 = vmatprep.subr.bf16.mxu1 %v14219_v7  ;;  %v14268_v40 = vld [vmem:[#allocation4 + $0x820] ss:$8 sps:$4 sm:$0xff]   ;;  %v14273_v7 = vld [vmem:[#allocation4 + $0x6b4] ss:$8 sps:$4 sm:$0xff]  }
 0x494   :  { %6879 = vmatprep.subr.bf16.mxu0 %v14222_v33  ;;  %v14276_v33 = vld [vmem:[#allocation4 + $0x834] ss:$8 sps:$4 sm:$0xff]  }
 0x495   :  { %5723 = vmatmul.mubr.bf16.gmra.mrb[80].mxu1 %v16739_v6 }
 0x496   :  { %6109 = vmatmul.mubr.bf16.gmra.mrb[76].mxu0 %v16739_v6  ;;  %6445 = vmatpush1.bf16.msra.mxu1 %v14217_v1  ;;  %v14271_v1 = vld [vmem:[#allocation4 + $0x6b0] ss:$8 sps:$4 sm:$0xff]  }
 0x497   :  { %6880 = vmatpush1.bf16.msra.mxu0 %v14220_v12  ;;  %6446 = vmatprep.subr.bf16.mxu1 %v14225_v4  ;;  %v14274_v12 = vld [vmem:[#allocation4 + $0x830] ss:$8 sps:$4 sm:$0xff]   ;;  %v14279_v4 = vld [vmem:[#allocation4 + $0x6c4] ss:$8 sps:$4 sm:$0xff]  }
 0x498   :  { %6881 = vmatprep.subr.bf16.mxu0 %v14228_v11  ;;  %5732 = vmatprep.mubr.bf16.mxu1 %v17193_v55  ;;  %v14282_v11 = vld [vmem:[#allocation4 + $0x844] ss:$8 sps:$4 sm:$0xff]  }
 0x499   :  { %6118 = vmatprep.mubr.bf16.mxu0 %v17193_v55 }
 0x49a   :  { %6447 = vmatpush1.bf16.msra.mxu1 %v14223_v5  ;;  %v14277_v5 = vld [vmem:[#allocation4 + $0x6c0] ss:$8 sps:$4 sm:$0xff]  }
 0x49b   :  { %6882 = vmatpush1.bf16.msra.mxu0 %v14226_v60  ;;  %6448 = vmatprep.subr.bf16.mxu1 %v14231_v52  ;;  %v14280_v60 = vld [vmem:[#allocation4 + $0x840] ss:$8 sps:$4 sm:$0xff]   ;;  %v14285_v52 = vld [vmem:[#allocation4 + $0x6d4] ss:$8 sps:$4 sm:$0xff]  }
 0x49c   :  { %6883 = vmatprep.subr.bf16.mxu0 %v14234_v53  ;;  %v14288_v53 = vld [vmem:[#allocation4 + $0x854] ss:$8 sps:$4 sm:$0xff]  }
 0x49d   :  { %5733 = vmatmul.mubr.bf16.gmra.mrb[84].mxu1 %v16773_v16 }
 0x49e   :  { %6119 = vmatmul.mubr.bf16.gmra.mrb[80].mxu0 %v16773_v16  ;;  %6449 = vmatpush1.bf16.msra.mxu1 %v14229_v57  ;;  %v14283_v57 = vld [vmem:[#allocation4 + $0x6d0] ss:$8 sps:$4 sm:$0xff]  }
 0x49f   :  { %6884 = vmatpush1.bf16.msra.mxu0 %v14232_v13  ;;  %6450 = vmatprep.subr.bf16.mxu1 %v14237_v21  ;;  %v14286_v13 = vld [vmem:[#allocation4 + $0x850] ss:$8 sps:$4 sm:$0xff]   ;;  %v14291_v21 = vld [vmem:[#allocation4 + $0x6e4] ss:$8 sps:$4 sm:$0xff]  }
 0x4a0   :  { %6885 = vmatprep.subr.bf16.mxu0 %v14240_v59  ;;  %5742 = vmatprep.mubr.bf16.mxu1 %v17193_v55  ;;  %v14294_v59 = vld [vmem:[#allocation4 + $0x864] ss:$8 sps:$4 sm:$0xff]  }
 0x4a1   :  { %6128 = vmatprep.mubr.bf16.mxu0 %v17193_v55 }
 0x4a2   :  { %6451 = vmatpush1.bf16.msra.mxu1 %v14235_v36  ;;  %v14289_v36 = vld [vmem:[#allocation4 + $0x6e0] ss:$8 sps:$4 sm:$0xff]  }
 0x4a3   :  { %6886 = vmatpush1.bf16.msra.mxu0 %v14238_v17  ;;  %6452 = vmatprep.subr.bf16.mxu1 %v14243_v35  ;;  %v14292_v17 = vld [vmem:[#allocation4 + $0x860] ss:$8 sps:$4 sm:$0xff]   ;;  %v14297_v35 = vld [vmem:[#allocation4 + $0x6f4] ss:$8 sps:$4 sm:$0xff]  }
 0x4a4   :  { %6887 = vmatprep.subr.bf16.mxu0 %v14246_v62  ;;  %v14300_v62 = vld [vmem:[#allocation4 + $0x874] ss:$8 sps:$4 sm:$0xff]  }
 0x4a5   :  { %5743 = vmatmul.mubr.bf16.gmra.mrb[88].mxu1 %v16799_v3 }
 0x4a6   :  { %6129 = vmatmul.mubr.bf16.gmra.mrb[84].mxu0 %v16799_v3  ;;  %6453 = vmatpush1.bf16.msra.mxu1 %v14241_v19  ;;  %v14295_v19 = vld [vmem:[#allocation4 + $0x6f0] ss:$8 sps:$4 sm:$0xff]  }
 0x4a7   :  { %6472 = vmatprep.mubr.bf16.mxu1 %v16667_v58  ;;  %6888 = vmatpush1.bf16.msra.mxu0 %v14244_v20  ;;  %v14298_v20 = vld [vmem:[#allocation4 + $0x870] ss:$8 sps:$4 sm:$0xff]  }
 0x4a8   :  { %6907 = vmatprep.mubr.bf16.mxu0 %v16667_v58  ;;  %6454 = vmatprep.subr.bf16.mxu1 %v14249_v22  ;;  %v14265_v58 = vld [vmem:[#allocation4 + $0x6a0] ss:$8 sps:$4 sm:$0xff]   ;;  %v14303_v22 = vld [vmem:[#allocation4 + $0x704] ss:$8 sps:$4 sm:$0xff]  }
 0x4a9   :  { %6889 = vmatprep.subr.bf16.mxu0 %v14252_v2  ;;  %v14306_v2 = vld [vmem:[#allocation4 + $0x884] ss:$8 sps:$4 sm:$0xff]  }
 0x4aa   :  { %6455 = vmatpush1.bf16.msra.mxu1 %v14247_v45  ;;  %v14301_v45 = vld [vmem:[#allocation4 + $0x700] ss:$8 sps:$4 sm:$0xff]  }
 0x4ab   :  { %6890 = vmatpush1.bf16.msra.mxu0 %v14250_v41  ;;  %6456 = vmatprep.subr.bf16.mxu1 %v14255_v34  ;;  %v14304_v41 = vld [vmem:[#allocation4 + $0x880] ss:$8 sps:$4 sm:$0xff]   ;;  %v14309_v34 = vld [vmem:[#allocation4 + $0x714] ss:$8 sps:$4 sm:$0xff]  }
 0x4ac   :  { %6891 = vmatprep.subr.bf16.mxu0 %v14258_v25  ;;  %v14312_v25 = vld [vmem:[#allocation4 + $0x894] ss:$8 sps:$4 sm:$0xff]  }
 0x4ae   :  { %6457 = vmatpush1.bf16.msra.mxu1 %v14253_v24  ;;  %v14307_v24 = vld [vmem:[#allocation4 + $0x710] ss:$8 sps:$4 sm:$0xff]  }
 0x4af   :  { %6892 = vmatpush1.bf16.msra.mxu0 %v14256_v54  ;;  %6458 = vmatprep.subr.bf16.mxu1 %v14261_v51  ;;  %v14310_v54 = vld [vmem:[#allocation4 + $0x890] ss:$8 sps:$4 sm:$0xff]   ;;  %v14315_v51 = vld [vmem:[#allocation4 + $0x724] ss:$8 sps:$4 sm:$0xff]  }
 0x4b0   :  { %6893 = vmatprep.subr.bf16.mxu0 %v14264_v31  ;;  %v14318_v31 = vld [vmem:[#allocation4 + $0x8a4] ss:$8 sps:$4 sm:$0xff]  }
 0x4b2   :  { %6459 = vmatpush1.bf16.msra.mxu1 %v14259_v28  ;;  %v14313_v28 = vld [vmem:[#allocation4 + $0x720] ss:$8 sps:$4 sm:$0xff]  }
 0x4b3   :  { %6894 = vmatpush1.bf16.msra.mxu0 %v14262_v48  ;;  %6460 = vmatprep.subr.bf16.mxu1 %v14267_v30  ;;  %v14316_v48 = vld [vmem:[#allocation4 + $0x8a0] ss:$8 sps:$4 sm:$0xff]   ;;  %v14321_v30 = vld [vmem:[#allocation4 + $0x734] ss:$8 sps:$4 sm:$0xff]  }
 0x4b4   :  { %6895 = vmatprep.subr.bf16.mxu0 %v14270_v56  ;;  %v14319_v56 = vld [vmem:[#allocation4 + $0x730] ss:$8 sps:$4 sm:$0xff]  }
 0x4b6   :  { %6461 = vmatpush1.bf16.msra.mxu1 %v14265_v58  ;;  %v14322_v58 = vld [vmem:[#allocation4 + $0x8b0] ss:$8 sps:$4 sm:$0xff]  }
 0x4b7   :  { %6896 = vmatpush1.bf16.msra.mxu0 %v14268_v40  ;;  %6462 = vmatprep.subr.bf16.mxu1 %v14273_v7  ;;  %v14327_v40 = vld [vmem:[#allocation4 + $0x744] ss:$8 sps:$4 sm:$0xff]  }
 0x4b8   :  { %6897 = vmatprep.subr.bf16.mxu0 %v14276_v33  ;;  %v14330_v7 = vld [vmem:[#allocation4 + $0x8c4] ss:$8 sps:$4 sm:$0xff]   ;;  %v14325_v33 = vld [vmem:[#allocation4 + $0x740] ss:$8 sps:$4 sm:$0xff]  }
 0x4ba   :  { %6463 = vmatpush1.bf16.msra.mxu1 %v14271_v1  ;;  %v14328_v1 = vld [vmem:[#allocation4 + $0x8c0] ss:$8 sps:$4 sm:$0xff]  }
 0x4bb   :  { %6898 = vmatpush1.bf16.msra.mxu0 %v14274_v12  ;;  %6464 = vmatprep.subr.bf16.mxu1 %v14279_v4  ;;  %v14333_v12 = vld [vmem:[#allocation4 + $0x754] ss:$8 sps:$4 sm:$0xff]  }
 0x4bc   :  { %6899 = vmatprep.subr.bf16.mxu0 %v14282_v11  ;;  %v14336_v4 = vld [vmem:[#allocation4 + $0x8d4] ss:$8 sps:$4 sm:$0xff]   ;;  %v14331_v11 = vld [vmem:[#allocation4 + $0x750] ss:$8 sps:$4 sm:$0xff]  }
 0x4be   :  { %6465 = vmatpush1.bf16.msra.mxu1 %v14277_v5  ;;  %v14334_v5 = vld [vmem:[#allocation4 + $0x8d0] ss:$8 sps:$4 sm:$0xff]  }
 0x4bf   :  { %6900 = vmatpush1.bf16.msra.mxu0 %v14280_v60  ;;  %6466 = vmatprep.subr.bf16.mxu1 %v14285_v52  ;;  %v14339_v60 = vld [vmem:[#allocation4 + $0x764] ss:$8 sps:$4 sm:$0xff]  }
 0x4c0   :  { %6901 = vmatprep.subr.bf16.mxu0 %v14288_v53  ;;  %v14342_v52 = vld [vmem:[#allocation4 + $0x8e4] ss:$8 sps:$4 sm:$0xff]   ;;  %v14337_v53 = vld [vmem:[#allocation4 + $0x760] ss:$8 sps:$4 sm:$0xff]  }
 0x4c2   :  { %6467 = vmatpush1.bf16.msra.mxu1 %v14283_v57  ;;  %v14340_v57 = vld [vmem:[#allocation4 + $0x8e0] ss:$8 sps:$4 sm:$0xff]  }
 0x4c3   :  { %6902 = vmatpush1.bf16.msra.mxu0 %v14286_v13  ;;  %6468 = vmatprep.subr.bf16.mxu1 %v14291_v21  ;;  %v14345_v13 = vld [vmem:[#allocation4 + $0x774] ss:$8 sps:$4 sm:$0xff]  }
 0x4c4   :  { %6903 = vmatprep.subr.bf16.mxu0 %v14294_v59  ;;  %v14348_v21 = vld [vmem:[#allocation4 + $0x8f4] ss:$8 sps:$4 sm:$0xff]   ;;  %v14343_v59 = vld [vmem:[#allocation4 + $0x770] ss:$8 sps:$4 sm:$0xff]  }
 0x4c6   :  { %6469 = vmatpush1.bf16.msra.mxu1 %v14289_v36  ;;  %v14346_v36 = vld [vmem:[#allocation4 + $0x8f0] ss:$8 sps:$4 sm:$0xff]  }
 0x4c7   :  { %6904 = vmatpush1.bf16.msra.mxu0 %v14292_v17  ;;  %6470 = vmatprep.subr.bf16.mxu1 %v14297_v35  ;;  %v14351_v17 = vld [vmem:[#allocation4 + $0x904] ss:$8 sps:$4 sm:$0xff]  }
 0x4c8   :  { %6905 = vmatprep.subr.bf16.mxu0 %v14300_v62  ;;  %v14354_v35 = vld [vmem:[#allocation4 + $0xa84] ss:$8 sps:$4 sm:$0xff]   ;;  %v14349_v62 = vld [vmem:[#allocation4 + $0x900] ss:$8 sps:$4 sm:$0xff]  }
 0x4ca   :  { %6471 = vmatpush1.bf16.msra.mxu1 %v14295_v19  ;;  %v14352_v19 = vld [vmem:[#allocation4 + $0xa80] ss:$8 sps:$4 sm:$0xff]  }
 0x4cb   :  { %6906 = vmatpush1.bf16.msra.mxu0 %v14298_v20  ;;  %6513 = vmatprep.subr.bf16.mxu1 %v14303_v22  ;;  %v14357_v20 = vld [vmem:[#allocation4 + $0x914] ss:$8 sps:$4 sm:$0xff]  }
 0x4cc   :  { %6948 = vmatprep.subr.bf16.mxu0 %v14306_v2  ;;  %v14360_v22 = vld [vmem:[#allocation4 + $0xa94] ss:$8 sps:$4 sm:$0xff]   ;;  %v14355_v2 = vld [vmem:[#allocation4 + $0x910] ss:$8 sps:$4 sm:$0xff]  }
 0x4cd   :  { %6473 = vmatmul.mubr.bf16.vlgmr.msra.gmra.mrb[76].mxu1 %v16665_v8 }
 0x4ce   :  { %6908 = vmatmul.mubr.bf16.vlgmr.msra.gmra.mrb[72].mxu0 %v16665_v8  ;;  %6482 = vmatprep.mubr.bf16.mxu1 %v16741_v44  ;;  %v14324_v8 = vld [vmem:[#allocation4 + $0x8b4] ss:$8 sps:$4 sm:$0xff]  }
 0x4cf   :  { %6514 = vmatpush1.bf16.msra.mxu1 %v14301_v45  ;;  %6917 = vmatprep.mubr.bf16.mxu0 %v16741_v44  ;;  %v14358_v45 = vld [vmem:[#allocation4 + $0xa90] ss:$8 sps:$4 sm:$0xff]  }
 0x4d0   :  { %6949 = vmatpush1.bf16.msra.mxu0 %v14304_v41  ;;  %6515 = vmatprep.subr.bf16.mxu1 %v14309_v34  ;;  %v14363_v41 = vld [vmem:[#allocation4 + $0x924] ss:$8 sps:$4 sm:$0xff]  }
 0x4d1   :  { %6950 = vmatprep.subr.bf16.mxu0 %v14312_v25  ;;  %v14366_v34 = vld [vmem:[#allocation4 + $0xaa4] ss:$8 sps:$4 sm:$0xff]   ;;  %v14361_v25 = vld [vmem:[#allocation4 + $0x920] ss:$8 sps:$4 sm:$0xff]  }
 0x4d3   :  { %6516 = vmatpush1.bf16.msra.mxu1 %v14307_v24  ;;  %v14364_v24 = vld [vmem:[#allocation4 + $0xaa0] ss:$8 sps:$4 sm:$0xff]  }
 0x4d4   :  { %6951 = vmatpush1.bf16.msra.mxu0 %v14310_v54  ;;  %6517 = vmatprep.subr.bf16.mxu1 %v14315_v51  ;;  %v14369_v54 = vld [vmem:[#allocation4 + $0x934] ss:$8 sps:$4 sm:$0xff]   ;;  %v14367_v51 = vld [vmem:[#allocation4 + $0x930] ss:$8 sps:$4 sm:$0xff]  }
 0x4d5   :  { %6483 = vmatmul.mubr.bf16.gmra.mrb[80].mxu1 %v16731_v26  ;;  %6952 = vmatprep.subr.bf16.mxu0 %v14318_v31  ;;  %v14370_v31 = vld [vmem:[#allocation4 + $0xab0] ss:$8 sps:$4 sm:$0xff]  }
 0x4d6   :  { %6918 = vmatmul.mubr.bf16.gmra.mrb[76].mxu0 %v16731_v26  ;;  %6492 = vmatprep.mubr.bf16.mxu1 %v16804_v47 }
 0x4d7   :  { %6518 = vmatpush1.bf16.msra.mxu1 %v14313_v28  ;;  %6927 = vmatprep.mubr.bf16.mxu0 %v16804_v47  ;;  %v14375_v28 = vld [vmem:[#allocation4 + $0x944] ss:$8 sps:$4 sm:$0xff]  }
 0x4d8   :  { %6953 = vmatpush1.bf16.msra.mxu0 %v14316_v48  ;;  %6519 = vmatprep.subr.bf16.mxu1 %v14321_v30  ;;  %v14378_v48 = vld [vmem:[#allocation4 + $0xac4] ss:$8 sps:$4 sm:$0xff]   ;;  %v14373_v30 = vld [vmem:[#allocation4 + $0x940] ss:$8 sps:$4 sm:$0xff]  }
 0x4d9   :  { %6954 = vmatprep.subr.bf16.mxu0 %v14324_v8  ;;  %v14376_v8 = vld [vmem:[#allocation4 + $0xac0] ss:$8 sps:$4 sm:$0xff]  }
 0x4db   :  { %6520 = vmatpush1.bf16.msra.mxu1 %v14319_v56  ;;  %v14381_v56 = vld [vmem:[#allocation4 + $0x954] ss:$8 sps:$4 sm:$0xff]  }
 0x4dc   :  { %6955 = vmatpush1.bf16.msra.mxu0 %v14322_v58  ;;  %6521 = vmatprep.subr.bf16.mxu1 %v14327_v40  ;;  %v14384_v58 = vld [vmem:[#allocation4 + $0xad4] ss:$8 sps:$4 sm:$0xff]   ;;  %v14379_v40 = vld [vmem:[#allocation4 + $0x950] ss:$8 sps:$4 sm:$0xff]  }
 0x4dd   :  { %6493 = vmatmul.mubr.bf16.gmra.mrb[84].mxu1 %v16795_v10  ;;  %6956 = vmatprep.subr.bf16.mxu0 %v14330_v7  ;;  %v14382_v7 = vld [vmem:[#allocation4 + $0xad0] ss:$8 sps:$4 sm:$0xff]  }
 0x4de   :  { %6928 = vmatmul.mubr.bf16.gmra.mrb[80].mxu0 %v16795_v10  ;;  %6502 = vmatprep.mubr.bf16.mxu1 %v16855_v15 }
 0x4df   :  { %6522 = vmatpush1.bf16.msra.mxu1 %v14325_v33  ;;  %6937 = vmatprep.mubr.bf16.mxu0 %v16855_v15  ;;  %v14387_v33 = vld [vmem:[#allocation4 + $0x964] ss:$8 sps:$4 sm:$0xff]  }
 0x4e0   :  { %6957 = vmatpush1.bf16.msra.mxu0 %v14328_v1  ;;  %6523 = vmatprep.subr.bf16.mxu1 %v14333_v12  ;;  %v14390_v1 = vld [vmem:[#allocation4 + $0xae4] ss:$8 sps:$4 sm:$0xff]   ;;  %v14385_v12 = vld [vmem:[#allocation4 + $0x960] ss:$8 sps:$4 sm:$0xff]  }
 0x4e1   :  { %6958 = vmatprep.subr.bf16.mxu0 %v14336_v4  ;;  %v14388_v4 = vld [vmem:[#allocation4 + $0xae0] ss:$8 sps:$4 sm:$0xff]  }
 0x4e3   :  { %6524 = vmatpush1.bf16.msra.mxu1 %v14331_v11  ;;  %v14393_v11 = vld [vmem:[#allocation4 + $0x974] ss:$8 sps:$4 sm:$0xff]  }
 0x4e4   :  { %6959 = vmatpush1.bf16.msra.mxu0 %v14334_v5  ;;  %6525 = vmatprep.subr.bf16.mxu1 %v14339_v60  ;;  %v14396_v5 = vld [vmem:[#allocation4 + $0xaf4] ss:$8 sps:$4 sm:$0xff]   ;;  %v14391_v60 = vld [vmem:[#allocation4 + $0x970] ss:$8 sps:$4 sm:$0xff]  }
 0x4e5   :  { %6503 = vmatmul.mubr.bf16.gmra.mrb[88].mxu1 %v16849_v46  ;;  %6960 = vmatprep.subr.bf16.mxu0 %v14342_v52  ;;  %v14394_v52 = vld [vmem:[#allocation4 + $0xaf0] ss:$8 sps:$4 sm:$0xff]  }
 0x4e6   :  { %6938 = vmatmul.mubr.bf16.gmra.mrb[84].mxu0 %v16849_v46  ;;  %6545 = vmatprep.mubr.bf16.mxu1 %v17193_v55 }
 0x4e7   :  { %6526 = vmatpush1.bf16.msra.mxu1 %v14337_v53  ;;  %6980 = vmatprep.mubr.bf16.mxu0 %v17193_v55  ;;  %v14399_v53 = vld [vmem:[#allocation4 + $0x984] ss:$8 sps:$4 sm:$0xff]  }
 0x4e8   :  { %6961 = vmatpush1.bf16.msra.mxu0 %v14340_v57  ;;  %6527 = vmatprep.subr.bf16.mxu1 %v14345_v13  ;;  %v14402_v57 = vld [vmem:[#allocation4 + $0xb04] ss:$8 sps:$4 sm:$0xff]   ;;  %v14397_v13 = vld [vmem:[#allocation4 + $0x980] ss:$8 sps:$4 sm:$0xff]  }
 0x4e9   :  { %6962 = vmatprep.subr.bf16.mxu0 %v14348_v21  ;;  %v14400_v21 = vld [vmem:[#allocation4 + $0xb00] ss:$8 sps:$4 sm:$0xff]  }
 0x4eb   :  { %6528 = vmatpush1.bf16.msra.mxu1 %v14343_v59  ;;  %v14405_v59 = vld [vmem:[#allocation4 + $0x994] ss:$8 sps:$4 sm:$0xff]  }
 0x4ec   :  { %6963 = vmatpush1.bf16.msra.mxu0 %v14346_v36  ;;  %7354 = vmatprep.subr.bf16.mxu1 %v14351_v17  ;;  %v14408_v36 = vld [vmem:[#allocation4 + $0xb14] ss:$8 sps:$4 sm:$0xff]   ;;  %v14403_v17 = vld [vmem:[#allocation4 + $0x990] ss:$8 sps:$4 sm:$0xff]  }
 0x4ed   :  { %7789 = vmatprep.subr.bf16.mxu0 %v14354_v35  ;;  %v14406_v35 = vld [vmem:[#allocation4 + $0xb10] ss:$8 sps:$4 sm:$0xff]  }
 0x4ee   :  { %6546 = vmatmul.mubr.bf16.vlgmr.msra.gmra.mrb[76].mxu1 %v16739_v6 }
 0x4ef   :  { %6981 = vmatmul.mubr.bf16.vlgmr.msra.gmra.mrb[72].mxu0 %v16739_v6  ;;  %7355 = vmatpush1.bf16.msra.mxu1 %v14349_v62  ;;  %v14372_v6 = vld [vmem:[#allocation4 + $0xab4] ss:$8 sps:$4 sm:$0xff]   ;;  %v14411_v62 = vld [vmem:[#allocation4 + $0x9a4] ss:$8 sps:$4 sm:$0xff]  }
 0x4f0   :  { %7790 = vmatpush1.bf16.msra.mxu0 %v14352_v19  ;;  %7356 = vmatprep.subr.bf16.mxu1 %v14357_v20  ;;  %v14414_v19 = vld [vmem:[#allocation4 + $0xb24] ss:$8 sps:$4 sm:$0xff]   ;;  %v14412_v20 = vld [vmem:[#allocation4 + $0xb20] ss:$8 sps:$4 sm:$0xff]  }
 0x4f1   :  { %7791 = vmatprep.subr.bf16.mxu0 %v14360_v22  ;;  %6555 = vmatprep.mubr.bf16.mxu1 %v17193_v55  ;;  %v14417_v22 = vld [vmem:[#allocation4 + $0x9b4] ss:$8 sps:$4 sm:$0xff]  }
 0x4f2   :  { %6990 = vmatprep.mubr.bf16.mxu0 %v17193_v55 }
 0x4f3   :  { %7357 = vmatpush1.bf16.msra.mxu1 %v14355_v2  ;;  %v14420_v2 = vld [vmem:[#allocation4 + $0xb34] ss:$8 sps:$4 sm:$0xff]  }
 0x4f4   :  { %7792 = vmatpush1.bf16.msra.mxu0 %v14358_v45  ;;  %7358 = vmatprep.subr.bf16.mxu1 %v14363_v41  ;;  %v14415_v45 = vld [vmem:[#allocation4 + $0x9b0] ss:$8 sps:$4 sm:$0xff]  }
 0x4f5   :  { %7793 = vmatprep.subr.bf16.mxu0 %v14366_v34  ;;  %v14418_v41 = vld [vmem:[#allocation4 + $0xb30] ss:$8 sps:$4 sm:$0xff]   ;;  %v14423_v34 = vld [vmem:[#allocation4 + $0x9c4] ss:$8 sps:$4 sm:$0xff]  }
 0x4f6   :  { %6556 = vmatmul.mubr.bf16.gmra.mrb[80].mxu1 %v16773_v16 }
 0x4f7   :  { %6991 = vmatmul.mubr.bf16.gmra.mrb[76].mxu0 %v16773_v16  ;;  %7359 = vmatpush1.bf16.msra.mxu1 %v14361_v25  ;;  %v14426_v25 = vld [vmem:[#allocation4 + $0xb44] ss:$8 sps:$4 sm:$0xff]  }
 0x4f8   :  { %7794 = vmatpush1.bf16.msra.mxu0 %v14364_v24  ;;  %7360 = vmatprep.subr.bf16.mxu1 %v14369_v54  ;;  %v14421_v24 = vld [vmem:[#allocation4 + $0x9c0] ss:$8 sps:$4 sm:$0xff]  }
 0x4f9   :  { %7795 = vmatprep.subr.bf16.mxu0 %v14372_v6  ;;  %6565 = vmatprep.mubr.bf16.mxu1 %v17193_v55  ;;  %v14424_v54 = vld [vmem:[#allocation4 + $0xb40] ss:$8 sps:$4 sm:$0xff]   ;;  %v14429_v6 = vld [vmem:[#allocation4 + $0x9d4] ss:$8 sps:$4 sm:$0xff]  }
 0x4fa   :  { %7000 = vmatprep.mubr.bf16.mxu0 %v17193_v55 }
 0x4fb   :  { %7361 = vmatpush1.bf16.msra.mxu1 %v14367_v51  ;;  %v14432_v51 = vld [vmem:[#allocation4 + $0xb54] ss:$8 sps:$4 sm:$0xff]  }
 0x4fc   :  { %7796 = vmatpush1.bf16.msra.mxu0 %v14370_v31  ;;  %7362 = vmatprep.subr.bf16.mxu1 %v14375_v28  ;;  %v14427_v31 = vld [vmem:[#allocation4 + $0x9d0] ss:$8 sps:$4 sm:$0xff]  }
 0x4fd   :  { %7797 = vmatprep.subr.bf16.mxu0 %v14378_v48  ;;  %v14430_v28 = vld [vmem:[#allocation4 + $0xb50] ss:$8 sps:$4 sm:$0xff]   ;;  %v14435_v48 = vld [vmem:[#allocation4 + $0x9e4] ss:$8 sps:$4 sm:$0xff]  }
 0x4fe   :  { %6566 = vmatmul.mubr.bf16.gmra.mrb[84].mxu1 %v16799_v3 }
 0x4ff   :  { %7001 = vmatmul.mubr.bf16.gmra.mrb[80].mxu0 %v16799_v3  ;;  %7363 = vmatpush1.bf16.msra.mxu1 %v14373_v30  ;;  %v14438_v30 = vld [vmem:[#allocation4 + $0xb64] ss:$8 sps:$4 sm:$0xff]  }
 0x500   :  { %7798 = vmatpush1.bf16.msra.mxu0 %v14376_v8  ;;  %7364 = vmatprep.subr.bf16.mxu1 %v14381_v56  ;;  %v14433_v8 = vld [vmem:[#allocation4 + $0x9e0] ss:$8 sps:$4 sm:$0xff]  }
 0x501   :  { %7799 = vmatprep.subr.bf16.mxu0 %v14384_v58  ;;  %6575 = vmatprep.mubr.bf16.mxu1 %v17193_v55  ;;  %v14436_v56 = vld [vmem:[#allocation4 + $0xb60] ss:$8 sps:$4 sm:$0xff]   ;;  %v14441_v58 = vld [vmem:[#allocation4 + $0x9f4] ss:$8 sps:$4 sm:$0xff]  }
 0x502   :  { %7010 = vmatprep.mubr.bf16.mxu0 %v17193_v55 }
 0x503   :  { %7365 = vmatpush1.bf16.msra.mxu1 %v14379_v40  ;;  %v14444_v40 = vld [vmem:[#allocation4 + $0xb74] ss:$8 sps:$4 sm:$0xff]  }
 0x504   :  { %7800 = vmatpush1.bf16.msra.mxu0 %v14382_v7  ;;  %7366 = vmatprep.subr.bf16.mxu1 %v14387_v33  ;;  %v14439_v7 = vld [vmem:[#allocation4 + $0x9f0] ss:$8 sps:$4 sm:$0xff]  }
 0x505   :  { %7801 = vmatprep.subr.bf16.mxu0 %v14390_v1  ;;  %v14442_v33 = vld [vmem:[#allocation4 + $0xb70] ss:$8 sps:$4 sm:$0xff]   ;;  %v14447_v1 = vld [vmem:[#allocation4 + $0xa04] ss:$8 sps:$4 sm:$0xff]  }
 0x506   :  { %6576 = vmatmul.mubr.bf16.gmra.mrb[88].mxu1 %v16825_v29 }
 0x507   :  { %7011 = vmatmul.mubr.bf16.gmra.mrb[84].mxu0 %v16825_v29  ;;  %7367 = vmatpush1.bf16.msra.mxu1 %v14385_v12  ;;  %v14450_v12 = vld [vmem:[#allocation4 + $0xb84] ss:$8 sps:$4 sm:$0xff]  }
 0x508   :  { %7386 = vmatprep.mubr.bf16.mxu1 %v16700_v9  ;;  %7802 = vmatpush1.bf16.msra.mxu0 %v14388_v4  ;;  %v14445_v4 = vld [vmem:[#allocation4 + $0xa00] ss:$8 sps:$4 sm:$0xff]  }
 0x509   :  { %7821 = vmatprep.mubr.bf16.mxu0 %v16700_v9  ;;  %7368 = vmatprep.subr.bf16.mxu1 %v14393_v11  ;;  %v14409_v9 = vld [vmem:[#allocation4 + $0x9a0] ss:$8 sps:$4 sm:$0xff]  }
 0x50a   :  { %7803 = vmatprep.subr.bf16.mxu0 %v14396_v5  ;;  %v14448_v11 = vld [vmem:[#allocation4 + $0xb80] ss:$8 sps:$4 sm:$0xff]   ;;  %v14453_v5 = vld [vmem:[#allocation4 + $0xa14] ss:$8 sps:$4 sm:$0xff]  }
 0x50b   :  { %7369 = vmatpush1.bf16.msra.mxu1 %v14391_v60  ;;  %v14456_v60 = vld [vmem:[#allocation4 + $0xb94] ss:$8 sps:$4 sm:$0xff]  }
 0x50c   :  { %7804 = vmatpush1.bf16.msra.mxu0 %v14394_v52  ;;  %7370 = vmatprep.subr.bf16.mxu1 %v14399_v53  ;;  %v14451_v52 = vld [vmem:[#allocation4 + $0xa10] ss:$8 sps:$4 sm:$0xff]  }
 0x50d   :  { %7805 = vmatprep.subr.bf16.mxu0 %v14402_v57  ;;  %v14454_v53 = vld [vmem:[#allocation4 + $0xb90] ss:$8 sps:$4 sm:$0xff]   ;;  %v14459_v57 = vld [vmem:[#allocation4 + $0xa24] ss:$8 sps:$4 sm:$0xff]  }
 0x50f   :  { %7371 = vmatpush1.bf16.msra.mxu1 %v14397_v13  ;;  %v14462_v13 = vld [vmem:[#allocation4 + $0xba4] ss:$8 sps:$4 sm:$0xff]  }
 0x510   :  { %7806 = vmatpush1.bf16.msra.mxu0 %v14400_v21  ;;  %7372 = vmatprep.subr.bf16.mxu1 %v14405_v59  ;;  %v14457_v21 = vld [vmem:[#allocation4 + $0xa20] ss:$8 sps:$4 sm:$0xff]  }
 0x511   :  { %7807 = vmatprep.subr.bf16.mxu0 %v14408_v36  ;;  %v14460_v59 = vld [vmem:[#allocation4 + $0xba0] ss:$8 sps:$4 sm:$0xff]   ;;  %v14465_v36 = vld [vmem:[#allocation4 + $0xa34] ss:$8 sps:$4 sm:$0xff]  }
 0x513   :  { %7373 = vmatpush1.bf16.msra.mxu1 %v14403_v17  ;;  %v14466_v17 = vld [vmem:[#allocation4 + $0xbb0] ss:$8 sps:$4 sm:$0xff]  }
 0x514   :  { %7808 = vmatpush1.bf16.msra.mxu0 %v14406_v35  ;;  %7374 = vmatprep.subr.bf16.mxu1 %v14411_v62  ;;  %v14471_v35 = vld [vmem:[#allocation4 + $0xa44] ss:$8 sps:$4 sm:$0xff]  }
 0x515   :  { %7809 = vmatprep.subr.bf16.mxu0 %v14414_v19  ;;  %v14474_v62 = vld [vmem:[#allocation4 + $0xbc4] ss:$8 sps:$4 sm:$0xff]   ;;  %v14469_v19 = vld [vmem:[#allocation4 + $0xa40] ss:$8 sps:$4 sm:$0xff]  }
 0x517   :  { %7375 = vmatpush1.bf16.msra.mxu1 %v14409_v9  ;;  %v14472_v9 = vld [vmem:[#allocation4 + $0xbc0] ss:$8 sps:$4 sm:$0xff]  }
 0x518   :  { %7810 = vmatpush1.bf16.msra.mxu0 %v14412_v20  ;;  %7376 = vmatprep.subr.bf16.mxu1 %v14417_v22  ;;  %v14477_v20 = vld [vmem:[#allocation4 + $0xa54] ss:$8 sps:$4 sm:$0xff]   ;;  %v14478_v22 = vld [vmem:[#allocation4 + $0xbd0] ss:$8 sps:$4 sm:$0xff]  }
 0x519   :  { %7811 = vmatprep.subr.bf16.mxu0 %v14420_v2  ;;  %v14483_v2 = vld [vmem:[#allocation4 + $0xa64] ss:$8 sps:$4 sm:$0xff]  }
 0x51b   :  { %7377 = vmatpush1.bf16.msra.mxu1 %v14415_v45  ;;  %v14486_v45 = vld [vmem:[#allocation4 + $0xbe4] ss:$8 sps:$4 sm:$0xff]  }
 0x51c   :  { %7812 = vmatpush1.bf16.msra.mxu0 %v14418_v41  ;;  %7378 = vmatprep.subr.bf16.mxu1 %v14423_v34  ;;  %v14481_v41 = vld [vmem:[#allocation4 + $0xa60] ss:$8 sps:$4 sm:$0xff]  }
 0x51d   :  { %7813 = vmatprep.subr.bf16.mxu0 %v14426_v25  ;;  %v14484_v34 = vld [vmem:[#allocation4 + $0xbe0] ss:$8 sps:$4 sm:$0xff]   ;;  %v14489_v25 = vld [vmem:[#allocation4 + $0xa74] ss:$8 sps:$4 sm:$0xff]  }
 0x51f   :  { %7379 = vmatpush1.bf16.msra.mxu1 %v14421_v24  ;;  %v14490_v24 = vld [vmem:[#allocation4 + $0xbf0] ss:$8 sps:$4 sm:$0xff]  }
 0x520   :  { %7814 = vmatpush1.bf16.msra.mxu0 %v14424_v54  ;;  %7380 = vmatprep.subr.bf16.mxu1 %v14429_v6  ;;  %v14495_v54 = vld [vmem:[#allocation4 + $0xc04] ss:$8 sps:$4 sm:$0xff]  }
 0x521   :  { %7815 = vmatprep.subr.bf16.mxu0 %v14432_v51  ;;  %v14498_v6 = vld [vmem:[#allocation4 + $0xd84] ss:$8 sps:$4 sm:$0xff]   ;;  %v14493_v51 = vld [vmem:[#allocation4 + $0xc00] ss:$8 sps:$4 sm:$0xff]  }
 0x523   :  { %7381 = vmatpush1.bf16.msra.mxu1 %v14427_v31  ;;  %v14496_v31 = vld [vmem:[#allocation4 + $0xd80] ss:$8 sps:$4 sm:$0xff]  }
 0x524   :  { %7816 = vmatpush1.bf16.msra.mxu0 %v14430_v28  ;;  %7382 = vmatprep.subr.bf16.mxu1 %v14435_v48  ;;  %v14501_v28 = vld [vmem:[#allocation4 + $0xc14] ss:$8 sps:$4 sm:$0xff]   ;;  %v14499_v48 = vld [vmem:[#allocation4 + $0xc10] ss:$8 sps:$4 sm:$0xff]  }
 0x525   :  { %7817 = vmatprep.subr.bf16.mxu0 %v14438_v30  ;;  %v14502_v30 = vld [vmem:[#allocation4 + $0xd90] ss:$8 sps:$4 sm:$0xff]  }
 0x527   :  { %7383 = vmatpush1.bf16.msra.mxu1 %v14433_v8  ;;  %v14507_v8 = vld [vmem:[#allocation4 + $0xc24] ss:$8 sps:$4 sm:$0xff]  }
 0x528   :  { %7818 = vmatpush1.bf16.msra.mxu0 %v14436_v56  ;;  %7384 = vmatprep.subr.bf16.mxu1 %v14441_v58  ;;  %v14510_v56 = vld [vmem:[#allocation4 + $0xda4] ss:$8 sps:$4 sm:$0xff]   ;;  %v14505_v58 = vld [vmem:[#allocation4 + $0xc20] ss:$8 sps:$4 sm:$0xff]  }
 0x529   :  { %7819 = vmatprep.subr.bf16.mxu0 %v14444_v40  ;;  %v14508_v40 = vld [vmem:[#allocation4 + $0xda0] ss:$8 sps:$4 sm:$0xff]  }
 0x52b   :  { %7385 = vmatpush1.bf16.msra.mxu1 %v14439_v7  ;;  %v14513_v7 = vld [vmem:[#allocation4 + $0xc34] ss:$8 sps:$4 sm:$0xff]  }
 0x52c   :  { %7820 = vmatpush1.bf16.msra.mxu0 %v14442_v33  ;;  %7427 = vmatprep.subr.bf16.mxu1 %v14447_v1  ;;  %v14511_v33 = vld [vmem:[#allocation4 + $0xc30] ss:$8 sps:$4 sm:$0xff]  }
 0x52d   :  { %7862 = vmatprep.subr.bf16.mxu0 %v14450_v12  ;;  %v14514_v1 = vld [vmem:[#allocation4 + $0xdb0] ss:$8 sps:$4 sm:$0xff]   ;;  %v14519_v12 = vld [vmem:[#allocation4 + $0xc44] ss:$8 sps:$4 sm:$0xff]  }
 0x52e   :  { %7387 = vmatmul.mubr.bf16.vlgmr.msra.gmra.mrb[76].mxu1 %v16694_v0 }
 0x52f   :  { %7822 = vmatmul.mubr.bf16.vlgmr.msra.gmra.mrb[72].mxu0 %v16694_v0  ;;  %7396 = vmatprep.mubr.bf16.mxu1 %v16767_v27  ;;  %v14468_v0 = vld [vmem:[#allocation4 + $0xbb4] ss:$8 sps:$4 sm:$0xff]  }
 0x530   :  { %7428 = vmatpush1.bf16.msra.mxu1 %v14445_v4  ;;  %7831 = vmatprep.mubr.bf16.mxu0 %v16767_v27  ;;  %v14463_v27 = vld [vmem:[#allocation4 + $0xa30] ss:$8 sps:$4 sm:$0xff]   ;;  %v14522_v4 = vld [vmem:[#allocation4 + $0xdc4] ss:$8 sps:$4 sm:$0xff]  }
 0x531   :  { %7863 = vmatpush1.bf16.msra.mxu0 %v14448_v11  ;;  %7429 = vmatprep.subr.bf16.mxu1 %v14453_v5  ;;  %v14517_v11 = vld [vmem:[#allocation4 + $0xc40] ss:$8 sps:$4 sm:$0xff]  }
 0x532   :  { %7864 = vmatprep.subr.bf16.mxu0 %v14456_v60  ;;  %v14520_v5 = vld [vmem:[#allocation4 + $0xdc0] ss:$8 sps:$4 sm:$0xff]   ;;  %v14525_v60 = vld [vmem:[#allocation4 + $0xc54] ss:$8 sps:$4 sm:$0xff]  }
 0x534   :  { %7430 = vmatpush1.bf16.msra.mxu1 %v14451_v52  ;;  %v14523_v52 = vld [vmem:[#allocation4 + $0xc50] ss:$8 sps:$4 sm:$0xff]  }
 0x535   :  { %7865 = vmatpush1.bf16.msra.mxu0 %v14454_v53  ;;  %7431 = vmatprep.subr.bf16.mxu1 %v14459_v57  ;;  %v14526_v53 = vld [vmem:[#allocation4 + $0xdd0] ss:$8 sps:$4 sm:$0xff]   ;;  %v14531_v57 = vld [vmem:[#allocation4 + $0xc64] ss:$8 sps:$4 sm:$0xff]  }
 0x536   :  { %7397 = vmatmul.mubr.bf16.gmra.mrb[80].mxu1 %v16765_v39  ;;  %7866 = vmatprep.subr.bf16.mxu0 %v14462_v13  ;;  %v14534_v13 = vld [vmem:[#allocation4 + $0xde4] ss:$8 sps:$4 sm:$0xff]  }
 0x537   :  { %7832 = vmatmul.mubr.bf16.gmra.mrb[76].mxu0 %v16765_v39  ;;  %7406 = vmatprep.mubr.bf16.mxu1 %v16821_v23  ;;  %v14480_v39 = vld [vmem:[#allocation4 + $0xbd4] ss:$8 sps:$4 sm:$0xff]  }
 0x538   :  { %7432 = vmatpush1.bf16.msra.mxu1 %v14457_v21  ;;  %7841 = vmatprep.mubr.bf16.mxu0 %v16821_v23  ;;  %v14475_v23 = vld [vmem:[#allocation4 + $0xa50] ss:$8 sps:$4 sm:$0xff]   ;;  %v14529_v21 = vld [vmem:[#allocation4 + $0xc60] ss:$8 sps:$4 sm:$0xff]  }
 0x539   :  { %7867 = vmatpush1.bf16.msra.mxu0 %v14460_v59  ;;  %7433 = vmatprep.subr.bf16.mxu1 %v14465_v36  ;;  %v14532_v59 = vld [vmem:[#allocation4 + $0xde0] ss:$8 sps:$4 sm:$0xff]   ;;  %v14537_v36 = vld [vmem:[#allocation4 + $0xc74] ss:$8 sps:$4 sm:$0xff]  }
 0x53a   :  { %7868 = vmatprep.subr.bf16.mxu0 %v14468_v0  ;;  %v14535_v0 = vld [vmem:[#allocation4 + $0xc70] ss:$8 sps:$4 sm:$0xff]  }
 0x53c   :  { %7434 = vmatpush1.bf16.msra.mxu1 %v14463_v27  ;;  %v14538_v27 = vld [vmem:[#allocation4 + $0xdf0] ss:$8 sps:$4 sm:$0xff]  }
 0x53d   :  { %7869 = vmatpush1.bf16.msra.mxu0 %v14466_v17  ;;  %7435 = vmatprep.subr.bf16.mxu1 %v14471_v35  ;;  %v14543_v17 = vld [vmem:[#allocation4 + $0xc84] ss:$8 sps:$4 sm:$0xff]  }
 0x53e   :  { %7407 = vmatmul.mubr.bf16.gmra.mrb[84].mxu1 %v16819_v18  ;;  %7870 = vmatprep.subr.bf16.mxu0 %v14474_v62  ;;  %v14546_v35 = vld [vmem:[#allocation4 + $0xe04] ss:$8 sps:$4 sm:$0xff]   ;;  %v14541_v62 = vld [vmem:[#allocation4 + $0xc80] ss:$8 sps:$4 sm:$0xff]  }
 0x53f   :  { %7842 = vmatmul.mubr.bf16.gmra.mrb[80].mxu0 %v16819_v18  ;;  %7416 = vmatprep.mubr.bf16.mxu1 %v16871_v14  ;;  %v14492_v18 = vld [vmem:[#allocation4 + $0xbf4] ss:$8 sps:$4 sm:$0xff]  }
 0x540   :  { %7436 = vmatpush1.bf16.msra.mxu1 %v14469_v19  ;;  %7851 = vmatprep.mubr.bf16.mxu0 %v16871_v14  ;;  %v14487_v14 = vld [vmem:[#allocation4 + $0xa70] ss:$8 sps:$4 sm:$0xff]   ;;  %v14544_v19 = vld [vmem:[#allocation4 + $0xe00] ss:$8 sps:$4 sm:$0xff]  }
 0x541   :  { %7871 = vmatpush1.bf16.msra.mxu0 %v14472_v9  ;;  %7437 = vmatprep.subr.bf16.mxu1 %v14477_v20  ;;  %v14549_v9 = vld [vmem:[#allocation4 + $0xc94] ss:$8 sps:$4 sm:$0xff]   ;;  %v14547_v20 = vld [vmem:[#allocation4 + $0xc90] ss:$8 sps:$4 sm:$0xff]  }
 0x542   :  { %7872 = vmatprep.subr.bf16.mxu0 %v14480_v39  ;;  %v14550_v39 = vld [vmem:[#allocation4 + $0xe10] ss:$8 sps:$4 sm:$0xff]  }
 0x544   :  { %7438 = vmatpush1.bf16.msra.mxu1 %v14475_v23  ;;  %v14555_v23 = vld [vmem:[#allocation4 + $0xca4] ss:$8 sps:$4 sm:$0xff]  }
 0x545   :  { %7873 = vmatpush1.bf16.msra.mxu0 %v14478_v22  ;;  %7439 = vmatprep.subr.bf16.mxu1 %v14483_v2  ;;  %v14558_v22 = vld [vmem:[#allocation4 + $0xe24] ss:$8 sps:$4 sm:$0xff]   ;;  %v14556_v2 = vld [vmem:[#allocation4 + $0xe20] ss:$8 sps:$4 sm:$0xff]  }
 0x546   :  { %7417 = vmatmul.mubr.bf16.gmra.mrb[88].mxu1 %v16869_v32  ;;  %7874 = vmatprep.subr.bf16.mxu0 %v14486_v45  ;;  %v14561_v45 = vld [vmem:[#allocation4 + $0xcb4] ss:$8 sps:$4 sm:$0xff]  }
 0x547   :  { %7852 = vmatmul.mubr.bf16.gmra.mrb[84].mxu0 %v16869_v32  ;;  %7459 = vmatprep.mubr.bf16.mxu1 %v17193_v55  ;;  %v14504_v32 = vld [vmem:[#allocation4 + $0xd94] ss:$8 sps:$4 sm:$0xff]  }
 0x548   :  { %7440 = vmatpush1.bf16.msra.mxu1 %v14481_v41  ;;  %7894 = vmatprep.mubr.bf16.mxu0 %v17193_v55  ;;  %v14564_v41 = vld [vmem:[#allocation4 + $0xe34] ss:$8 sps:$4 sm:$0xff]  }
 0x549   :  { %7875 = vmatpush1.bf16.msra.mxu0 %v14484_v34  ;;  %7441 = vmatprep.subr.bf16.mxu1 %v14489_v25  ;;  %v14559_v34 = vld [vmem:[#allocation4 + $0xcb0] ss:$8 sps:$4 sm:$0xff]  }
 0x54a   :  { %7876 = vmatprep.subr.bf16.mxu0 %v14492_v18  ;;  %v14562_v25 = vld [vmem:[#allocation4 + $0xe30] ss:$8 sps:$4 sm:$0xff]   ;;  %v14567_v18 = vld [vmem:[#allocation4 + $0xcc4] ss:$8 sps:$4 sm:$0xff]  }
 0x54c   :  { %7442 = vmatpush1.bf16.msra.mxu1 %v14487_v14  ;;  %v14570_v14 = vld [vmem:[#allocation4 + $0xe44] ss:$8 sps:$4 sm:$0xff]  }
 0x54d   :  { %7877 = vmatpush1.bf16.msra.mxu0 %v14490_v24  ;;  %8268 = vmatprep.subr.bf16.mxu1 %v14495_v54  ;;  %v14565_v24 = vld [vmem:[#allocation4 + $0xcc0] ss:$8 sps:$4 sm:$0xff]  }
 0x54e   :  { %8703 = vmatprep.subr.bf16.mxu0 %v14498_v6  ;;  %v14568_v54 = vld [vmem:[#allocation4 + $0xe40] ss:$8 sps:$4 sm:$0xff]   ;;  %v14573_v6 = vld [vmem:[#allocation4 + $0xcd4] ss:$8 sps:$4 sm:$0xff]  }
 0x54f   :  { %7460 = vmatmul.mubr.bf16.vlgmr.msra.gmra.mrb[76].mxu1 %v16771_v37 }
 0x550   :  { %7895 = vmatmul.mubr.bf16.vlgmr.msra.gmra.mrb[72].mxu0 %v16771_v37  ;;  %8269 = vmatpush1.bf16.msra.mxu1 %v14493_v51  ;;  %v14516_v37 = vld [vmem:[#allocation4 + $0xdb4] ss:$8 sps:$4 sm:$0xff]  }
 0x551   :  { %8704 = vmatpush1.bf16.msra.mxu0 %v14496_v31  ;;  %8270 = vmatprep.subr.bf16.mxu1 %v14501_v28  ;;  %v14576_v51 = vld [vmem:[#allocation4 + $0xe54] ss:$8 sps:$4 sm:$0xff]   ;;  %v14571_v31 = vld [vmem:[#allocation4 + $0xcd0] ss:$8 sps:$4 sm:$0xff]  }
 0x552   :  { %8705 = vmatprep.subr.bf16.mxu0 %v14504_v32  ;;  %7469 = vmatprep.mubr.bf16.mxu1 %v17193_v55  ;;  %v14574_v28 = vld [vmem:[#allocation4 + $0xe50] ss:$8 sps:$4 sm:$0xff]   ;;  %v14579_v32 = vld [vmem:[#allocation4 + $0xce4] ss:$8 sps:$4 sm:$0xff]  }
 0x553   :  { %7904 = vmatprep.mubr.bf16.mxu0 %v17193_v55 }
 0x554   :  { %8271 = vmatpush1.bf16.msra.mxu1 %v14499_v48  ;;  %v14582_v48 = vld [vmem:[#allocation4 + $0xe64] ss:$8 sps:$4 sm:$0xff]  }
 0x555   :  { %8706 = vmatpush1.bf16.msra.mxu0 %v14502_v30  ;;  %8272 = vmatprep.subr.bf16.mxu1 %v14507_v8  ;;  %v14577_v30 = vld [vmem:[#allocation4 + $0xce0] ss:$8 sps:$4 sm:$0xff]  }
 0x556   :  { %8707 = vmatprep.subr.bf16.mxu0 %v14510_v56  ;;  %v14580_v8 = vld [vmem:[#allocation4 + $0xe60] ss:$8 sps:$4 sm:$0xff]   ;;  %v14585_v56 = vld [vmem:[#allocation4 + $0xcf4] ss:$8 sps:$4 sm:$0xff]  }
 0x557   :  { %7470 = vmatmul.mubr.bf16.gmra.mrb[80].mxu1 %v16797_v50 }
 0x558   :  { %7905 = vmatmul.mubr.bf16.gmra.mrb[76].mxu0 %v16797_v50  ;;  %8273 = vmatpush1.bf16.msra.mxu1 %v14505_v58  ;;  %v14528_v50 = vld [vmem:[#allocation4 + $0xdd4] ss:$8 sps:$4 sm:$0xff]  }
 0x559   :  { %8708 = vmatpush1.bf16.msra.mxu0 %v14508_v40  ;;  %8274 = vmatprep.subr.bf16.mxu1 %v14513_v7  ;;  %v14588_v58 = vld [vmem:[#allocation4 + $0xe74] ss:$8 sps:$4 sm:$0xff]   ;;  %v14583_v40 = vld [vmem:[#allocation4 + $0xcf0] ss:$8 sps:$4 sm:$0xff]  }
 0x55a   :  { %8709 = vmatprep.subr.bf16.mxu0 %v14516_v37  ;;  %7479 = vmatprep.mubr.bf16.mxu1 %v17193_v55  ;;  %v14586_v7 = vld [vmem:[#allocation4 + $0xe70] ss:$8 sps:$4 sm:$0xff]   ;;  %v14591_v37 = vld [vmem:[#allocation4 + $0xd04] ss:$8 sps:$4 sm:$0xff]  }
 0x55b   :  { %7914 = vmatprep.mubr.bf16.mxu0 %v17193_v55 }
 0x55c   :  { %8275 = vmatpush1.bf16.msra.mxu1 %v14511_v33  ;;  %v14594_v33 = vld [vmem:[#allocation4 + $0xe84] ss:$8 sps:$4 sm:$0xff]  }
 0x55d   :  { %8710 = vmatpush1.bf16.msra.mxu0 %v14514_v1  ;;  %8276 = vmatprep.subr.bf16.mxu1 %v14519_v12  ;;  %v14589_v1 = vld [vmem:[#allocation4 + $0xd00] ss:$8 sps:$4 sm:$0xff]  }
 0x55e   :  { %8711 = vmatprep.subr.bf16.mxu0 %v14522_v4  ;;  %v14592_v12 = vld [vmem:[#allocation4 + $0xe80] ss:$8 sps:$4 sm:$0xff]   ;;  %v14597_v4 = vld [vmem:[#allocation4 + $0xd14] ss:$8 sps:$4 sm:$0xff]  }
 0x55f   :  { %7480 = vmatmul.mubr.bf16.gmra.mrb[84].mxu1 %v16823_v43 }
 0x560   :  { %7915 = vmatmul.mubr.bf16.gmra.mrb[80].mxu0 %v16823_v43  ;;  %8277 = vmatpush1.bf16.msra.mxu1 %v14517_v11  ;;  %v14540_v43 = vld [vmem:[#allocation4 + $0xdf4] ss:$8 sps:$4 sm:$0xff]  }
 0x561   :  { %8712 = vmatpush1.bf16.msra.mxu0 %v14520_v5  ;;  %8278 = vmatprep.subr.bf16.mxu1 %v14525_v60  ;;  %v14600_v11 = vld [vmem:[#allocation4 + $0xe94] ss:$8 sps:$4 sm:$0xff]   ;;  %v14595_v5 = vld [vmem:[#allocation4 + $0xd10] ss:$8 sps:$4 sm:$0xff]  }
 0x562   :  { %8713 = vmatprep.subr.bf16.mxu0 %v14528_v50  ;;  %7489 = vmatprep.mubr.bf16.mxu1 %v17193_v55  ;;  %v14598_v60 = vld [vmem:[#allocation4 + $0xe90] ss:$8 sps:$4 sm:$0xff]   ;;  %v14603_v50 = vld [vmem:[#allocation4 + $0xd24] ss:$8 sps:$4 sm:$0xff]  }
 0x563   :  { %7924 = vmatprep.mubr.bf16.mxu0 %v17193_v55 }
 0x564   :  { %8279 = vmatpush1.bf16.msra.mxu1 %v14523_v52  ;;  %v14606_v52 = vld [vmem:[#allocation4 + $0xea4] ss:$8 sps:$4 sm:$0xff]  }
 0x565   :  { %8714 = vmatpush1.bf16.msra.mxu0 %v14526_v53  ;;  %8280 = vmatprep.subr.bf16.mxu1 %v14531_v57  ;;  %v14601_v53 = vld [vmem:[#allocation4 + $0xd20] ss:$8 sps:$4 sm:$0xff]  }
 0x566   :  { %8715 = vmatprep.subr.bf16.mxu0 %v14534_v13  ;;  %v14604_v57 = vld [vmem:[#allocation4 + $0xea0] ss:$8 sps:$4 sm:$0xff]   ;;  %v14609_v13 = vld [vmem:[#allocation4 + $0xd34] ss:$8 sps:$4 sm:$0xff]  }
 0x567   :  { %7490 = vmatmul.mubr.bf16.gmra.mrb[88].mxu1 %v16851_v38 }
 0x568   :  { %7925 = vmatmul.mubr.bf16.gmra.mrb[84].mxu0 %v16851_v38  ;;  %8281 = vmatpush1.bf16.msra.mxu1 %v14529_v21  ;;  %v14552_v38 = vld [vmem:[#allocation4 + $0xe14] ss:$8 sps:$4 sm:$0xff]   ;;  %v14610_v21 = vld [vmem:[#allocation4 + $0xeb0] ss:$8 sps:$4 sm:$0xff]  }
 0x569   :  { %8300 = vmatprep.mubr.bf16.mxu1 %v16741_v44  ;;  %8716 = vmatpush1.bf16.msra.mxu0 %v14532_v59  ;;  %v14615_v59 = vld [vmem:[#allocation4 + $0xd44] ss:$8 sps:$4 sm:$0xff]  }
 0x56a   :  { %8735 = vmatprep.mubr.bf16.mxu0 %v16741_v44  ;;  %8282 = vmatprep.subr.bf16.mxu1 %v14537_v36  ;;  %v14553_v44 = vld [vmem:[#allocation4 + $0xca0] ss:$8 sps:$4 sm:$0xff]   ;;  %v14618_v36 = vld [vmem:[#allocation4 + $0xec4] ss:$8 sps:$4 sm:$0xff]  }
 0x56b   :  { %8717 = vmatprep.subr.bf16.mxu0 %v14540_v43  ;;  %v14613_v43 = vld [vmem:[#allocation4 + $0xd40] ss:$8 sps:$4 sm:$0xff]  }
 0x56c   :  { %8283 = vmatpush1.bf16.msra.mxu1 %v14535_v0  ;;  %v14616_v0 = vld [vmem:[#allocation4 + $0xec0] ss:$8 sps:$4 sm:$0xff]  }
 0x56d   :  { %8718 = vmatpush1.bf16.msra.mxu0 %v14538_v27  ;;  %8284 = vmatprep.subr.bf16.mxu1 %v14543_v17  ;;  %v14621_v27 = vld [vmem:[#allocation4 + $0xd54] ss:$8 sps:$4 sm:$0xff]   ;;  %v14622_v17 = vld [vmem:[#allocation4 + $0xed0] ss:$8 sps:$4 sm:$0xff]  }
 0x56e   :  { %8719 = vmatprep.subr.bf16.mxu0 %v14546_v35  ;;  %v14627_v35 = vld [vmem:[#allocation4 + $0xd64] ss:$8 sps:$4 sm:$0xff]  }
 0x570   :  { %8285 = vmatpush1.bf16.msra.mxu1 %v14541_v62  ;;  %v14630_v62 = vld [vmem:[#allocation4 + $0xee4] ss:$8 sps:$4 sm:$0xff]  }
 0x571   :  { %8720 = vmatpush1.bf16.msra.mxu0 %v14544_v19  ;;  %8286 = vmatprep.subr.bf16.mxu1 %v14549_v9  ;;  %v14625_v19 = vld [vmem:[#allocation4 + $0xd60] ss:$8 sps:$4 sm:$0xff]  }
 0x572   :  { %8721 = vmatprep.subr.bf16.mxu0 %v14552_v38  ;;  %v14628_v9 = vld [vmem:[#allocation4 + $0xee0] ss:$8 sps:$4 sm:$0xff]   ;;  %v14633_v38 = vld [vmem:[#allocation4 + $0xd74] ss:$8 sps:$4 sm:$0xff]  }
 0x574   :  { %8287 = vmatpush1.bf16.msra.mxu1 %v14547_v20  ;;  %v14634_v20 = vld [vmem:[#allocation4 + $0xef0] ss:$8 sps:$4 sm:$0xff]  }
 0x575   :  { %8722 = vmatpush1.bf16.msra.mxu0 %v14550_v39  ;;  %8288 = vmatprep.subr.bf16.mxu1 %v14555_v23  ;;  %v14639_v39 = vld [vmem:[#allocation7 + $0x204] ss:$16 sps:$4 sm:$0xff]   ;;  %v14642_v23 = vld [vmem:[#allocation7 + $0x20c] ss:$16 sps:$4 sm:$0xff]  }
 0x576   :  { %8723 = vmatprep.subr.bf16.mxu0 %v14558_v22  ;;  %v14637_v22 = vld [vmem:[#allocation7 + $0x200] ss:$16 sps:$4 sm:$0xff]  }
 0x578   :  { %8289 = vmatpush1.bf16.msra.mxu1 %v14553_v44  ;;  %v14640_v44 = vld [vmem:[#allocation7 + $0x208] ss:$16 sps:$4 sm:$0xff]  }
 0x579   :  { %8724 = vmatpush1.bf16.msra.mxu0 %v14556_v2  ;;  %8290 = vmatprep.subr.bf16.mxu1 %v14561_v45  ;;  %v14645_v2 = vld [vmem:[#allocation7 + $0x224] ss:$16 sps:$4 sm:$0xff]   ;;  %v14643_v45 = vld [vmem:[#allocation7 + $0x220] ss:$16 sps:$4 sm:$0xff]  }
 0x57a   :  { %8725 = vmatprep.subr.bf16.mxu0 %v14564_v41  ;;  %v14646_v41 = vld [vmem:[#allocation7 + $0x228] ss:$16 sps:$4 sm:$0xff]  }
 0x57c   :  { %8291 = vmatpush1.bf16.msra.mxu1 %v14559_v34  ;;  %v14651_v34 = vld [vmem:[#allocation7 + $0x244] ss:$16 sps:$4 sm:$0xff]  }
 0x57d   :  { %8726 = vmatpush1.bf16.msra.mxu0 %v14562_v25  ;;  %8292 = vmatprep.subr.bf16.mxu1 %v14567_v18  ;;  %v14654_v25 = vld [vmem:[#allocation7 + $0x24c] ss:$16 sps:$4 sm:$0xff]   ;;  %v14649_v18 = vld [vmem:[#allocation7 + $0x240] ss:$16 sps:$4 sm:$0xff]  }
 0x57e   :  { %8727 = vmatprep.subr.bf16.mxu0 %v14570_v14  ;;  %v14652_v14 = vld [vmem:[#allocation7 + $0x248] ss:$16 sps:$4 sm:$0xff]  }
 0x580   :  { %8293 = vmatpush1.bf16.msra.mxu1 %v14565_v24  ;;  %v14657_v24 = vld [vmem:[#allocation7 + $0x264] ss:$16 sps:$4 sm:$0xff]  }
 0x581   :  { %8728 = vmatpush1.bf16.msra.mxu0 %v14568_v54  ;;  %8294 = vmatprep.subr.bf16.mxu1 %v14573_v6  ;;  %v14655_v54 = vld [vmem:[#allocation7 + $0x260] ss:$16 sps:$4 sm:$0xff]   ;;  %v14658_v6 = vld [vmem:[#allocation7 + $0x268] ss:$16 sps:$4 sm:$0xff]  }
 0x582   :  { %8729 = vmatprep.subr.bf16.mxu0 %v14576_v51  ;;  %v14663_v51 = vld [vmem:[#allocation7 + $0x284] ss:$16 sps:$4 sm:$0xff]  }
 0x584   :  { %8295 = vmatpush1.bf16.msra.mxu1 %v14571_v31  ;;  %v14666_v31 = vld [vmem:[#allocation7 + $0x28c] ss:$16 sps:$4 sm:$0xff]  }
 0x585   :  { %8730 = vmatpush1.bf16.msra.mxu0 %v14574_v28  ;;  %8296 = vmatprep.subr.bf16.mxu1 %v14579_v32  ;;  %v14661_v28 = vld [vmem:[#allocation7 + $0x280] ss:$16 sps:$4 sm:$0xff]   ;;  %v14664_v32 = vld [vmem:[#allocation7 + $0x288] ss:$16 sps:$4 sm:$0xff]  }
 0x586   :  { %8731 = vmatprep.subr.bf16.mxu0 %v14582_v48  ;;  %v14669_v48 = vld [vmem:[#allocation7 + $0x2a4] ss:$16 sps:$4 sm:$0xff]  }
 0x588   :  { %8297 = vmatpush1.bf16.msra.mxu1 %v14577_v30  ;;  %v14667_v30 = vld [vmem:[#allocation7 + $0x2a0] ss:$16 sps:$4 sm:$0xff]  }
 0x589   :  { %8732 = vmatpush1.bf16.msra.mxu0 %v14580_v8  ;;  %8298 = vmatprep.subr.bf16.mxu1 %v14585_v56  ;;  %v14670_v8 = vld [vmem:[#allocation7 + $0x2a8] ss:$16 sps:$4 sm:$0xff]   ;;  %v14675_v56 = vld [vmem:[#allocation7 + $0x2c4] ss:$16 sps:$4 sm:$0xff]  }
 0x58a   :  { %8733 = vmatprep.subr.bf16.mxu0 %v14588_v58  ;;  %v14678_v58 = vld [vmem:[#allocation7 + $0x2cc] ss:$16 sps:$4 sm:$0xff]  }
 0x58c   :  { %8299 = vmatpush1.bf16.msra.mxu1 %v14583_v40  ;;  %v14673_v40 = vld [vmem:[#allocation7 + $0x2c0] ss:$16 sps:$4 sm:$0xff]  }
 0x58d   :  { %8734 = vmatpush1.bf16.msra.mxu0 %v14586_v7  ;;  %8341 = vmatprep.subr.bf16.mxu1 %v14591_v37  ;;  %v14676_v7 = vld [vmem:[#allocation7 + $0x2c8] ss:$16 sps:$4 sm:$0xff]   ;;  %v14681_v37 = vld [vmem:[#allocation7 + $0x2e4] ss:$16 sps:$4 sm:$0xff]  }
 0x58e   :  { %8776 = vmatprep.subr.bf16.mxu0 %v14594_v33  ;;  %v14682_v33 = vld [vmem:[#allocation7 + $0x2e8] ss:$16 sps:$4 sm:$0xff]  }
 0x58f   :  { %8301 = vmatmul.mubr.bf16.vlgmr.msra.gmra.mrb[76].mxu1 %v16731_v26 }
 0x590   :  { %8736 = vmatmul.mubr.bf16.vlgmr.msra.gmra.mrb[72].mxu0 %v16731_v26  ;;  %8310 = vmatprep.mubr.bf16.mxu1 %v16804_v47  ;;  %v14612_v26 = vld [vmem:[#allocation4 + $0xeb4] ss:$8 sps:$4 sm:$0xff]  }
 0x591   :  { %8342 = vmatpush1.bf16.msra.mxu1 %v14589_v1  ;;  %8745 = vmatprep.mubr.bf16.mxu0 %v16804_v47  ;;  %v14607_v47 = vld [vmem:[#allocation4 + $0xd30] ss:$8 sps:$4 sm:$0xff]  }
 0x592   :  { %8777 = vmatpush1.bf16.msra.mxu0 %v14592_v12  ;;  %8343 = vmatprep.subr.bf16.mxu1 %v14597_v4  ;;  %v14687_v1 = vld [vmem:[#allocation7 + $0x304] ss:$16 sps:$4 sm:$0xff]   ;;  %v14690_v12 = vld [vmem:[#allocation7 + $0x30c] ss:$16 sps:$4 sm:$0xff]   ;;  %v14685_v4 = vld [vmem:[#allocation7 + $0x300] ss:$16 sps:$4 sm:$0xff]  }
 0x593   :  { %8778 = vmatprep.subr.bf16.mxu0 %v14600_v11  ;;  %v14688_v11 = vld [vmem:[#allocation7 + $0x308] ss:$16 sps:$4 sm:$0xff]  }
 0x595   :  { %8344 = vmatpush1.bf16.msra.mxu1 %v14595_v5  ;;  %v14693_v5 = vld [vmem:[#allocation7 + $0x324] ss:$16 sps:$4 sm:$0xff]  }
 0x596   :  { %8779 = vmatpush1.bf16.msra.mxu0 %v14598_v60  ;;  %8345 = vmatprep.subr.bf16.mxu1 %v14603_v50  ;;  %v14696_v60 = vld [vmem:[#allocation7 + $0x32c] ss:$16 sps:$4 sm:$0xff]   ;;  %v14691_v50 = vld [vmem:[#allocation7 + $0x320] ss:$16 sps:$4 sm:$0xff]  }
 0x597   :  { %8311 = vmatmul.mubr.bf16.gmra.mrb[80].mxu1 %v16795_v10  ;;  %8780 = vmatprep.subr.bf16.mxu0 %v14606_v52  ;;  %v14699_v52 = vld [vmem:[#allocation7 + $0x344] ss:$16 sps:$4 sm:$0xff]  }
 0x598   :  { %8746 = vmatmul.mubr.bf16.gmra.mrb[76].mxu0 %v16795_v10  ;;  %8320 = vmatprep.mubr.bf16.mxu1 %v16855_v15  ;;  %v14624_v10 = vld [vmem:[#allocation4 + $0xed4] ss:$8 sps:$4 sm:$0xff]  }
 0x599   :  { %8346 = vmatpush1.bf16.msra.mxu1 %v14601_v53  ;;  %8755 = vmatprep.mubr.bf16.mxu0 %v16855_v15  ;;  %v14619_v15 = vld [vmem:[#allocation4 + $0xd50] ss:$8 sps:$4 sm:$0xff]  }
 0x59a   :  { %8781 = vmatpush1.bf16.msra.mxu0 %v14604_v57  ;;  %8347 = vmatprep.subr.bf16.mxu1 %v14609_v13  ;;  %v14702_v53 = vld [vmem:[#allocation7 + $0x34c] ss:$16 sps:$4 sm:$0xff]   ;;  %v14697_v57 = vld [vmem:[#allocation7 + $0x340] ss:$16 sps:$4 sm:$0xff]   ;;  %v14700_v13 = vld [vmem:[#allocation7 + $0x348] ss:$16 sps:$4 sm:$0xff]  }
 0x59b   :  { %8782 = vmatprep.subr.bf16.mxu0 %v14612_v26  ;;  %v14705_v26 = vld [vmem:[#allocation7 + $0x364] ss:$16 sps:$4 sm:$0xff]  }
 0x59d   :  { %8348 = vmatpush1.bf16.msra.mxu1 %v14607_v47  ;;  %v14708_v47 = vld [vmem:[#allocation7 + $0x36c] ss:$16 sps:$4 sm:$0xff]  }
 0x59e   :  { %8783 = vmatpush1.bf16.msra.mxu0 %v14610_v21  ;;  %8349 = vmatprep.subr.bf16.mxu1 %v14615_v59  ;;  %v14703_v21 = vld [vmem:[#allocation7 + $0x360] ss:$16 sps:$4 sm:$0xff]   ;;  %v14706_v59 = vld [vmem:[#allocation7 + $0x368] ss:$16 sps:$4 sm:$0xff]  }
 0x59f   :  { %8321 = vmatmul.mubr.bf16.gmra.mrb[84].mxu1 %v16849_v46  ;;  %8784 = vmatprep.subr.bf16.mxu0 %v14618_v36  ;;  %v14711_v36 = vld [vmem:[#allocation7 + $0x384] ss:$16 sps:$4 sm:$0xff]  }
 0x5a0   :  { %8756 = vmatmul.mubr.bf16.gmra.mrb[80].mxu0 %v16849_v46  ;;  %8330 = vmatprep.mubr.bf16.mxu1 %v16887_v49  ;;  %v14636_v46 = vld [vmem:[#allocation4 + $0xef4] ss:$8 sps:$4 sm:$0xff]  }
 0x5a1   :  { %8350 = vmatpush1.bf16.msra.mxu1 %v14613_v43  ;;  %8765 = vmatprep.mubr.bf16.mxu0 %v16887_v49  ;;  %v14631_v49 = vld [vmem:[#allocation4 + $0xd70] ss:$8 sps:$4 sm:$0xff]  }
 0x5a2   :  { %8785 = vmatpush1.bf16.msra.mxu0 %v14616_v0  ;;  %8351 = vmatprep.subr.bf16.mxu1 %v14621_v27  ;;  %v14714_v43 = vld [vmem:[#allocation7 + $0x38c] ss:$16 sps:$4 sm:$0xff]   ;;  %v14709_v0 = vld [vmem:[#allocation7 + $0x380] ss:$16 sps:$4 sm:$0xff]   ;;  %v14712_v27 = vld [vmem:[#allocation7 + $0x388] ss:$16 sps:$4 sm:$0xff]  }
 0x5a3   :  { %8786 = vmatprep.subr.bf16.mxu0 %v14624_v10  ;;  %v14717_v10 = vld [vmem:[#allocation7 + $0x3a4] ss:$16 sps:$4 sm:$0xff]  }
 0x5a5   :  { %8352 = vmatpush1.bf16.msra.mxu1 %v14619_v15  ;;  %v14720_v15 = vld [vmem:[#allocation7 + $0x3ac] ss:$16 sps:$4 sm:$0xff]  }
 0x5a6   :  { %8787 = vmatpush1.bf16.msra.mxu0 %v14622_v17  ;;  %8353 = vmatprep.subr.bf16.mxu1 %v14627_v35  ;;  %v14715_v17 = vld [vmem:[#allocation7 + $0x3a0] ss:$16 sps:$4 sm:$0xff]   ;;  %v14718_v35 = vld [vmem:[#allocation7 + $0x3a8] ss:$16 sps:$4 sm:$0xff]  }
 0x5a7   :  { %8331 = vmatmul.mubr.bf16.gmra.mrb[88].mxu1 %v16885_v42  ;;  %8788 = vmatprep.subr.bf16.mxu0 %v14630_v62  ;;  %v14723_v62 = vld [vmem:[#allocation7 + $0x3c4] ss:$16 sps:$4 sm:$0xff]  }
 0x5a8   :  { %8766 = vmatmul.mubr.bf16.gmra.mrb[84].mxu0 %v16885_v42  ;;  %8373 = vmatprep.mubr.bf16.mxu1 %v17193_v55  ;;  %v14648_v42 = vld [vmem:[#allocation7 + $0x22c] ss:$16 sps:$4 sm:$0xff]  }
 0x5a9   :  { %8354 = vmatpush1.bf16.msra.mxu1 %v14625_v19  ;;  %8808 = vmatprep.mubr.bf16.mxu0 %v17193_v55  ;;  %v14726_v19 = vld [vmem:[#allocation7 + $0x3cc] ss:$16 sps:$4 sm:$0xff]  }
 0x5aa   :  { %8789 = vmatpush1.bf16.msra.mxu0 %v14628_v9  ;;  %8355 = vmatprep.subr.bf16.mxu1 %v14633_v38  ;;  %v14721_v9 = vld [vmem:[#allocation7 + $0x3c0] ss:$16 sps:$4 sm:$0xff]   ;;  %v14724_v38 = vld [vmem:[#allocation7 + $0x3c8] ss:$16 sps:$4 sm:$0xff]  }
 0x5ab   :  { %8790 = vmatprep.subr.bf16.mxu0 %v14636_v46  ;;  %v14729_v46 = vld [vmem:[#allocation7 + $0x3e4] ss:$16 sps:$4 sm:$0xff]  }
 0x5ad   :  { %8356 = vmatpush1.bf16.msra.mxu1 %v14631_v49  ;;  %v14732_v49 = vld [vmem:[#allocation7 + $0x3ec] ss:$16 sps:$4 sm:$0xff]  }
 0x5ae   :  { %8791 = vmatpush1.bf16.msra.mxu0 %v14634_v20  ;;  %9390 = vmatprep.subr.bf16.mxu1 %v14639_v39  ;;  %v14727_v20 = vld [vmem:[#allocation7 + $0x3e0] ss:$16 sps:$4 sm:$0xff]   ;;  %v14730_v39 = vld [vmem:[#allocation7 + $0x3e8] ss:$16 sps:$4 sm:$0xff]  }
 0x5af   :  { %9431 = vmatprep.subr.bf16.mxu0 %v14642_v23  ;;  %v14735_v23 = vld [vmem:[#allocation7 + $0x4] ss:$16 sps:$4 sm:$0xff]  }
 0x5b0   :  { %8374 = vmatmul.mubr.bf16.vlgmr.msra.gmra.mrb[76].mxu1 %v16773_v16 }
 0x5b1   :  { %8809 = vmatmul.mubr.bf16.vlgmr.msra.gmra.mrb[72].mxu0 %v16773_v16  ;;  %8383 = vmatprep.mubr.bf16.mxu1 %v17193_v55  ;;  %v14660_v16 = vld [vmem:[#allocation7 + $0x26c] ss:$16 sps:$4 sm:$0xff]  }
 0x5b2   :  { %8818 = vmatprep.mubr.bf16.mxu0 %v17193_v55  ;;  %9391 = vmatpush1.bf16.msra.mxu1 %v14637_v22  ;;  %v14738_v22 = vld [vmem:[#allocation7 + $0xc] ss:$16 sps:$4 sm:$0xff]  }
 0x5b3   :  { %9432 = vmatpush1.bf16.msra.mxu0 %v14640_v44  ;;  %9392 = vmatprep.subr.bf16.mxu1 %v14645_v2 }
 0x5b4   :  { %9433 = vmatprep.subr.bf16.mxu0 %v14648_v42 }
 0x5b6   :  { %9393 = vmatpush1.bf16.msra.mxu1 %v14643_v45  ;;  %v8905_v45 = vld [vmem:[#allocation6] sm:$0x3] }
 0x5b7   :  { %9434 = vmatpush1.bf16.msra.mxu0 %v14646_v41  ;;  %9394 = vmatprep.subr.bf16.mxu1 %v14651_v34 }
 0x5b8   :  { %8384 = vmatmul.mubr.bf16.gmra.mrb[80].mxu1 %v16799_v3  ;;  %9435 = vmatprep.subr.bf16.mxu0 %v14654_v25 }
 0x5b9   :  { %8819 = vmatmul.mubr.bf16.gmra.mrb[76].mxu0 %v16799_v3  ;;  %8393 = vmatprep.mubr.bf16.mxu1 %v17193_v55  ;;  %v14672_v3 = vld [vmem:[#allocation7 + $0x2ac] ss:$16 sps:$4 sm:$0xff]  }
 0x5ba   :  { %8828 = vmatprep.mubr.bf16.mxu0 %v17193_v55  ;;  %9395 = vmatpush1.bf16.msra.mxu1 %v14649_v18 }
 0x5bb   :  { %9436 = vmatpush1.bf16.msra.mxu0 %v14652_v14  ;;  %9396 = vmatprep.subr.bf16.mxu1 %v14657_v24 }
 0x5bc   :  { %9437 = vmatprep.subr.bf16.mxu0 %v14660_v16  ;;  %v17201_v16 = vld [vmem:[#allocation35_spill] sm:$0xff] }
 0x5be   :  { %9397 = vmatpush1.bf16.msra.mxu1 %v14655_v54  ;;  %v17024_v54 = vrot.slane %v8905_v45, %v17201_v16 }
 0x5bf   :  { %9438 = vmatpush1.bf16.msra.mxu0 %v14658_v6  ;;  %9398 = vmatprep.subr.bf16.mxu1 %v14663_v51 }
 0x5c0   :  { %8394 = vmatmul.mubr.bf16.gmra.mrb[84].mxu1 %v16825_v29  ;;  %9439 = vmatprep.subr.bf16.mxu0 %v14666_v31 }
 0x5c1   :  { %8829 = vmatmul.mubr.bf16.gmra.mrb[80].mxu0 %v16825_v29  ;;  %8403 = vmatprep.mubr.bf16.mxu1 %v17193_v55  ;;  %v14684_v29 = vld [vmem:[#allocation7 + $0x2ec] ss:$16 sps:$4 sm:$0xff]  }
 0x5c2   :  { %8838 = vmatprep.mubr.bf16.mxu0 %v17193_v55  ;;  %9399 = vmatpush1.bf16.msra.mxu1 %v14661_v28  ;;  %v14679_v55 = vld [vmem:[#allocation7 + $0x2e0] ss:$16 sps:$4 sm:$0xff]  }
 0x5c3   :  { %9440 = vmatpush1.bf16.msra.mxu0 %v14664_v32  ;;  %9400 = vmatprep.subr.bf16.mxu1 %v14669_v48 }
 0x5c4   :  { %9441 = vmatprep.subr.bf16.mxu0 %v14672_v3 }
 0x5c6   :  { %9401 = vmatpush1.bf16.msra.mxu1 %v14667_v30 }
 0x5c7   :  { %9442 = vmatpush1.bf16.msra.mxu0 %v14670_v8  ;;  %9402 = vmatprep.subr.bf16.mxu1 %v14675_v56 }
 0x5c8   :  { %8404 = vmatmul.mubr.bf16.gmra.mrb[88].mxu1 %v16853_v61  ;;  %9443 = vmatprep.subr.bf16.mxu0 %v14678_v58 }
 0x5c9   :  { %8839 = vmatmul.mubr.bf16.gmra.mrb[84].mxu0 %v16853_v61  ;;  %v14694_v61 = vld [vmem:[#allocation7 + $0x328] ss:$16 sps:$4 sm:$0xff]  }
 0x5ca   :  { %9403 = vmatpush1.bf16.msra.mxu1 %v14673_v40 }
 0x5cb   :  { %9444 = vmatpush1.bf16.msra.mxu0 %v14676_v7  ;;  %9404 = vmatprep.subr.bf16.mxu1 %v14681_v37 }
 0x5cc   :  { %9445 = vmatprep.subr.bf16.mxu0 %v14684_v29  ;;  %v17202_v29 = vld [vmem:[#allocation36_spill] sm:$0xff] }
 0x5ce   :  { %9405 = vmatpush1.bf16.msra.mxu1 %v14679_v55  ;;  %v17030_v55 = vrot.slane %v8905_v45, %v17202_v29  ;;  %v14739_v45 = vld [vmem:[#allocation7 + $0x20] ss:$16 sps:$4 sm:$0xff]  }
 0x5cf   :  { %9446 = vmatpush1.bf16.msra.mxu0 %v14682_v33  ;;  %9406 = vmatprep.subr.bf16.mxu1 %v14687_v1 }
 0x5d0   :  { %9447 = vmatprep.subr.bf16.mxu0 %v14690_v12 }
 0x5d2   :  { %9407 = vmatpush1.bf16.msra.mxu1 %v14685_v4 }
 0x5d3   :  { %9448 = vmatpush1.bf16.msra.mxu0 %v14688_v11  ;;  %9408 = vmatprep.subr.bf16.mxu1 %v14693_v5 }
 0x5d4   :  { %9449 = vmatprep.subr.bf16.mxu0 %v14696_v60 }
 0x5d6   :  { %9409 = vmatpush1.bf16.msra.mxu1 %v14691_v50 }
 0x5d7   :  { %9450 = vmatpush1.bf16.msra.mxu0 %v14694_v61  ;;  %9410 = vmatprep.subr.bf16.mxu1 %v14699_v52 }
 0x5d8   :  { %9451 = vmatprep.subr.bf16.mxu0 %v14702_v53 }
 0x5da   :  { %9411 = vmatpush1.bf16.msra.mxu1 %v14697_v57 }
 0x5db   :  { %9452 = vmatpush1.bf16.msra.mxu0 %v14700_v13  ;;  %9412 = vmatprep.subr.bf16.mxu1 %v14705_v26 }
 0x5dc   :  { %9453 = vmatprep.subr.bf16.mxu0 %v14708_v47 }
 0x5de   :  { %9413 = vmatpush1.bf16.msra.mxu1 %v14703_v21 }
 0x5df   :  { %9454 = vmatpush1.bf16.msra.mxu0 %v14706_v59  ;;  %9414 = vmatprep.subr.bf16.mxu1 %v14711_v36 }
 0x5e0   :  { %9455 = vmatprep.subr.bf16.mxu0 %v14714_v43 }
 0x5e2   :  { %9415 = vmatpush1.bf16.msra.mxu1 %v14709_v0 }
 0x5e3   :  { %9456 = vmatpush1.bf16.msra.mxu0 %v14712_v27  ;;  %9416 = vmatprep.subr.bf16.mxu1 %v14717_v10 }
 0x5e4   :  { %9457 = vmatprep.subr.bf16.mxu0 %v14720_v15 }
 0x5e6   :  { %9417 = vmatpush1.bf16.msra.mxu1 %v14715_v17 }
 0x5e7   :  { %9458 = vmatpush1.bf16.msra.mxu0 %v14718_v35  ;;  %9418 = vmatprep.subr.bf16.mxu1 %v14723_v62  ;;  %v14733_v62 = vld [vmem:[#allocation7] ss:$16 sps:$4 sm:$0xff]  }
 0x5e8   :  { %9459 = vmatprep.subr.bf16.mxu0 %v14726_v19  ;;  %v14736_v19 = vld [vmem:[#allocation7 + $0x8] ss:$16 sps:$4 sm:$0xff]  }
 0x5ea   :  { %9419 = vmatpush1.bf16.msra.mxu1 %v14721_v9 }
 0x5eb   :  { %9460 = vmatpush1.bf16.msra.mxu0 %v14724_v38  ;;  %9420 = vmatprep.subr.bf16.mxu1 %v14729_v46 }
 0x5ec   :  { %9461 = vmatprep.subr.bf16.mxu0 %v14732_v49  ;;  %v14741_v49 = vld [vmem:[#allocation7 + $0x24] ss:$16 sps:$4 sm:$0xff]  }
 0x5ee   :  { %9421 = vmatpush1.bf16.msra.mxu1 %v14727_v20  ;;  %v14744_v20 = vld [vmem:[#allocation7 + $0x2c] ss:$16 sps:$4 sm:$0xff]  }
 0x5ef   :  { %9462 = vmatpush1.bf16.msra.mxu0 %v14730_v39  ;;  %9792 = vmatprep.subr.bf16.mxu1 %v14735_v23 }
 0x5f0   :  { %9833 = vmatprep.subr.bf16.mxu0 %v14738_v22 }
 0x683   :  { %v8375_v44 = vpop.f32.mrb[76].mxu1 }
 0x684   :  { %v8810_v2 = vpop.f32.mrb[72].mxu0  ;;  %v8377_v42 = vpop.f32.mrb[77].mxu1 }
 0x685   :  { %v8812_v41 = vpop.f32.mrb[73].mxu0  ;;  %v8379_v34 = vpop.f32.mrb[78].mxu1 }
 0x686   :  { %v8881_v25 = vmax.f32 %v8375_v44, %v8379_v34  ;;  %v8814_v18 = vpop.f32.mrb[74].mxu0  ;;  %v8381_v14 = vpop.f32.mrb[79].mxu1 }
 0x687   :  { %v8889_v24 = vmax.f32 %v8810_v2, %v8814_v18  ;;  %v8882_v6 = vmax.f32 %v8377_v42, %v8381_v14  ;;  %v8816_v51 = vpop.f32.mrb[75].mxu0  ;;  %v14747_v18 = vld [vmem:[#allocation7 + $0x44] ss:$16 sps:$4 sm:$0xff]   ;;  %v14750_v14 = vld [vmem:[#allocation7 + $0x4c] ss:$16 sps:$4 sm:$0xff]  }
 0x688   :  { %v8890_v31 = vmax.f32 %v8812_v41, %v8816_v51  ;;  %v14742_v41 = vld [vmem:[#allocation7 + $0x28] ss:$16 sps:$4 sm:$0xff]  }
 0x689   :  { %v8897_v28 = vmax.f32 %v8881_v25, %v8889_v24 }
 0x68a   :  { %v8898_v32 = vmax.f32 %v8882_v6, %v8890_v31 }
 0x68b   :  { %v17027_v48 = vadd.f32 %v17024_v54, %v8897_v28  ;;  %v8385_v3 = vpop.f32.mrb[80].mxu1 }
 0x68c   :  { %v8820_v30 = vpop.f32.mrb[76].mxu0  ;;  %v8387_v8 = vpop.f32.mrb[81].mxu1  ;;  %v8918_v60 = vadd.f32 %v17030_v55, %v8898_v32 }
 0x68d   :  { %v8822_v56 = vpop.f32.mrb[77].mxu0  ;;  %v8389_v58 = vpop.f32.mrb[82].mxu1 }
 0x68e   :  { %v8883_v40 = vmax.f32 %v8385_v3, %v8389_v58  ;;  %v8824_v7 = vpop.f32.mrb[78].mxu0  ;;  %v8391_v37 = vpop.f32.mrb[83].mxu1  ;;  %v8926_v15 = vmax.f32 %v8918_v60, 0.0  ;;  %v14753_v58 = vld [vmem:[#allocation7 + $0x64] ss:$16 sps:$4 sm:$0xff]  }
 0x68f   :  { %v8891_v33 = vmax.f32 %v8820_v30, %v8824_v7  ;;  %v8884_v1 = vmax.f32 %v8387_v8, %v8391_v37  ;;  %v8826_v12 = vpop.f32.mrb[79].mxu0  ;;  %v14745_v30 = vld [vmem:[#allocation7 + $0x40] ss:$16 sps:$4 sm:$0xff]   ;;  %v14748_v8 = vld [vmem:[#allocation7 + $0x48] ss:$16 sps:$4 sm:$0xff]  }
 0x690   :  { %v8892_v4 = vmax.f32 %v8822_v56, %v8826_v12  ;;  %v8934_v22 = vpack.c.bf16 %v8926_v15, %v8926_v15  ;;  %v14754_v12 = vld [vmem:[#allocation7 + $0x68] ss:$16 sps:$4 sm:$0xff]   ;;  %v14792_v15 = vld [vmem:[#allocation7 + $0x12c] ss:$16 sps:$4 sm:$0xff]  }
 0x691   :  { %v8899_v11 = vmax.f32 %v8883_v40, %v8891_v33  ;;  %v14756_v40 = vld [vmem:[#allocation7 + $0x6c] ss:$16 sps:$4 sm:$0xff]   ;;  %v14760_v60 = vld [vmem:[#allocation7 + $0x88] ss:$16 sps:$4 sm:$0xff]  }
 0x692   :  { %v8900_v5 = vmax.f32 %v8884_v1, %v8892_v4  ;;  %v14751_v1 = vld [vmem:[#allocation7 + $0x60] ss:$16 sps:$4 sm:$0xff]   ;;  %v14759_v4 = vld [vmem:[#allocation7 + $0x84] ss:$16 sps:$4 sm:$0xff]  }
 0x693   :  { %v8919_v50 = vadd.f32 %v17024_v54, %v8899_v11  ;;  %v8395_v61 = vpop.f32.mrb[84].mxu1  ;;  %v14762_v11 = vld [vmem:[#allocation7 + $0x8c] ss:$16 sps:$4 sm:$0xff]  }
 0x694   :  { %v8920_v52 = vadd.f32 %v17030_v55, %v8900_v5  ;;  %v8830_v53 = vpop.f32.mrb[80].mxu0  ;;  %v8397_v57 = vpop.f32.mrb[85].mxu1  ;;  %v14757_v5 = vld [vmem:[#allocation7 + $0x80] ss:$16 sps:$4 sm:$0xff]  }
 0x695   :  { %v8927_v13 = vmax.f32 %v8919_v50, 0.0  ;;  %v8832_v26 = vpop.f32.mrb[81].mxu0  ;;  %v8399_v47 = vpop.f32.mrb[86].mxu1  ;;  %v14765_v50 = vld [vmem:[#allocation7 + $0xa4] ss:$16 sps:$4 sm:$0xff]  }
 0x696   :  { %v8885_v21 = vmax.f32 %v8395_v61, %v8399_v47  ;;  %v8834_v59 = vpop.f32.mrb[82].mxu0  ;;  %v8401_v36 = vpop.f32.mrb[87].mxu1  ;;  %v8928_v43 = vmax.f32 %v8920_v52, 0.0  ;;  %v14766_v61 = vld [vmem:[#allocation7 + $0xa8] ss:$16 sps:$4 sm:$0xff]  }
 0x697   :  { %v8893_v0 = vmax.f32 %v8830_v53, %v8834_v59  ;;  %v8886_v27 = vmax.f32 %v8397_v57, %v8401_v36  ;;  %v8836_v10 = vpop.f32.mrb[83].mxu0  ;;  %v8935_v9 = vpack.c.bf16 %v8927_v13, %v8927_v13  ;;  %v14771_v52 = vld [vmem:[#allocation7 + $0xc4] ss:$16 sps:$4 sm:$0xff]   ;;  %v14774_v53 = vld [vmem:[#allocation7 + $0xcc] ss:$16 sps:$4 sm:$0xff]  }
 0x698   :  { %v8894_v17 = vmax.f32 %v8832_v26, %v8836_v10  ;;  %v8936_v35 = vpack.c.bf16 %v8928_v43, %v8928_v43  ;;  %v14769_v57 = vld [vmem:[#allocation7 + $0xc0] ss:$16 sps:$4 sm:$0xff]   ;;  %v14772_v13 = vld [vmem:[#allocation7 + $0xc8] ss:$16 sps:$4 sm:$0xff]   ;;  %v14777_v26 = vld [vmem:[#allocation7 + $0xe4] ss:$16 sps:$4 sm:$0xff]  }
 0x699   :  { %v8901_v38 = vmax.f32 %v8885_v21, %v8893_v0  ;;  %v14780_v47 = vld [vmem:[#allocation7 + $0xec] ss:$16 sps:$4 sm:$0xff]   ;;  %v14775_v21 = vld [vmem:[#allocation7 + $0xe0] ss:$16 sps:$4 sm:$0xff]   ;;  %v14778_v59 = vld [vmem:[#allocation7 + $0xe8] ss:$16 sps:$4 sm:$0xff]  }
 0x69a   :  { %v8902_v46 = vmax.f32 %v8886_v27, %v8894_v17  ;;  %9422 = vmatprep.mubr.bf16.mxu1 %v8936_v35  ;;  %9463 = vmatprep.mubr.bf16.mxu0 %v8936_v35  ;;  %v14783_v36 = vld [vmem:[#allocation7 + $0x104] ss:$16 sps:$4 sm:$0xff]   ;;  %v14786_v43 = vld [vmem:[#allocation7 + $0x10c] ss:$16 sps:$4 sm:$0xff]   ;;  %v14781_v0 = vld [vmem:[#allocation7 + $0x100] ss:$16 sps:$4 sm:$0xff]  }
 0x69b   :  { %v17036_v39 = vadd.f32 %v17024_v54, %v8901_v38  ;;  %9423 = vmatmul.mubr.bf16.vlgmr.msra.gmra.mrb[92].mxu1 %v8935_v9  ;;  %9464 = vmatmul.mubr.bf16.vlgmr.msra.gmra.mrb[88].mxu0 %v8935_v9  ;;  %v8405_v23 = vpop.f32.mrb[88].mxu1  ;;  %v14784_v27 = vld [vmem:[#allocation7 + $0x108] ss:$16 sps:$4 sm:$0xff]   ;;  %v14789_v10 = vld [vmem:[#allocation7 + $0x124] ss:$16 sps:$4 sm:$0xff]  }
 0x69c   :  { %v17039_v44 = vadd.f32 %v17030_v55, %v8902_v46  ;;  %9793 = vmatpush1.bf16.msra.mxu1 %v14733_v62  ;;  %9834 = vmatpush1.bf16.msra.mxu0 %v14736_v19  ;;  %v8840_v2 = vpop.f32.mrb[84].mxu0  ;;  %v8407_v42 = vpop.f32.mrb[89].mxu1  ;;  %v14787_v17 = vld [vmem:[#allocation7 + $0x120] ss:$16 sps:$4 sm:$0xff]   ;;  %v14790_v35 = vld [vmem:[#allocation7 + $0x128] ss:$16 sps:$4 sm:$0xff]  }
 0x69d   :  { %9824 = vmatprep.mubr.bf16.mxu1 %v8934_v22  ;;  %9865 = vmatprep.mubr.bf16.mxu0 %v8934_v22  ;;  %v8842_v34 = vpop.f32.mrb[85].mxu0  ;;  %v8409_v25 = vpop.f32.mrb[90].mxu1  ;;  %v14795_v62 = vld [vmem:[#allocation7 + $0x144] ss:$16 sps:$4 sm:$0xff]   ;;  %v14798_v19 = vld [vmem:[#allocation7 + $0x14c] ss:$16 sps:$4 sm:$0xff]  }
 0x69e   :  { %v8887_v24 = vmax.f32 %v8405_v23, %v8409_v25  ;;  %v8844_v6 = vpop.f32.mrb[86].mxu0  ;;  %9794 = vmatprep.subr.bf16.mxu1 %v14741_v49  ;;  %9835 = vmatprep.subr.bf16.mxu0 %v14744_v20  ;;  %v8411_v51 = vpop.f32.mrb[91].mxu1  ;;  %v14793_v9 = vld [vmem:[#allocation7 + $0x140] ss:$16 sps:$4 sm:$0xff]   ;;  %v14796_v38 = vld [vmem:[#allocation7 + $0x148] ss:$16 sps:$4 sm:$0xff]  }
 0x69f   :  { %v8895_v31 = vmax.f32 %v8840_v2, %v8844_v6  ;;  %v8888_v28 = vmax.f32 %v8407_v42, %v8411_v51  ;;  %v8846_v32 = vpop.f32.mrb[87].mxu0  ;;  %v14801_v46 = vld [vmem:[#allocation7 + $0x164] ss:$16 sps:$4 sm:$0xff]   ;;  %v14804_v49 = vld [vmem:[#allocation7 + $0x16c] ss:$16 sps:$4 sm:$0xff]  }
 0x6a0   :  { %v8896_v3 = vmax.f32 %v8842_v34, %v8846_v32  ;;  %9795 = vmatpush1.bf16.msra.mxu1 %v14739_v45  ;;  %9836 = vmatpush1.bf16.msra.mxu0 %v14742_v41  ;;  %v14799_v20 = vld [vmem:[#allocation7 + $0x160] ss:$16 sps:$4 sm:$0xff]   ;;  %v14802_v23 = vld [vmem:[#allocation7 + $0x168] ss:$16 sps:$4 sm:$0xff]   ;;  %v14807_v22 = vld [vmem:[#allocation7 + $0x184] ss:$16 sps:$4 sm:$0xff]  }
 0x6a1   :  { %v8903_v56 = vmax.f32 %v8887_v24, %v8895_v31  ;;  %9796 = vmatprep.subr.bf16.mxu1 %v14747_v18  ;;  %9837 = vmatprep.subr.bf16.mxu0 %v14750_v14  ;;  %v14810_v2 = vld [vmem:[#allocation7 + $0x18c] ss:$16 sps:$4 sm:$0xff]   ;;  %v14805_v42 = vld [vmem:[#allocation7 + $0x180] ss:$16 sps:$4 sm:$0xff]   ;;  %v14808_v45 = vld [vmem:[#allocation7 + $0x188] ss:$16 sps:$4 sm:$0xff]  }
 0x6a2   :  { %v8904_v7 = vmax.f32 %v8888_v28, %v8896_v3  ;;  %v14813_v41 = vld [vmem:[#allocation7 + $0x1a4] ss:$16 sps:$4 sm:$0xff]   ;;  %v14816_v34 = vld [vmem:[#allocation7 + $0x1ac] ss:$16 sps:$4 sm:$0xff]   ;;  %v14811_v25 = vld [vmem:[#allocation7 + $0x1a0] ss:$16 sps:$4 sm:$0xff]  }
 0x6a3   :  { %v17042_v37 = vadd.f32 %v17024_v54, %v8903_v56  ;;  %v14768_v54 = vld [vmem:[#allocation7 + $0xac] ss:$16 sps:$4 sm:$0xff]   ;;  %v14814_v18 = vld [vmem:[#allocation7 + $0x1a8] ss:$16 sps:$4 sm:$0xff]   ;;  %v14819_v14 = vld [vmem:[#allocation7 + $0x1c4] ss:$16 sps:$4 sm:$0xff]  }
 0x6a4   :  { %v17045_v33 = vadd.f32 %v17030_v55, %v8904_v7  ;;  %9797 = vmatpush1.bf16.msra.mxu1 %v14745_v30  ;;  %9838 = vmatpush1.bf16.msra.mxu0 %v14748_v8  ;;  %v14763_v55 = vld [vmem:[#allocation7 + $0xa0] ss:$16 sps:$4 sm:$0xff]   ;;  %v14822_v24 = vld [vmem:[#allocation7 + $0x1cc] ss:$16 sps:$4 sm:$0xff]   ;;  %v14820_v51 = vld [vmem:[#allocation7 + $0x1c8] ss:$16 sps:$4 sm:$0xff]  }
 0x6a5   :  { %9798 = vmatprep.subr.bf16.mxu1 %v14753_v58  ;;  %9839 = vmatprep.subr.bf16.mxu0 %v14756_v40  ;;  %v14817_v6 = vld [vmem:[#allocation7 + $0x1c0] ss:$16 sps:$4 sm:$0xff]   ;;  %v14825_v31 = vld [vmem:[#allocation7 + $0x1e4] ss:$16 sps:$4 sm:$0xff]   ;;  %v14828_v28 = vld [vmem:[#allocation7 + $0x1ec] ss:$16 sps:$4 sm:$0xff]  }
 0x6a6   :  { %v14823_v32 = vld [vmem:[#allocation7 + $0x1e0] ss:$16 sps:$4 sm:$0xff]   ;;  %v14826_v3 = vld [vmem:[#allocation7 + $0x1e8] ss:$16 sps:$4 sm:$0xff]   ;;  %v8925_v30 = vmax.f32 %v17027_v48, 0.0  ;;  %v8930_v58 = vmax.f32 %v17039_v44, 0.0 }
 0x6a7   :  { %v14831_v8 = vld [vmem:[#allocation7 + $0x404] ss:$16 sps:$4 sm:$0xff]   ;;  %v14834_v56 = vld [vmem:[#allocation7 + $0x40c] ss:$16 sps:$4 sm:$0xff]   ;;  %v14829_v40 = vld [vmem:[#allocation7 + $0x400] ss:$16 sps:$4 sm:$0xff]  }
 0x6a8   :  { %9799 = vmatpush1.bf16.msra.mxu1 %v14751_v1  ;;  %9840 = vmatpush1.bf16.msra.mxu0 %v14754_v12  ;;  %v8933_v7 = vpack.c.bf16 %v8925_v30, %v8925_v30  ;;  %v14832_v1 = vld [vmem:[#allocation7 + $0x408] ss:$16 sps:$4 sm:$0xff]   ;;  %v8938_v12 = vpack.c.bf16 %v8930_v58, %v8930_v58  ;;  %v14835_v48 = vld [vmem:[#allocation7 + $0x420] ss:$16 sps:$4 sm:$0xff]   ;;  %v14846_v44 = vld [vmem:[#allocation7 + $0x44c] ss:$16 sps:$4 sm:$0xff]  }
 0x6a9   :  { %9800 = vmatprep.subr.bf16.mxu1 %v14759_v4  ;;  %9841 = vmatprep.subr.bf16.mxu0 %v14762_v11  ;;  %v14837_v4 = vld [vmem:[#allocation7 + $0x424] ss:$16 sps:$4 sm:$0xff]   ;;  %v14840_v11 = vld [vmem:[#allocation7 + $0x42c] ss:$16 sps:$4 sm:$0xff]   ;;  %v14907_v30 = vld [vmem:[#allocation7 + $0x5a0] ss:$16 sps:$4 sm:$0xff]  }
 0x6aa   :  { %v14918_v58 = vld [vmem:[#allocation7 + $0x5cc] ss:$16 sps:$4 sm:$0xff]  }
 0x6ac   :  { %9801 = vmatpush1.bf16.msra.mxu1 %v14757_v5  ;;  %9842 = vmatpush1.bf16.msra.mxu0 %v14760_v60  ;;  %v14838_v5 = vld [vmem:[#allocation7 + $0x428] ss:$16 sps:$4 sm:$0xff]   ;;  %v14843_v60 = vld [vmem:[#allocation7 + $0x444] ss:$16 sps:$4 sm:$0xff]  }
 0x6ad   :  { %9802 = vmatprep.subr.bf16.mxu1 %v14765_v50  ;;  %9843 = vmatprep.subr.bf16.mxu0 %v14768_v54  ;;  %v14841_v50 = vld [vmem:[#allocation7 + $0x440] ss:$16 sps:$4 sm:$0xff]   ;;  %v14844_v54 = vld [vmem:[#allocation7 + $0x448] ss:$16 sps:$4 sm:$0xff]  }
 0x6b0   :  { %9803 = vmatpush1.bf16.msra.mxu1 %v14763_v55  ;;  %9844 = vmatpush1.bf16.msra.mxu0 %v14766_v61  ;;  %v14849_v55 = vld [vmem:[#allocation7 + $0x464] ss:$16 sps:$4 sm:$0xff]   ;;  %v14852_v61 = vld [vmem:[#allocation7 + $0x46c] ss:$16 sps:$4 sm:$0xff]  }
 0x6b1   :  { %9804 = vmatprep.subr.bf16.mxu1 %v14771_v52  ;;  %9845 = vmatprep.subr.bf16.mxu0 %v14774_v53  ;;  %v14847_v52 = vld [vmem:[#allocation7 + $0x460] ss:$16 sps:$4 sm:$0xff]   ;;  %v14850_v53 = vld [vmem:[#allocation7 + $0x468] ss:$16 sps:$4 sm:$0xff]  }
 0x6b4   :  { %9805 = vmatpush1.bf16.msra.mxu1 %v14769_v57  ;;  %9846 = vmatpush1.bf16.msra.mxu0 %v14772_v13  ;;  %v14855_v57 = vld [vmem:[#allocation7 + $0x484] ss:$16 sps:$4 sm:$0xff]   ;;  %v14858_v13 = vld [vmem:[#allocation7 + $0x48c] ss:$16 sps:$4 sm:$0xff]  }
 0x6b5   :  { %9806 = vmatprep.subr.bf16.mxu1 %v14777_v26  ;;  %9847 = vmatprep.subr.bf16.mxu0 %v14780_v47  ;;  %v14853_v26 = vld [vmem:[#allocation7 + $0x480] ss:$16 sps:$4 sm:$0xff]   ;;  %v14856_v47 = vld [vmem:[#allocation7 + $0x488] ss:$16 sps:$4 sm:$0xff]  }
 0x6b8   :  { %9807 = vmatpush1.bf16.msra.mxu1 %v14775_v21  ;;  %9848 = vmatpush1.bf16.msra.mxu0 %v14778_v59  ;;  %v14861_v21 = vld [vmem:[#allocation7 + $0x4a4] ss:$16 sps:$4 sm:$0xff]   ;;  %v14864_v59 = vld [vmem:[#allocation7 + $0x4ac] ss:$16 sps:$4 sm:$0xff]  }
 0x6b9   :  { %9808 = vmatprep.subr.bf16.mxu1 %v14783_v36  ;;  %9849 = vmatprep.subr.bf16.mxu0 %v14786_v43  ;;  %v14859_v36 = vld [vmem:[#allocation7 + $0x4a0] ss:$16 sps:$4 sm:$0xff]   ;;  %v14862_v43 = vld [vmem:[#allocation7 + $0x4a8] ss:$16 sps:$4 sm:$0xff]  }
 0x6bc   :  { %9809 = vmatpush1.bf16.msra.mxu1 %v14781_v0  ;;  %9850 = vmatpush1.bf16.msra.mxu0 %v14784_v27  ;;  %v14867_v0 = vld [vmem:[#allocation7 + $0x4c4] ss:$16 sps:$4 sm:$0xff]   ;;  %v14870_v27 = vld [vmem:[#allocation7 + $0x4cc] ss:$16 sps:$4 sm:$0xff]  }
 0x6bd   :  { %9810 = vmatprep.subr.bf16.mxu1 %v14789_v10  ;;  %9851 = vmatprep.subr.bf16.mxu0 %v14792_v15  ;;  %v14865_v10 = vld [vmem:[#allocation7 + $0x4c0] ss:$16 sps:$4 sm:$0xff]   ;;  %v14868_v15 = vld [vmem:[#allocation7 + $0x4c8] ss:$16 sps:$4 sm:$0xff]  }
 0x6c0   :  { %9811 = vmatpush1.bf16.msra.mxu1 %v14787_v17  ;;  %9852 = vmatpush1.bf16.msra.mxu0 %v14790_v35  ;;  %v14873_v17 = vld [vmem:[#allocation7 + $0x4e4] ss:$16 sps:$4 sm:$0xff]   ;;  %v14876_v35 = vld [vmem:[#allocation7 + $0x4ec] ss:$16 sps:$4 sm:$0xff]  }
 0x6c1   :  { %9812 = vmatprep.subr.bf16.mxu1 %v14795_v62  ;;  %9853 = vmatprep.subr.bf16.mxu0 %v14798_v19  ;;  %v14871_v62 = vld [vmem:[#allocation7 + $0x4e0] ss:$16 sps:$4 sm:$0xff]   ;;  %v14874_v19 = vld [vmem:[#allocation7 + $0x4e8] ss:$16 sps:$4 sm:$0xff]  }
 0x6c4   :  { %9813 = vmatpush1.bf16.msra.mxu1 %v14793_v9  ;;  %9854 = vmatpush1.bf16.msra.mxu0 %v14796_v38  ;;  %v14879_v9 = vld [vmem:[#allocation7 + $0x504] ss:$16 sps:$4 sm:$0xff]   ;;  %v14882_v38 = vld [vmem:[#allocation7 + $0x50c] ss:$16 sps:$4 sm:$0xff]  }
 0x6c5   :  { %9814 = vmatprep.subr.bf16.mxu1 %v14801_v46  ;;  %9855 = vmatprep.subr.bf16.mxu0 %v14804_v49  ;;  %v14877_v46 = vld [vmem:[#allocation7 + $0x500] ss:$16 sps:$4 sm:$0xff]   ;;  %v14880_v49 = vld [vmem:[#allocation7 + $0x508] ss:$16 sps:$4 sm:$0xff]  }
 0x6c8   :  { %9815 = vmatpush1.bf16.msra.mxu1 %v14799_v20  ;;  %9856 = vmatpush1.bf16.msra.mxu0 %v14802_v23  ;;  %v14885_v20 = vld [vmem:[#allocation7 + $0x524] ss:$16 sps:$4 sm:$0xff]   ;;  %v14888_v23 = vld [vmem:[#allocation7 + $0x52c] ss:$16 sps:$4 sm:$0xff]  }
 0x6c9   :  { %9816 = vmatprep.subr.bf16.mxu1 %v14807_v22  ;;  %9857 = vmatprep.subr.bf16.mxu0 %v14810_v2  ;;  %v14883_v22 = vld [vmem:[#allocation7 + $0x520] ss:$16 sps:$4 sm:$0xff]   ;;  %v14886_v2 = vld [vmem:[#allocation7 + $0x528] ss:$16 sps:$4 sm:$0xff]  }
 0x6cc   :  { %9817 = vmatpush1.bf16.msra.mxu1 %v14805_v42  ;;  %9858 = vmatpush1.bf16.msra.mxu0 %v14808_v45  ;;  %v14891_v42 = vld [vmem:[#allocation7 + $0x544] ss:$16 sps:$4 sm:$0xff]   ;;  %v14894_v45 = vld [vmem:[#allocation7 + $0x54c] ss:$16 sps:$4 sm:$0xff]  }
 0x6cd   :  { %9818 = vmatprep.subr.bf16.mxu1 %v14813_v41  ;;  %9859 = vmatprep.subr.bf16.mxu0 %v14816_v34  ;;  %v14889_v41 = vld [vmem:[#allocation7 + $0x540] ss:$16 sps:$4 sm:$0xff]   ;;  %v14892_v34 = vld [vmem:[#allocation7 + $0x548] ss:$16 sps:$4 sm:$0xff]  }
 0x6d0   :  { %9819 = vmatpush1.bf16.msra.mxu1 %v14811_v25  ;;  %9860 = vmatpush1.bf16.msra.mxu0 %v14814_v18  ;;  %v14897_v25 = vld [vmem:[#allocation7 + $0x564] ss:$16 sps:$4 sm:$0xff]   ;;  %v14900_v18 = vld [vmem:[#allocation7 + $0x56c] ss:$16 sps:$4 sm:$0xff]  }
 0x6d1   :  { %9820 = vmatprep.subr.bf16.mxu1 %v14819_v14  ;;  %9861 = vmatprep.subr.bf16.mxu0 %v14822_v24  ;;  %v14895_v14 = vld [vmem:[#allocation7 + $0x560] ss:$16 sps:$4 sm:$0xff]   ;;  %v14898_v24 = vld [vmem:[#allocation7 + $0x568] ss:$16 sps:$4 sm:$0xff]  }
 0x6d4   :  { %9821 = vmatpush1.bf16.msra.mxu1 %v14817_v6  ;;  %9862 = vmatpush1.bf16.msra.mxu0 %v14820_v51  ;;  %v14903_v6 = vld [vmem:[#allocation7 + $0x584] ss:$16 sps:$4 sm:$0xff]   ;;  %v14906_v51 = vld [vmem:[#allocation7 + $0x58c] ss:$16 sps:$4 sm:$0xff]  }
 0x6d5   :  { %9822 = vmatprep.subr.bf16.mxu1 %v14825_v31  ;;  %9863 = vmatprep.subr.bf16.mxu0 %v14828_v28  ;;  %v14901_v31 = vld [vmem:[#allocation7 + $0x580] ss:$16 sps:$4 sm:$0xff]   ;;  %v14904_v28 = vld [vmem:[#allocation7 + $0x588] ss:$16 sps:$4 sm:$0xff]  }
 0x6d8   :  { %9823 = vmatpush1.bf16.msra.mxu1 %v14823_v32  ;;  %9864 = vmatpush1.bf16.msra.mxu0 %v14826_v3  ;;  %v14909_v32 = vld [vmem:[#allocation7 + $0x5a4] ss:$16 sps:$4 sm:$0xff]   ;;  %v14912_v3 = vld [vmem:[#allocation7 + $0x5ac] ss:$16 sps:$4 sm:$0xff]  }
 0x6d9   :  { %10259 = vmatprep.subr.bf16.mxu1 %v14831_v8  ;;  %10300 = vmatprep.subr.bf16.mxu0 %v14834_v56  ;;  %v14910_v8 = vld [vmem:[#allocation7 + $0x5a8] ss:$16 sps:$4 sm:$0xff]   ;;  %v14915_v56 = vld [vmem:[#allocation7 + $0x5c4] ss:$16 sps:$4 sm:$0xff]  }
 0x6db   :  { %9825 = vmatmul.mubr.bf16.vlgmr.msra.gmra.mrb[96].mxu1 %v8933_v7  ;;  %9866 = vmatmul.mubr.bf16.vlgmr.msra.gmra.mrb[92].mxu0 %v8933_v7  ;;  %v14916_v7 = vld [vmem:[#allocation7 + $0x5c8] ss:$16 sps:$4 sm:$0xff]  }
 0x6dc   :  { %10260 = vmatpush1.bf16.msra.mxu1 %v14829_v40  ;;  %10291 = vmatprep.mubr.bf16.mxu1 %v8938_v12  ;;  %v14913_v40 = vld [vmem:[#allocation7 + $0x5c0] ss:$16 sps:$4 sm:$0xff]  }
 0x6dd   :  { %10301 = vmatpush1.bf16.msra.mxu0 %v14832_v1  ;;  %10332 = vmatprep.mubr.bf16.mxu0 %v8938_v12  ;;  %v14921_v1 = vld [vmem:[#allocation7 + $0x5e4] ss:$16 sps:$4 sm:$0xff]   ;;  %v14924_v12 = vld [vmem:[#allocation7 + $0x5ec] ss:$16 sps:$4 sm:$0xff]  }
 0x6de   :  { %10261 = vmatprep.subr.bf16.mxu1 %v14837_v4  ;;  %10302 = vmatprep.subr.bf16.mxu0 %v14840_v11  ;;  %v14919_v4 = vld [vmem:[#allocation7 + $0x5e0] ss:$16 sps:$4 sm:$0xff]   ;;  %v8929_v11 = vmax.f32 %v17036_v39, 0.0 }
 0x6df   :  { %v14931_v39 = vld [vmem:[#allocation7 + $0x620] ss:$16 sps:$4 sm:$0xff]  }
 0x6e0   :  { %10262 = vmatpush1.bf16.msra.mxu1 %v14835_v48  ;;  %v14922_v48 = vld [vmem:[#allocation7 + $0x5e8] ss:$16 sps:$4 sm:$0xff]  }
 0x6e1   :  { %10303 = vmatpush1.bf16.msra.mxu0 %v14838_v5  ;;  %10263 = vmatprep.subr.bf16.mxu1 %v14843_v60  ;;  %v14927_v5 = vld [vmem:[#allocation7 + $0x604] ss:$16 sps:$4 sm:$0xff]   ;;  %v14930_v60 = vld [vmem:[#allocation7 + $0x60c] ss:$16 sps:$4 sm:$0xff]  }
 0x6e2   :  { %10304 = vmatprep.subr.bf16.mxu0 %v14846_v44  ;;  %v8932_v44 = vmax.f32 %v17045_v33, 0.0  ;;  %v14942_v33 = vld [vmem:[#allocation7 + $0x64c] ss:$16 sps:$4 sm:$0xff]  }
 0x6e4   :  { %10264 = vmatpush1.bf16.msra.mxu1 %v14841_v50  ;;  %v14925_v50 = vld [vmem:[#allocation7 + $0x600] ss:$16 sps:$4 sm:$0xff]  }
 0x6e5   :  { %10305 = vmatpush1.bf16.msra.mxu0 %v14844_v54  ;;  %10265 = vmatprep.subr.bf16.mxu1 %v14849_v55  ;;  %v8937_v54 = vpack.c.bf16 %v8929_v11, %v8929_v11  ;;  %v14928_v55 = vld [vmem:[#allocation7 + $0x608] ss:$16 sps:$4 sm:$0xff]  }
 0x6e6   :  { %10306 = vmatprep.subr.bf16.mxu0 %v14852_v61  ;;  %v14933_v61 = vld [vmem:[#allocation7 + $0x624] ss:$16 sps:$4 sm:$0xff]   ;;  %v15006_v11 = vld [vmem:[#allocation7 + $0x7a8] ss:$16 sps:$4 sm:$0xff]  }
 0x6e8   :  { %10266 = vmatpush1.bf16.msra.mxu1 %v14847_v52  ;;  %v8940_v52 = vpack.c.bf16 %v8932_v44, %v8932_v44  ;;  %v15012_v44 = vld [vmem:[#allocation7 + $0x7c8] ss:$16 sps:$4 sm:$0xff]  }
 0x6e9   :  { %10307 = vmatpush1.bf16.msra.mxu0 %v14850_v53  ;;  %10267 = vmatprep.subr.bf16.mxu1 %v14855_v57  ;;  %v14936_v53 = vld [vmem:[#allocation7 + $0x62c] ss:$16 sps:$4 sm:$0xff]   ;;  %v14934_v57 = vld [vmem:[#allocation7 + $0x628] ss:$16 sps:$4 sm:$0xff]  }
 0x6ea   :  { %10308 = vmatprep.subr.bf16.mxu0 %v14858_v13  ;;  %v14939_v13 = vld [vmem:[#allocation7 + $0x644] ss:$16 sps:$4 sm:$0xff]  }
 0x6ec   :  { %10268 = vmatpush1.bf16.msra.mxu1 %v14853_v26  ;;  %v14937_v26 = vld [vmem:[#allocation7 + $0x640] ss:$16 sps:$4 sm:$0xff]  }
 0x6ed   :  { %10309 = vmatpush1.bf16.msra.mxu0 %v14856_v47  ;;  %10269 = vmatprep.subr.bf16.mxu1 %v14861_v21  ;;  %v14940_v47 = vld [vmem:[#allocation7 + $0x648] ss:$16 sps:$4 sm:$0xff]   ;;  %v14945_v21 = vld [vmem:[#allocation7 + $0x664] ss:$16 sps:$4 sm:$0xff]  }
 0x6ee   :  { %10310 = vmatprep.subr.bf16.mxu0 %v14864_v59  ;;  %v14948_v59 = vld [vmem:[#allocation7 + $0x66c] ss:$16 sps:$4 sm:$0xff]  }
 0x6f0   :  { %10270 = vmatpush1.bf16.msra.mxu1 %v14859_v36  ;;  %v14943_v36 = vld [vmem:[#allocation7 + $0x660] ss:$16 sps:$4 sm:$0xff]  }
 0x6f1   :  { %10311 = vmatpush1.bf16.msra.mxu0 %v14862_v43  ;;  %10271 = vmatprep.subr.bf16.mxu1 %v14867_v0  ;;  %v14946_v43 = vld [vmem:[#allocation7 + $0x668] ss:$16 sps:$4 sm:$0xff]   ;;  %v14951_v0 = vld [vmem:[#allocation7 + $0x684] ss:$16 sps:$4 sm:$0xff]  }
 0x6f2   :  { %10312 = vmatprep.subr.bf16.mxu0 %v14870_v27  ;;  %v14954_v27 = vld [vmem:[#allocation7 + $0x68c] ss:$16 sps:$4 sm:$0xff]  }
 0x6f4   :  { %10272 = vmatpush1.bf16.msra.mxu1 %v14865_v10  ;;  %v14949_v10 = vld [vmem:[#allocation7 + $0x680] ss:$16 sps:$4 sm:$0xff]  }
 0x6f5   :  { %10313 = vmatpush1.bf16.msra.mxu0 %v14868_v15  ;;  %10273 = vmatprep.subr.bf16.mxu1 %v14873_v17  ;;  %v14952_v15 = vld [vmem:[#allocation7 + $0x688] ss:$16 sps:$4 sm:$0xff]   ;;  %v14957_v17 = vld [vmem:[#allocation7 + $0x6a4] ss:$16 sps:$4 sm:$0xff]  }
 0x6f6   :  { %10314 = vmatprep.subr.bf16.mxu0 %v14876_v35  ;;  %v14960_v35 = vld [vmem:[#allocation7 + $0x6ac] ss:$16 sps:$4 sm:$0xff]  }
 0x6f8   :  { %10274 = vmatpush1.bf16.msra.mxu1 %v14871_v62  ;;  %v14955_v62 = vld [vmem:[#allocation7 + $0x6a0] ss:$16 sps:$4 sm:$0xff]  }
 0x6f9   :  { %10315 = vmatpush1.bf16.msra.mxu0 %v14874_v19  ;;  %10275 = vmatprep.subr.bf16.mxu1 %v14879_v9  ;;  %v14958_v19 = vld [vmem:[#allocation7 + $0x6a8] ss:$16 sps:$4 sm:$0xff]   ;;  %v14963_v9 = vld [vmem:[#allocation7 + $0x6c4] ss:$16 sps:$4 sm:$0xff]  }
 0x6fa   :  { %10316 = vmatprep.subr.bf16.mxu0 %v14882_v38  ;;  %v14966_v38 = vld [vmem:[#allocation7 + $0x6cc] ss:$16 sps:$4 sm:$0xff]  }
 0x6fc   :  { %10276 = vmatpush1.bf16.msra.mxu1 %v14877_v46  ;;  %v14961_v46 = vld [vmem:[#allocation7 + $0x6c0] ss:$16 sps:$4 sm:$0xff]  }
 0x6fd   :  { %10317 = vmatpush1.bf16.msra.mxu0 %v14880_v49  ;;  %10277 = vmatprep.subr.bf16.mxu1 %v14885_v20  ;;  %v14964_v49 = vld [vmem:[#allocation7 + $0x6c8] ss:$16 sps:$4 sm:$0xff]   ;;  %v14969_v20 = vld [vmem:[#allocation7 + $0x6e4] ss:$16 sps:$4 sm:$0xff]  }
 0x6fe   :  { %10318 = vmatprep.subr.bf16.mxu0 %v14888_v23  ;;  %v14972_v23 = vld [vmem:[#allocation7 + $0x6ec] ss:$16 sps:$4 sm:$0xff]  }
 0x700   :  { %10278 = vmatpush1.bf16.msra.mxu1 %v14883_v22  ;;  %v14967_v22 = vld [vmem:[#allocation7 + $0x6e0] ss:$16 sps:$4 sm:$0xff]  }
 0x701   :  { %10319 = vmatpush1.bf16.msra.mxu0 %v14886_v2  ;;  %10279 = vmatprep.subr.bf16.mxu1 %v14891_v42  ;;  %v14970_v2 = vld [vmem:[#allocation7 + $0x6e8] ss:$16 sps:$4 sm:$0xff]   ;;  %v14975_v42 = vld [vmem:[#allocation7 + $0x704] ss:$16 sps:$4 sm:$0xff]  }
 0x702   :  { %10320 = vmatprep.subr.bf16.mxu0 %v14894_v45  ;;  %v14978_v45 = vld [vmem:[#allocation7 + $0x70c] ss:$16 sps:$4 sm:$0xff]  }
 0x704   :  { %10280 = vmatpush1.bf16.msra.mxu1 %v14889_v41  ;;  %v14973_v41 = vld [vmem:[#allocation7 + $0x700] ss:$16 sps:$4 sm:$0xff]  }
 0x705   :  { %10321 = vmatpush1.bf16.msra.mxu0 %v14892_v34  ;;  %10281 = vmatprep.subr.bf16.mxu1 %v14897_v25  ;;  %v14976_v34 = vld [vmem:[#allocation7 + $0x708] ss:$16 sps:$4 sm:$0xff]   ;;  %v14981_v25 = vld [vmem:[#allocation7 + $0x724] ss:$16 sps:$4 sm:$0xff]  }
 0x706   :  { %10322 = vmatprep.subr.bf16.mxu0 %v14900_v18  ;;  %v14984_v18 = vld [vmem:[#allocation7 + $0x72c] ss:$16 sps:$4 sm:$0xff]  }
 0x708   :  { %10282 = vmatpush1.bf16.msra.mxu1 %v14895_v14  ;;  %v14979_v14 = vld [vmem:[#allocation7 + $0x720] ss:$16 sps:$4 sm:$0xff]  }
 0x709   :  { %10323 = vmatpush1.bf16.msra.mxu0 %v14898_v24  ;;  %10283 = vmatprep.subr.bf16.mxu1 %v14903_v6  ;;  %v14982_v24 = vld [vmem:[#allocation7 + $0x728] ss:$16 sps:$4 sm:$0xff]   ;;  %v14987_v6 = vld [vmem:[#allocation7 + $0x744] ss:$16 sps:$4 sm:$0xff]  }
 0x70a   :  { %10324 = vmatprep.subr.bf16.mxu0 %v14906_v51  ;;  %v14990_v51 = vld [vmem:[#allocation7 + $0x74c] ss:$16 sps:$4 sm:$0xff]  }
 0x70c   :  { %10284 = vmatpush1.bf16.msra.mxu1 %v14901_v31  ;;  %v14985_v31 = vld [vmem:[#allocation7 + $0x740] ss:$16 sps:$4 sm:$0xff]  }
 0x70d   :  { %10325 = vmatpush1.bf16.msra.mxu0 %v14904_v28  ;;  %10285 = vmatprep.subr.bf16.mxu1 %v14909_v32  ;;  %v14988_v28 = vld [vmem:[#allocation7 + $0x748] ss:$16 sps:$4 sm:$0xff]   ;;  %v14993_v32 = vld [vmem:[#allocation7 + $0x764] ss:$16 sps:$4 sm:$0xff]  }
 0x70e   :  { %10326 = vmatprep.subr.bf16.mxu0 %v14912_v3  ;;  %v14996_v3 = vld [vmem:[#allocation7 + $0x76c] ss:$16 sps:$4 sm:$0xff]  }
 0x710   :  { %10286 = vmatpush1.bf16.msra.mxu1 %v14907_v30  ;;  %v14991_v30 = vld [vmem:[#allocation7 + $0x760] ss:$16 sps:$4 sm:$0xff]  }
 0x711   :  { %10327 = vmatpush1.bf16.msra.mxu0 %v14910_v8  ;;  %10287 = vmatprep.subr.bf16.mxu1 %v14915_v56  ;;  %v14994_v8 = vld [vmem:[#allocation7 + $0x768] ss:$16 sps:$4 sm:$0xff]   ;;  %v14999_v56 = vld [vmem:[#allocation7 + $0x784] ss:$16 sps:$4 sm:$0xff]  }
 0x712   :  { %10328 = vmatprep.subr.bf16.mxu0 %v14918_v58  ;;  %v15002_v58 = vld [vmem:[#allocation7 + $0x78c] ss:$16 sps:$4 sm:$0xff]  }
 0x714   :  { %10288 = vmatpush1.bf16.msra.mxu1 %v14913_v40  ;;  %v14997_v40 = vld [vmem:[#allocation7 + $0x780] ss:$16 sps:$4 sm:$0xff]  }
 0x715   :  { %10329 = vmatpush1.bf16.msra.mxu0 %v14916_v7  ;;  %10289 = vmatprep.subr.bf16.mxu1 %v14921_v1  ;;  %v15000_v7 = vld [vmem:[#allocation7 + $0x788] ss:$16 sps:$4 sm:$0xff]   ;;  %v15005_v1 = vld [vmem:[#allocation7 + $0x7a4] ss:$16 sps:$4 sm:$0xff]  }
 0x716   :  { %10330 = vmatprep.subr.bf16.mxu0 %v14924_v12  ;;  %v15008_v12 = vld [vmem:[#allocation7 + $0x7ac] ss:$16 sps:$4 sm:$0xff]  }
 0x718   :  { %10290 = vmatpush1.bf16.msra.mxu1 %v14919_v4  ;;  %v15003_v4 = vld [vmem:[#allocation7 + $0x7a0] ss:$16 sps:$4 sm:$0xff]  }
 0x719   :  { %10331 = vmatpush1.bf16.msra.mxu0 %v14922_v48  ;;  %10730 = vmatprep.subr.bf16.mxu1 %v14927_v5  ;;  %v15011_v48 = vld [vmem:[#allocation7 + $0x7c4] ss:$16 sps:$4 sm:$0xff]   ;;  %v15014_v5 = vld [vmem:[#allocation7 + $0x7cc] ss:$16 sps:$4 sm:$0xff]  }
 0x71a   :  { %10771 = vmatprep.subr.bf16.mxu0 %v14930_v60  ;;  %v15009_v60 = vld [vmem:[#allocation7 + $0x7c0] ss:$16 sps:$4 sm:$0xff]  }
 0x71b   :  { %10292 = vmatmul.mubr.bf16.vlgmr.msra.gmra.mrb[100].mxu1 %v8937_v54 }
 0x71c   :  { %10333 = vmatmul.mubr.bf16.vlgmr.msra.gmra.mrb[96].mxu0 %v8937_v54  ;;  %10731 = vmatpush1.bf16.msra.mxu1 %v14925_v50  ;;  %v15017_v50 = vld [vmem:[#allocation7 + $0x7e4] ss:$16 sps:$4 sm:$0xff]   ;;  %v15020_v54 = vld [vmem:[#allocation7 + $0x7ec] ss:$16 sps:$4 sm:$0xff]  }
 0x71d   :  { %10762 = vmatprep.mubr.bf16.mxu1 %v8940_v52  ;;  %10772 = vmatpush1.bf16.msra.mxu0 %v14928_v55  ;;  %v15015_v55 = vld [vmem:[#allocation7 + $0x7e0] ss:$16 sps:$4 sm:$0xff]  }
 0x71e   :  { %10803 = vmatprep.mubr.bf16.mxu0 %v8940_v52  ;;  %10732 = vmatprep.subr.bf16.mxu1 %v14933_v61  ;;  %v8931_v61 = vmax.f32 %v17042_v37, 0.0  ;;  %v15018_v52 = vld [vmem:[#allocation7 + $0x7e8] ss:$16 sps:$4 sm:$0xff]  }
 0x71f   :  { %10773 = vmatprep.subr.bf16.mxu0 %v14936_v53  ;;  %v15023_v37 = vld [vmem:[#allocation10] sm:$0xff]  }
 0x720   :  { %10733 = vmatpush1.bf16.msra.mxu1 %v14931_v39  ;;  %v8939_v53 = vpack.c.bf16 %v8931_v61, %v8931_v61 }
 0x721   :  { %10774 = vmatpush1.bf16.msra.mxu0 %v14934_v57  ;;  %10734 = vmatprep.subr.bf16.mxu1 %v14939_v13 }
 0x722   :  { %10775 = vmatprep.subr.bf16.mxu0 %v14942_v33 }
 0x724   :  { %10735 = vmatpush1.bf16.msra.mxu1 %v14937_v26 }
 0x725   :  { %10776 = vmatpush1.bf16.msra.mxu0 %v14940_v47  ;;  %10736 = vmatprep.subr.bf16.mxu1 %v14945_v21 }
 0x726   :  { %10777 = vmatprep.subr.bf16.mxu0 %v14948_v59 }
 0x728   :  { %10737 = vmatpush1.bf16.msra.mxu1 %v14943_v36  ;;  %v15021_v36 = vld [vmem:[#allocation10 + $0x40] sm:$0xff]  }
 0x729   :  { %10778 = vmatpush1.bf16.msra.mxu0 %v14946_v43  ;;  %10738 = vmatprep.subr.bf16.mxu1 %v14951_v0  ;;  %v15022_v43 = vld [vmem:[#allocation10 + $0xc0] sm:$0xff]  }
 0x72a   :  { %10779 = vmatprep.subr.bf16.mxu0 %v14954_v27  ;;  %v15024_v0 = vld [vmem:[#allocation10 + $0x80] sm:$0xff]   ;;  %v15025_v27 = vld [vmem:[#allocation10 + $0x48] sm:$0xff]  }
 0x72c   :  { %10739 = vmatpush1.bf16.msra.mxu1 %v14949_v10  ;;  %v15026_v10 = vld [vmem:[#allocation10 + $0xc8] sm:$0xff]  }
 0x72d   :  { %10780 = vmatpush1.bf16.msra.mxu0 %v14952_v15  ;;  %10740 = vmatprep.subr.bf16.mxu1 %v14957_v17  ;;  %v15027_v15 = vld [vmem:[#allocation10 + $0x8] sm:$0xff]  }
 0x72e   :  { %10781 = vmatprep.subr.bf16.mxu0 %v14960_v35  ;;  %v15028_v17 = vld [vmem:[#allocation10 + $0x88] sm:$0xff]   ;;  %v15029_v35 = vld [vmem:[#allocation10 + $0x50] sm:$0xff]  }
 0x730   :  { %10741 = vmatpush1.bf16.msra.mxu1 %v14955_v62  ;;  %v15030_v62 = vld [vmem:[#allocation10 + $0xd0] sm:$0xff]  }
 0x731   :  { %10782 = vmatpush1.bf16.msra.mxu0 %v14958_v19  ;;  %10742 = vmatprep.subr.bf16.mxu1 %v14963_v9  ;;  %v15031_v19 = vld [vmem:[#allocation10 + $0x10] sm:$0xff]  }
 0x732   :  { %10783 = vmatprep.subr.bf16.mxu0 %v14966_v38  ;;  %v15032_v9 = vld [vmem:[#allocation10 + $0x90] sm:$0xff]   ;;  %v15033_v38 = vld [vmem:[#allocation10 + $0x58] sm:$0xff]  }
 0x734   :  { %10743 = vmatpush1.bf16.msra.mxu1 %v14961_v46  ;;  %v15034_v46 = vld [vmem:[#allocation10 + $0xd8] sm:$0xff]  }
 0x735   :  { %10784 = vmatpush1.bf16.msra.mxu0 %v14964_v49  ;;  %10744 = vmatprep.subr.bf16.mxu1 %v14969_v20  ;;  %v15035_v49 = vld [vmem:[#allocation10 + $0x18] sm:$0xff]  }
 0x736   :  { %10785 = vmatprep.subr.bf16.mxu0 %v14972_v23  ;;  %v15036_v20 = vld [vmem:[#allocation10 + $0x98] sm:$0xff]   ;;  %v15037_v23 = vld [vmem:[#allocation10 + $0x60] sm:$0xff]  }
 0x738   :  { %10745 = vmatpush1.bf16.msra.mxu1 %v14967_v22  ;;  %v15038_v22 = vld [vmem:[#allocation10 + $0xe0] sm:$0xff]  }
 0x739   :  { %10786 = vmatpush1.bf16.msra.mxu0 %v14970_v2  ;;  %10746 = vmatprep.subr.bf16.mxu1 %v14975_v42  ;;  %v15039_v2 = vld [vmem:[#allocation10 + $0x20] sm:$0xff]  }
 0x73a   :  { %10787 = vmatprep.subr.bf16.mxu0 %v14978_v45  ;;  %v15040_v42 = vld [vmem:[#allocation10 + $0xa0] sm:$0xff]   ;;  %v15041_v45 = vld [vmem:[#allocation10 + $0x68] sm:$0xff]  }
 0x73c   :  { %10747 = vmatpush1.bf16.msra.mxu1 %v14973_v41  ;;  %v15042_v41 = vld [vmem:[#allocation10 + $0xe8] sm:$0xff]  }
 0x73d   :  { %10788 = vmatpush1.bf16.msra.mxu0 %v14976_v34  ;;  %10748 = vmatprep.subr.bf16.mxu1 %v14981_v25 }
 0x73e   :  { %10789 = vmatprep.subr.bf16.mxu0 %v14984_v18  ;;  %v15043_v18 = vld [vmem:[#allocation10 + $0x28] sm:$0xff]  }
 0x740   :  { %10749 = vmatpush1.bf16.msra.mxu1 %v14979_v14  ;;  %v15044_v14 = vld [vmem:[#allocation10 + $0xa8] sm:$0xff]  }
 0x741   :  { %10790 = vmatpush1.bf16.msra.mxu0 %v14982_v24  ;;  %10750 = vmatprep.subr.bf16.mxu1 %v14987_v6 }
 0x742   :  { %10791 = vmatprep.subr.bf16.mxu0 %v14990_v51 }
 0x744   :  { %10751 = vmatpush1.bf16.msra.mxu1 %v14985_v31 }
 0x745   :  { %10792 = vmatpush1.bf16.msra.mxu0 %v14988_v28  ;;  %10752 = vmatprep.subr.bf16.mxu1 %v14993_v32 }
 0x746   :  { %10793 = vmatprep.subr.bf16.mxu0 %v14996_v3 }
 0x748   :  { %10753 = vmatpush1.bf16.msra.mxu1 %v14991_v30 }
 0x749   :  { %10794 = vmatpush1.bf16.msra.mxu0 %v14994_v8  ;;  %10754 = vmatprep.subr.bf16.mxu1 %v14999_v56 }
 0x74a   :  { %10795 = vmatprep.subr.bf16.mxu0 %v15002_v58  ;;  %v15045_v58 = vld [vmem:[#allocation10 + $0x70] sm:$0xff]  }
 0x74c   :  { %10755 = vmatpush1.bf16.msra.mxu1 %v14997_v40  ;;  %v15046_v40 = vld [vmem:[#allocation10 + $0xf0] sm:$0xff]  }
 0x74d   :  { %10796 = vmatpush1.bf16.msra.mxu0 %v15000_v7  ;;  %10756 = vmatprep.subr.bf16.mxu1 %v15005_v1  ;;  %v15047_v7 = vld [vmem:[#allocation10 + $0x30] sm:$0xff]  }
 0x74e   :  { %10797 = vmatprep.subr.bf16.mxu0 %v15008_v12  ;;  %v15048_v1 = vld [vmem:[#allocation10 + $0xb0] sm:$0xff]   ;;  %v15049_v12 = vld [vmem:[#allocation10 + $0x78] sm:$0xff]  }
 0x750   :  { %10757 = vmatpush1.bf16.msra.mxu1 %v15003_v4  ;;  %v15050_v4 = vld [vmem:[#allocation10 + $0xf8] sm:$0xff]  }
 0x751   :  { %10798 = vmatpush1.bf16.msra.mxu0 %v15006_v11  ;;  %10758 = vmatprep.subr.bf16.mxu1 %v15011_v48  ;;  %v15051_v11 = vld [vmem:[#allocation10 + $0x38] sm:$0xff]  }
 0x752   :  { %10799 = vmatprep.subr.bf16.mxu0 %v15014_v5  ;;  %v15052_v48 = vld [vmem:[#allocation10 + $0xb8] sm:$0xff]  }
 0x754   :  { %10759 = vmatpush1.bf16.msra.mxu1 %v15009_v60 }
 0x755   :  { %10800 = vmatpush1.bf16.msra.mxu0 %v15012_v44  ;;  %10760 = vmatprep.subr.bf16.mxu1 %v15017_v50 }
 0x756   :  { %10801 = vmatprep.subr.bf16.mxu0 %v15020_v54 }
 0x758   :  { %10761 = vmatpush1.bf16.msra.mxu1 %v15015_v55 }
 0x759   :  { %10802 = vmatpush1.bf16.msra.mxu0 %v15018_v52  ;;  %12621 = vmatprep.subr.bf16.mxu1 %v15021_v36 }
 0x75a   :  { %12643 = vmatprep.subr.bf16.mxu0 %v15022_v43 }
 0x75b   :  { %10763 = vmatmul.mubr.bf16.vlgmr.msra.gmra.mrb[104].mxu1 %v8939_v53 }
 0x75c   :  { %10804 = vmatmul.mubr.bf16.vlgmr.msra.gmra.mrb[100].mxu0 %v8939_v53  ;;  %12622 = vmatpush3.bf16.msra.mxu1 %v15023_v37 }
 0x75d   :  { %12644 = vmatpush3.bf16.msra.mxu0 %v15024_v0  ;;  %12623 = vmatprep.subr.bf16.mxu1 %v15025_v27 }
 0x75e   :  { %12645 = vmatprep.subr.bf16.mxu0 %v15026_v10 }
 0x760   :  { %12624 = vmatpush3.bf16.msra.mxu1 %v15027_v15 }
 0x761   :  { %12646 = vmatpush3.bf16.msra.mxu0 %v15028_v17  ;;  %12625 = vmatprep.subr.bf16.mxu1 %v15029_v35 }
 0x762   :  { %12647 = vmatprep.subr.bf16.mxu0 %v15030_v62 }
 0x764   :  { %12626 = vmatpush3.bf16.msra.mxu1 %v15031_v19 }
 0x765   :  { %12648 = vmatpush3.bf16.msra.mxu0 %v15032_v9  ;;  %12627 = vmatprep.subr.bf16.mxu1 %v15033_v38 }
 0x766   :  { %12649 = vmatprep.subr.bf16.mxu0 %v15034_v46 }
 0x768   :  { %12628 = vmatpush3.bf16.msra.mxu1 %v15035_v49 }
 0x769   :  { %12650 = vmatpush3.bf16.msra.mxu0 %v15036_v20  ;;  %12629 = vmatprep.subr.bf16.mxu1 %v15037_v23 }
 0x76a   :  { %12651 = vmatprep.subr.bf16.mxu0 %v15038_v22 }
 0x76c   :  { %12630 = vmatpush3.bf16.msra.mxu1 %v15039_v2 }
 0x76d   :  { %12652 = vmatpush3.bf16.msra.mxu0 %v15040_v42  ;;  %12631 = vmatprep.subr.bf16.mxu1 %v15041_v45 }
 0x76e   :  { %v9424_v39 = vpop.f32.mrb[92].mxu1  ;;  %v9465_v57 = vpop.f32.mrb[88].mxu0  ;;  %12653 = vmatprep.subr.bf16.mxu0 %v15042_v41 }
 0x76f   :  { %v9426_v13 = vpop.f32.mrb[93].mxu1  ;;  %v9467_v33 = vpop.f32.mrb[89].mxu0 }
 0x770   :  { %v9428_v26 = vpop.f32.mrb[94].mxu1  ;;  %v9469_v47 = vpop.f32.mrb[90].mxu0  ;;  %12632 = vmatpush3.bf16.msra.mxu1 %v15043_v18 }
 0x771   :  { %v9429_v21 = vpop.f32.mrb[95].mxu1  ;;  %v9470_v59 = vpop.f32.mrb[91].mxu0  ;;  %12654 = vmatpush3.bf16.msra.mxu0 %v15044_v14  ;;  %12633 = vmatprep.subr.bf16.mxu1 %v15045_v58  ;;  %v10832_v26 = vsub.s32 3, %v16553_v63  ;;  %v12388_v14 = vld [vmem:[#allocation12] ss:$0 sm:$0xff] }
 0x772   :  { %12655 = vmatprep.subr.bf16.mxu0 %v15046_v40  ;;  %v17203_v59 = vsub.s32 2, %v16553_v63 }
 0x774   :  { %12634 = vmatpush3.bf16.msra.mxu1 %v15047_v7 }
 0x775   :  { %12656 = vmatpush3.bf16.msra.mxu0 %v15048_v1  ;;  %12635 = vmatprep.subr.bf16.mxu1 %v15049_v12 }
 0x776   :  { %12657 = vmatprep.subr.bf16.mxu0 %v15050_v4 }
 0x778   :  { %12636 = vmatpush3.bf16.msra.mxu1 %v15051_v11 }
 0x779   :  { %12658 = vmatpush3.bf16.msra.mxu0 %v15052_v48 }
 0x7ae   :  { %v9826_v34 = vpop.f32.mrb[96].mxu1  ;;  %v9867_v25 = vpop.f32.mrb[92].mxu0 }
 0x7af   :  { %v9827_v24 = vadd.f32 %v9826_v34, %v9424_v39  ;;  %v9868_v6 = vadd.f32 %v9867_v25, %v9465_v57  ;;  %v9828_v51 = vpop.f32.mrb[97].mxu1  ;;  %v9869_v31 = vpop.f32.mrb[93].mxu0 }
 0x7b0   :  { %v9829_v28 = vadd.f32 %v9828_v51, %v9426_v13  ;;  %v9870_v32 = vadd.f32 %v9869_v31, %v9467_v33  ;;  %v9830_v3 = vpop.f32.mrb[98].mxu1  ;;  %v9871_v30 = vpop.f32.mrb[94].mxu0  ;;  %v10816_v33 = vld [vmem:[#allocation9] sm:$0xf] }
 0x7b1   :  { %v9831_v8 = vpop.f32.mrb[99].mxu1  ;;  %v9872_v56 = vpop.f32.mrb[95].mxu0  ;;  %v10821_v47 = vrot.slane %v10816_v33, %v17201_v16  ;;  %v10829_v36 = vrot.slane %v10816_v33, %v17203_v59  ;;  %v10825_v43 = vrot.slane %v10816_v33, %v17202_v29  ;;  %v10833_v10 = vrot.slane %v10816_v33, %v10832_v26 }
 0x7ee   :  { %v10293_v5 = vpop.f32.mrb[100].mxu1 }
 0x7ef   :  { %v10341_v60 = vadd.f32 %v10293_v5, %v9827_v24  ;;  %v10334_v44 = vpop.f32.mrb[96].mxu0  ;;  %v10295_v50 = vpop.f32.mrb[101].mxu1 }
 0x7f0   :  { %v10343_v54 = vadd.f32 %v10334_v44, %v9868_v6  ;;  %v10342_v55 = vadd.f32 %v10295_v50, %v9829_v28  ;;  %v10336_v61 = vpop.f32.mrb[97].mxu0  ;;  %v10297_v52 = vpop.f32.mrb[102].mxu1 }
 0x7f1   :  { %v10344_v53 = vadd.f32 %v10336_v61, %v9870_v32  ;;  %v10338_v39 = vpop.f32.mrb[98].mxu0  ;;  %v10298_v57 = vpop.f32.mrb[103].mxu1 }
 0x7f2   :  { %v10339_v13 = vpop.f32.mrb[99].mxu0 }
 0x82e   :  { %v10764_v21 = vpop.f32.mrb[104].mxu1 }
 0x82f   :  { %v10812_v37 = vadd.f32 %v10764_v21, %v10341_v60  ;;  %v10805_v0 = vpop.f32.mrb[100].mxu0  ;;  %v10766_v27 = vpop.f32.mrb[105].mxu1 }
 0x830   :  { %v10814_v15 = vadd.f32 %v10805_v0, %v10343_v54  ;;  %v10813_v17 = vadd.f32 %v10766_v27, %v10342_v55  ;;  %v10807_v35 = vpop.f32.mrb[101].mxu0  ;;  %v10768_v62 = vpop.f32.mrb[106].mxu1 }
 0x831   :  { %v10838_v19 = vadd.f32 %v10821_v47, %v10812_v37  ;;  %v10815_v9 = vadd.f32 %v10807_v35, %v10344_v53  ;;  %v10809_v38 = vpop.f32.mrb[102].mxu0  ;;  %v10769_v46 = vpop.f32.mrb[107].mxu1 }
 0x832   :  { %v10840_v49 = vadd.f32 %v10829_v36, %v10814_v15  ;;  %v10839_v16 = vadd.f32 %v10825_v43, %v10813_v17  ;;  %v10810_v20 = vpop.f32.mrb[103].mxu0 }
 0x833   :  { %v10842_v23 = vmax.f32 %v10838_v19, 0.0  ;;  %v10841_v63 = vadd.f32 %v10833_v10, %v10815_v9 }
 0x834   :  { %v10844_v22 = vmax.f32 %v10840_v49, 0.0  ;;  %v10843_v2 = vmax.f32 %v10839_v16, 0.0 }
 0x835   :  { %10846 = vst [vmem:[%s17081_s9] sm:$0xff] %v10842_v23  ;;  %v10845_v29 = vmax.f32 %v10841_v63, 0.0  ;;  %v10850_v45 = vpack.c.bf16 %v10842_v23, %v10842_v23 }
 0x836   :  { %10848 = vst [vmem:[%s17081_s9 + $0x10] sm:$0xff] %v10844_v22  ;;  %10847 = vst [vmem:[%s17081_s9 + $0x8] sm:$0xff] %v10843_v2  ;;  %v10851_v42 = vpack.c.bf16 %v10843_v2, %v10843_v2  ;;  %v10852_v34 = vpack.c.bf16 %v10844_v22, %v10844_v22 }
 0x837   :  { %10849 = vst [vmem:[%s17081_s9 + $0x18] sm:$0xff] %v10845_v29  ;;  %v10853_v41 = vpack.c.bf16 %v10845_v29, %v10845_v29 }
 0x838   :  { %11149 = vmatprep.mubr.bf16.mxu1 %v10851_v42 }
 0x839   :  { %11189 = vmatprep.mubr.bf16.mxu0 %v10853_v41  ;;  %11150 = vmatmul.mubr.bf16.vlgmr.msra.gmra.mrb[108].mxu1 %v10850_v45 }
 0x83a   :  { %11190 = vmatmul.mubr.bf16.vlgmr.msra.gmra.mrb[104].mxu0 %v10852_v34 }
 0x90c   :  { %v12637_v25 = vpop.f32.mrb[108].mxu1 }
 0x90d   :  { %v12659_v18 = vpop.f32.mrb[104].mxu0  ;;  %v12638_v24 = vpop.f32.mrb[109].mxu1 }
 0x90e   :  { %v12639_v6 = vadd.f32 %v12638_v24, %v12637_v25  ;;  %v12660_v51 = vpop.f32.mrb[105].mxu0  ;;  %v12640_v31 = vpop.f32.mrb[110].mxu1 }
 0x90f   :  { %v12661_v28 = vadd.f32 %v12660_v51, %v12659_v18  ;;  %v12662_v32 = vpop.f32.mrb[106].mxu0  ;;  %v12641_v3 = vpop.f32.mrb[111].mxu1 }
 0x910   :  { %v11152_v30 = vadd.f32 %v12639_v6, %v12388_v14  ;;  %v12663_v8 = vpop.f32.mrb[107].mxu0 }
 0x912   :  { %v11192_v56 = vadd.f32 %v12661_v28, %v11152_v30 }
 0x914   :  { %11197 = vst [vmem:[%s17082_s10] sm:$0xff] %v11192_v56 }
 0x915   :  { %11206 = vsyncpa [#allocation3], 1 }
 0x916   :  { %11207 = vsyncpa [#allocation5], 1 }
 0x917   :  { %11208 = vsyncpa [#allocation8], 1 }
 0x918   :  { %11209 = vsyncpa [#allocation11], 1 }

</bundles_post_ra>
